<compile_context>
chip_gen: v6e
topology: v6e:2x2x1
jax: 0.10.0
libtpu: 0.0.40
codegen_flags: <defaults>
</compile_context>

<pallas_src>
import functools

import jax
import jax.numpy as jnp
from jax.experimental import pallas as pl
from jax.experimental.pallas import tpu as pltpu

IN_FEATURES = 3 * 6 * 512   # 9216
H1 = 100
H1_PAD = 128                # lane-aligned padded hidden width (exact: pads are zeros)
H2 = 32
OUT = 3


def _round_up(n, m):
    return -(-n // m) * m


def _image_da_kernel(x_ref, w1_ref, b1_ref, w3_ref, b3_ref, w2_ref, b2_ref, o_ref):
    # grad_reverse (GRL) is identity in the forward pass.
    # TODO(synk): the GRL backward (-0.1 * grad) needs a jax.custom_vjp wrapper; forward-only here.
    x = x_ref[...]

    # fc1 + ReLU : (tile_b, 9216) @ (9216, 128) -> (tile_b, 128)
    # H1 is zero-padded 100 -> 128 in the wrapper; padded columns stay exactly 0 through the
    # ReLU and meet zero rows of W3, so results are bit-identical to the unpadded math.
    h1 = jnp.dot(x, w1_ref[...], preferred_element_type=jnp.float32) + b1_ref[...]
    h1 = jnp.maximum(h1, 0.0)

    # fc3 + ReLU : (tile_b, 128) @ (128, 32) -> (tile_b, 32)
    h2 = jnp.dot(h1, w3_ref[...], preferred_element_type=jnp.float32) + b3_ref[...]
    h2 = jnp.maximum(h2, 0.0)

    # fc2 : (tile_b, 32) @ (32, 3) -> (tile_b, 3)
    # Left on the MXU: the kernel is HBM-bound on streaming x/W1 and this op is <0.01% of the
    # work, so replacing it with a VPU multiply+lane-reduce is measurement noise here.
    z = jnp.dot(h2, w2_ref[...], preferred_element_type=jnp.float32) + b2_ref[...]

    # log_softmax over dim=1 (numerically stable)
    m = jnp.max(z, axis=1, keepdims=True)
    s = z - m
    lse = jnp.log(jnp.sum(jnp.exp(s), axis=1, keepdims=True))
    o_ref[...] = s - lse


def _const_spec(shape):
    # Grid-invariant operand: single-buffer it (its index_map is constant, so there is no
    # "next" block to prefetch). Reclaims the VMEM a second W1 copy would occupy.
    return pl.BlockSpec(shape, lambda i: (0, 0), pipeline_mode=pl.Buffered(1))


@functools.partial(jax.jit, static_argnames=("tile_b", "stream_bf16"))
def image_da_forward(x, w1, b1, w3, b3, w2, b2, *, tile_b=None, stream_bf16=False):
    B, F = x.shape
    assert F == IN_FEATURES

    if tile_b is None:
        # The kernel is HBM-bound streaming x; a 256-row x-tile (9216 wide, f32) is ~9.4 MiB
        # per step, so the ~0.35 us/step grid overhead is <2% and the MXU M dimension (256 on
        # v6e/v7x) is filled. 2 x-buffers + single-buffered weights stay well under v7x's
        # 64 MiB VMEM (v5e/v6e have 128 MiB). Small batches collapse to one (balanced) step.
        # NOTE(v7x): for small B one could force >=2 grid steps so both TensorCores get work;
        # kept generation-agnostic here.
        n_tiles = max(1, -(-B // 256))
        tile_b = _round_up(-(-B // n_tiles), 8)   # balanced tiles, each a multiple of 8, <=256
    assert tile_b % 8 == 0, "tile_b must be a multiple of 8 (sublane alignment)"

    B_pad = _round_up(B, tile_b)
    if B_pad != B:
        x = jnp.pad(x, ((0, B_pad - B), (0, 0)))   # padded rows are sliced off below

    # Zero-pad H1 (100 -> 128): pad W1/b1 columns and W3 rows. Exact; ideally done once at init.
    w1p = jnp.pad(w1, ((0, 0), (0, H1_PAD - H1)))
    b1p = jnp.pad(b1, ((0, 0), (0, H1_PAD - H1)))
    w3p = jnp.pad(w3, ((0, H1_PAD - H1), (0, 0)))

    if stream_bf16:
        # Halve the dominant HBM streams (x for large B, W1 for small B); accumulation stays f32.
        x = x.astype(jnp.bfloat16)
        w1p = w1p.astype(jnp.bfloat16)
    x_bytes = 2 if stream_bf16 else 4

    grid = (B_pad // tile_b,)

    # VMEM budget: double-buffered x tile + single-buffered weights + (lane-padded) output tile.
    vmem_bytes = (
        2 * tile_b * IN_FEATURES * x_bytes
        + IN_FEATURES * H1_PAD * x_bytes
        + (H1_PAD + H1_PAD * H2 + H2 + H2 * OUT + OUT) * 4
        + 2 * tile_b * 128 * 4
    )
    vmem_limit = min(int(vmem_bytes * 1.2) + (8 << 20), 96 << 20)

    flops = 2 * B_pad * (IN_FEATURES * H1_PAD + H1_PAD * H2 + H2 * OUT)
    bytes_accessed = (
        B_pad * IN_FEATURES * x_bytes
        + IN_FEATURES * H1_PAD * x_bytes
        + (H1_PAD + H1_PAD * H2 + H2 + H2 * OUT + OUT) * 4
        + B_pad * OUT * 4
    )
    cost = pl.CostEstimate(flops=flops,
                           transcendentals=B_pad * (OUT + 1),
                           bytes_accessed=bytes_accessed)

    out = pl.pallas_call(
        _image_da_kernel,
        out_shape=jax.ShapeDtypeStruct((B_pad, OUT), jnp.float32),
        grid_spec=pltpu.PrefetchScalarGridSpec(
            num_scalar_prefetch=0,
            grid=grid,
            in_specs=[
                pl.BlockSpec((tile_b, IN_FEATURES), lambda i: (i, 0)),  # x tile (double-buffered)
                _const_spec((IN_FEATURES, H1_PAD)),                     # W1 (padded)
                _const_spec((1, H1_PAD)),                               # b1 (padded)
                _const_spec((H1_PAD, H2)),                              # W3 (padded rows)
                _const_spec((1, H2)),                                   # b3
                _const_spec((H2, OUT)),                                 # W2
                _const_spec((1, OUT)),                                  # b2
            ],
            out_specs=pl.BlockSpec((tile_b, OUT), lambda i: (i, 0)),
        ),
        compiler_params=pltpu.CompilerParams(
            dimension_semantics=("parallel",),   # independent batch tiles (megacore-shardable)
            vmem_limit_bytes=vmem_limit,
        ),
        cost_estimate=cost,
    )(x, w1p, b1p, w3p, b3, w2, b2)

    return out[:B] if B_pad != B else out


def _reference(x, w1, b1, w3, b3, w2, b2):
    h1 = jnp.maximum(x @ w1 + b1, 0.0)
    h2 = jnp.maximum(h1 @ w3 + b3, 0.0)
    z = h2 @ w2 + b2
    return jax.nn.log_softmax(z, axis=1)


def _init_linear(key, fan_in, fan_out):
    # Deterministic PyTorch-style uniform init: U(-1/sqrt(fan_in), 1/sqrt(fan_in)).
    kw, kb = jax.random.split(key)
    bound = 1.0 / jnp.sqrt(jnp.float32(fan_in))
    # Stored as [in, out] (transposed relative to nn.Linear.weight).
    w = jax.random.uniform(kw, (fan_in, fan_out), jnp.float32, -bound, bound)
    b = jax.random.uniform(kb, (1, fan_out), jnp.float32, -bound, bound)
    return w, b


if __name__ == "__main__":
    key = jax.random.PRNGKey(0)
    kx, k1, k3, k2 = jax.random.split(key, 4)

    w1, b1 = _init_linear(k1, IN_FEATURES, H1)
    w3, b3 = _init_linear(k3, H1, H2)
    w2, b2 = _init_linear(k2, H2, OUT)

    # 1) small batch, default tile selection (single grid step), f32 streaming.
    B = 16
    x = jax.random.normal(kx, (B, IN_FEATURES), jnp.float32)
    out = jax.block_until_ready(image_da_forward(x, w1, b1, w3, b3, w2, b2))
    ref = _reference(x, w1, b1, w3, b3, w2, b2)
    assert out.shape == (B, OUT)
    assert jnp.allclose(out, ref, atol=1e-4, rtol=1e-4), "f32 path mismatch vs. reference"

    # 2) ragged batch (B not a multiple of the tile) + multi-step grid.
    B2 = 10
    x2 = jax.random.normal(kx, (B2, IN_FEATURES), jnp.float32)
    out2 = jax.block_until_ready(
        image_da_forward(x2, w1, b1, w3, b3, w2, b2, tile_b=8))
    ref2 = _reference(x2, w1, b1, w3, b3, w2, b2)
    assert out2.shape == (B2, OUT)
    assert jnp.allclose(out2, ref2, atol=1e-4, rtol=1e-4), "ragged-batch path mismatch"

    # 3) bf16 streaming of x / W1 (HBM-bandwidth option); accumulation is f32, so only the
    #    input-rounding error remains -> loose tolerance vs. the f32 reference.
    out3 = jax.block_until_ready(
        image_da_forward(x, w1, b1, w3, b3, w2, b2, stream_bf16=True))
    assert out3.shape == (B, OUT)
    assert jnp.allclose(out3, ref, atol=5e-2, rtol=5e-2), "bf16-streaming path mismatch"

    print("KERNEL_OK")
</pallas_src>

<mosaic_0001>
module attributes {stable_mosaic.version = 11 : i64} {
  func.func @_image_da_kernel(%arg0: i32, %arg1: memref<16x9216xf32, #tpu.memory_space<vmem>>, %arg2: memref<9216x128xf32, #tpu.memory_space<vmem>>, %arg3: memref<1x128xf32, #tpu.memory_space<vmem>>, %arg4: memref<128x32xf32, #tpu.memory_space<vmem>>, %arg5: memref<1x32xf32, #tpu.memory_space<vmem>>, %arg6: memref<32x3xf32, #tpu.memory_space<vmem>>, %arg7: memref<1x3xf32, #tpu.memory_space<vmem>>, %arg8: memref<16x3xf32, #tpu.memory_space<vmem>>) attributes {dimension_semantics = [#tpu.dimension_semantics<parallel>], iteration_bounds = array<i64: 1>, scalar_prefetch = 0 : i64, scratch_operands = 0 : i64, tpu.core_type = #tpu.core_type<tc>, window_params = [{transform_indices = @transform_0, window_bounds = array<i64: 16, 9216>}, {pipeline_mode = #tpu.pipeline_mode<synchronous>, transform_indices = @transform_1, window_bounds = array<i64: 9216, 128>}, {pipeline_mode = #tpu.pipeline_mode<synchronous>, transform_indices = @transform_2, window_bounds = array<i64: 1, 128>}, {pipeline_mode = #tpu.pipeline_mode<synchronous>, transform_indices = @transform_3, window_bounds = array<i64: 128, 32>}, {pipeline_mode = #tpu.pipeline_mode<synchronous>, transform_indices = @transform_4, window_bounds = array<i64: 1, 32>}, {pipeline_mode = #tpu.pipeline_mode<synchronous>, transform_indices = @transform_5, window_bounds = array<i64: 32, 3>}, {pipeline_mode = #tpu.pipeline_mode<synchronous>, transform_indices = @transform_6, window_bounds = array<i64: 1, 3>}, {transform_indices = @transform_7, window_bounds = array<i64: 16, 3>}]} {
    %c0 = arith.constant 0 : index
    %c0_0 = arith.constant 0 : index
    %0 = vector.load %arg1[%c0, %c0_0] : memref<16x9216xf32, #tpu.memory_space<vmem>>, vector<16x9216xf32>
    %c0_1 = arith.constant 0 : index
    %c0_2 = arith.constant 0 : index
    %1 = vector.load %arg2[%c0_1, %c0_2] : memref<9216x128xf32, #tpu.memory_space<vmem>>, vector<9216x128xf32>
    %cst = arith.constant dense<0.000000e+00> : vector<16x128xf32>
    %2 = tpu.matmul %0, %1, %cst {dimension_numbers = #tpu.dot_dimension_numbers<[1], [0], [0], [1], [0, 0, 1, 1], [], []>} : vector<16x9216xf32>, vector<9216x128xf32>, vector<16x128xf32> -> vector<16x128xf32>
    %c0_3 = arith.constant 0 : index
    %c0_4 = arith.constant 0 : index
    %3 = vector.load %arg3[%c0_3, %c0_4] : memref<1x128xf32, #tpu.memory_space<vmem>>, vector<1x128xf32>
    %4 = vector.broadcast %3 : vector<1x128xf32> to vector<16x128xf32>
    %5 = arith.addf %2, %4 : vector<16x128xf32>
    %cst_5 = arith.constant 0.000000e+00 : f32
    %6 = vector.broadcast %cst_5 : f32 to vector<16x128xf32>
    %7 = arith.maximumf %5, %6 : vector<16x128xf32>
    %c0_6 = arith.constant 0 : index
    %c0_7 = arith.constant 0 : index
    %8 = vector.load %arg4[%c0_6, %c0_7] : memref<128x32xf32, #tpu.memory_space<vmem>>, vector<128x32xf32>
    %cst_8 = arith.constant dense<0.000000e+00> : vector<16x32xf32>
    %9 = tpu.matmul %7, %8, %cst_8 {dimension_numbers = #tpu.dot_dimension_numbers<[1], [0], [0], [1], [0, 0, 1, 1], [], []>} : vector<16x128xf32>, vector<128x32xf32>, vector<16x32xf32> -> vector<16x32xf32>
    %c0_9 = arith.constant 0 : index
    %c0_10 = arith.constant 0 : index
    %10 = vector.load %arg5[%c0_9, %c0_10] : memref<1x32xf32, #tpu.memory_space<vmem>>, vector<1x32xf32>
    %11 = vector.broadcast %10 : vector<1x32xf32> to vector<16x32xf32>
    %12 = arith.addf %9, %11 : vector<16x32xf32>
    %cst_11 = arith.constant 0.000000e+00 : f32
    %13 = vector.broadcast %cst_11 : f32 to vector<16x32xf32>
    %14 = arith.maximumf %12, %13 : vector<16x32xf32>
    %c0_12 = arith.constant 0 : index
    %c0_13 = arith.constant 0 : index
    %15 = vector.load %arg6[%c0_12, %c0_13] : memref<32x3xf32, #tpu.memory_space<vmem>>, vector<32x3xf32>
    %cst_14 = arith.constant dense<0.000000e+00> : vector<16x3xf32>
    %16 = tpu.matmul %14, %15, %cst_14 {dimension_numbers = #tpu.dot_dimension_numbers<[1], [0], [0], [1], [0, 0, 1, 1], [], []>} : vector<16x32xf32>, vector<32x3xf32>, vector<16x3xf32> -> vector<16x3xf32>
    %c0_15 = arith.constant 0 : index
    %c0_16 = arith.constant 0 : index
    %17 = vector.load %arg7[%c0_15, %c0_16] : memref<1x3xf32, #tpu.memory_space<vmem>>, vector<1x3xf32>
    %18 = vector.broadcast %17 : vector<1x3xf32> to vector<16x3xf32>
    %19 = arith.addf %16, %18 : vector<16x3xf32>
    %cst_17 = arith.constant dense<0xFF800000> : vector<16xf32>
    %20 = vector.multi_reduction <maximumf>, %19, %cst_17 [1] : vector<16x3xf32> to vector<16xf32>
    %21 = vector.shape_cast %20 : vector<16xf32> to vector<16x1xf32>
    %22 = vector.broadcast %21 : vector<16x1xf32> to vector<16x3xf32>
    %23 = arith.subf %19, %22 : vector<16x3xf32>
    %24 = math.exp %23 : vector<16x3xf32>
    %cst_18 = arith.constant dense<0.000000e+00> : vector<16xf32>
    %25 = vector.multi_reduction <add>, %24, %cst_18 [1] : vector<16x3xf32> to vector<16xf32>
    %26 = vector.shape_cast %25 : vector<16xf32> to vector<16x1xf32>
    %27 = math.log %26 : vector<16x1xf32>
    %28 = vector.broadcast %27 : vector<16x1xf32> to vector<16x3xf32>
    %29 = arith.subf %23, %28 : vector<16x3xf32>
    %c0_19 = arith.constant 0 : index
    %c0_20 = arith.constant 0 : index
    %30 = vector.load %arg8[%c0_19, %c0_20] : memref<16x3xf32, #tpu.memory_space<vmem>>, vector<16x3xf32>
    tpu.vector_store %arg8[%c0_19, %c0_20], %29 {strides = array<i32>} : memref<16x3xf32, #tpu.memory_space<vmem>>, vector<16x3xf32>,
    return
  }
  func.func @transform_0(%arg0: i32) -> (i32, i32) {
    %c0_i32 = arith.constant 0 : i32
    %c0_i32_0 = arith.constant 0 : i32
    return %arg0, %c0_i32 : i32, i32
  }
  func.func @transform_1(%arg0: i32) -> (i32, i32) {
    %c0_i32 = arith.constant 0 : i32
    %c0_i32_0 = arith.constant 0 : i32
    %c0_i32_1 = arith.constant 0 : i32
    return %c0_i32, %c0_i32_0 : i32, i32
  }
  func.func @transform_2(%arg0: i32) -> (i32, i32) {
    %c0_i32 = arith.constant 0 : i32
    %c0_i32_0 = arith.constant 0 : i32
    %c0_i32_1 = arith.constant 0 : i32
    return %c0_i32, %c0_i32_0 : i32, i32
  }
  func.func @transform_3(%arg0: i32) -> (i32, i32) {
    %c0_i32 = arith.constant 0 : i32
    %c0_i32_0 = arith.constant 0 : i32
    %c0_i32_1 = arith.constant 0 : i32
    return %c0_i32, %c0_i32_0 : i32, i32
  }
  func.func @transform_4(%arg0: i32) -> (i32, i32) {
    %c0_i32 = arith.constant 0 : i32
    %c0_i32_0 = arith.constant 0 : i32
    %c0_i32_1 = arith.constant 0 : i32
    return %c0_i32, %c0_i32_0 : i32, i32
  }
  func.func @transform_5(%arg0: i32) -> (i32, i32) {
    %c0_i32 = arith.constant 0 : i32
    %c0_i32_0 = arith.constant 0 : i32
    %c0_i32_1 = arith.constant 0 : i32
    return %c0_i32, %c0_i32_0 : i32, i32
  }
  func.func @transform_6(%arg0: i32) -> (i32, i32) {
    %c0_i32 = arith.constant 0 : i32
    %c0_i32_0 = arith.constant 0 : i32
    %c0_i32_1 = arith.constant 0 : i32
    return %c0_i32, %c0_i32_0 : i32, i32
  }
  func.func @transform_7(%arg0: i32) -> (i32, i32) {
    %c0_i32 = arith.constant 0 : i32
    %c0_i32_0 = arith.constant 0 : i32
    return %arg0, %c0_i32 : i32, i32
  }
}

</mosaic_0001>

<bundles_post_ra>
// kernel: image_da_forward.1
= control target key start
LH: loop header
LB: loop body
LE: loop exit
PB: predicated region body
PF: predicated region fallthrough
CT: control target
= control target key end

     0   :  { %vm4142_vm0 = vcmask 261120   ;;  %vm4224_vm1 = vcmask 23552   ;;  %s10004_s1 = inlined_call_operand.vmem [shape: f32[9216,128], index: 1, kind: input, shape index: {}]   ;;  %s10005_s0 = inlined_call_operand.vmem [shape: f32[16,9216], index: 0, kind: input, shape index: {}]   ;;  %s10006_s2 = inlined_call_operand.vmem [shape: f32[1,128], index: 2, kind: input, shape index: {}]   ;;  %s10007_s3 = inlined_call_operand.vmem [shape: f32[128,32], index: 3, kind: input, shape index: {}]   ;;  %s10008_s5 = inlined_call_operand.vmem [shape: f32[32,3], index: 5, kind: input, shape index: {}]   ;;  %s10009_s4 = inlined_call_operand.vmem [shape: f32[1,32], index: 4, kind: input, shape index: {}]   ;;  %s10010_s6 = inlined_call_operand.vmem [shape: f32[1,3], index: 6, kind: input, shape index: {}]   ;;  %s10011_s7 = inlined_call_operand.vmem [shape: f32[16,3], index: 7, kind: output, shape index: {}]  }
   0x1   :  { %v201_v0 = vld [vmem:[%s10004_s1 + $0xf8] sm:$0xff]  ;;  %v200_v4 = vld [vmem:[%s10004_s1 + $0xf0] sm:$0xff]  ;;  %v199_v8 = vld [vmem:[%s10004_s1 + $0xe8] sm:$0xff] }
   0x2   :  { %v233_v1 = vld [vmem:[%s10004_s1 + $0x1f8] sm:$0xff]  ;;  %4260 = vmatprep.subr.mxu0 %v201_v0  ;;  %v232_v5 = vld [vmem:[%s10004_s1 + $0x1f0] sm:$0xff]  ;;  %v231_v9 = vld [vmem:[%s10004_s1 + $0x1e8] sm:$0xff] }
   0x3   :  { %v185_v2 = vld [vmem:[%s10004_s1 + $0x78] sm:$0xff]  ;;  %4298 = vmatprep.subr.mxu1 %v233_v1  ;;  %v184_v6 = vld [vmem:[%s10004_s1 + $0x70] sm:$0xff]  ;;  %v183_v10 = vld [vmem:[%s10004_s1 + $0x68] sm:$0xff] }
   0x4   :  { %v217_v3 = vld [vmem:[%s10004_s1 + $0x178] sm:$0xff]  ;;  %4261 = vmatpush3.msra.mxu0 %v185_v2  ;;  %v216_v7 = vld [vmem:[%s10004_s1 + $0x170] sm:$0xff]  ;;  %v215_v11 = vld [vmem:[%s10004_s1 + $0x168] sm:$0xff] }
   0x5   :  { %4299 = vmatpush3.msra.mxu1 %v217_v3  ;;  %4262 = vmatprep.subr.mxu0 %v200_v4  ;;  %v198_v12 = vld [vmem:[%s10004_s1 + $0xe0] sm:$0xff]  ;;  %v197_v16 = vld [vmem:[%s10004_s1 + $0xd8] sm:$0xff]  ;;  %v196_v20 = vld [vmem:[%s10004_s1 + $0xd0] sm:$0xff] }
   0x6   :  { %4300 = vmatprep.subr.mxu1 %v232_v5  ;;  %4263 = vmatpush3.msra.mxu0 %v184_v6  ;;  %v230_v13 = vld [vmem:[%s10004_s1 + $0x1e0] sm:$0xff]  ;;  %v229_v17 = vld [vmem:[%s10004_s1 + $0x1d8] sm:$0xff]  ;;  %v228_v21 = vld [vmem:[%s10004_s1 + $0x1d0] sm:$0xff] }
   0x7   :  { %4301 = vmatpush3.msra.mxu1 %v216_v7  ;;  %4264 = vmatprep.subr.mxu0 %v199_v8  ;;  %v182_v14 = vld [vmem:[%s10004_s1 + $0x60] sm:$0xff]  ;;  %v181_v18 = vld [vmem:[%s10004_s1 + $0x58] sm:$0xff]  ;;  %v180_v22 = vld [vmem:[%s10004_s1 + $0x50] sm:$0xff] }
   0x8   :  { %4302 = vmatprep.subr.mxu1 %v231_v9  ;;  %v214_v15 = vld [vmem:[%s10004_s1 + $0x160] sm:$0xff]  ;;  %4265 = vmatpush3.msra.mxu0 %v183_v10  ;;  %v213_v19 = vld [vmem:[%s10004_s1 + $0x158] sm:$0xff]  ;;  %v212_v23 = vld [vmem:[%s10004_s1 + $0x150] sm:$0xff] }
   0x9   :  { %4303 = vmatpush3.msra.mxu1 %v215_v11  ;;  %4266 = vmatprep.subr.mxu0 %v198_v12  ;;  %v195_v24 = vld [vmem:[%s10004_s1 + $0xc8] sm:$0xff]  ;;  %v194_v28 = vld [vmem:[%s10004_s1 + $0xc0] sm:$0xff]  ;;  %v193_v32 = vld [vmem:[%s10004_s1 + $0xb8] sm:$0xff] }
   0xa   :  { %4304 = vmatprep.subr.mxu1 %v230_v13  ;;  %4267 = vmatpush3.msra.mxu0 %v182_v14  ;;  %v227_v25 = vld [vmem:[%s10004_s1 + $0x1c8] sm:$0xff]  ;;  %v226_v29 = vld [vmem:[%s10004_s1 + $0x1c0] sm:$0xff]  ;;  %v225_v33 = vld [vmem:[%s10004_s1 + $0x1b8] sm:$0xff] }
   0xb   :  { %4305 = vmatpush3.msra.mxu1 %v214_v15  ;;  %4268 = vmatprep.subr.mxu0 %v197_v16  ;;  %v179_v26 = vld [vmem:[%s10004_s1 + $0x48] sm:$0xff]  ;;  %v178_v30 = vld [vmem:[%s10004_s1 + $0x40] sm:$0xff]  ;;  %v177_v34 = vld [vmem:[%s10004_s1 + $0x38] sm:$0xff] }
   0xc   :  { %4306 = vmatprep.subr.mxu1 %v229_v17  ;;  %4269 = vmatpush3.msra.mxu0 %v181_v18  ;;  %v211_v27 = vld [vmem:[%s10004_s1 + $0x148] sm:$0xff]  ;;  %v210_v31 = vld [vmem:[%s10004_s1 + $0x140] sm:$0xff]  ;;  %v209_v35 = vld [vmem:[%s10004_s1 + $0x138] sm:$0xff] }
   0xd   :  { %4307 = vmatpush3.msra.mxu1 %v213_v19  ;;  %4270 = vmatprep.subr.mxu0 %v196_v20  ;;  %v192_v36 = vld [vmem:[%s10004_s1 + $0xb0] sm:$0xff]  ;;  %v191_v40 = vld [vmem:[%s10004_s1 + $0xa8] sm:$0xff]  ;;  %v190_v44 = vld [vmem:[%s10004_s1 + $0xa0] sm:$0xff] }
   0xe   :  { %4308 = vmatprep.subr.mxu1 %v228_v21  ;;  %4271 = vmatpush3.msra.mxu0 %v180_v22  ;;  %v224_v37 = vld [vmem:[%s10004_s1 + $0x1b0] sm:$0xff]  ;;  %v223_v41 = vld [vmem:[%s10004_s1 + $0x1a8] sm:$0xff]  ;;  %v222_v45 = vld [vmem:[%s10004_s1 + $0x1a0] sm:$0xff] }
   0xf   :  { %4309 = vmatpush3.msra.mxu1 %v212_v23  ;;  %4272 = vmatprep.subr.mxu0 %v195_v24  ;;  %v176_v38 = vld [vmem:[%s10004_s1 + $0x30] sm:$0xff]  ;;  %v175_v42 = vld [vmem:[%s10004_s1 + $0x28] sm:$0xff]  ;;  %v174_v46 = vld [vmem:[%s10004_s1 + $0x20] sm:$0xff] }
  0x10   :  { %4310 = vmatprep.subr.mxu1 %v227_v25  ;;  %4273 = vmatpush3.msra.mxu0 %v179_v26  ;;  %v208_v39 = vld [vmem:[%s10004_s1 + $0x130] sm:$0xff]  ;;  %v207_v43 = vld [vmem:[%s10004_s1 + $0x128] sm:$0xff]  ;;  %v206_v47 = vld [vmem:[%s10004_s1 + $0x120] sm:$0xff] }
  0x11   :  { %4311 = vmatpush3.msra.mxu1 %v211_v27  ;;  %4274 = vmatprep.subr.mxu0 %v194_v28  ;;  %v189_v48 = vld [vmem:[%s10004_s1 + $0x98] sm:$0xff]  ;;  %v188_v52 = vld [vmem:[%s10004_s1 + $0x90] sm:$0xff]  ;;  %v187_v56 = vld [vmem:[%s10004_s1 + $0x88] sm:$0xff] }
  0x12   :  { %4312 = vmatprep.subr.mxu1 %v226_v29  ;;  %4275 = vmatpush3.msra.mxu0 %v178_v30  ;;  %v221_v49 = vld [vmem:[%s10004_s1 + $0x198] sm:$0xff]  ;;  %v220_v53 = vld [vmem:[%s10004_s1 + $0x190] sm:$0xff]  ;;  %v219_v57 = vld [vmem:[%s10004_s1 + $0x188] sm:$0xff] }
  0x13   :  { %4313 = vmatpush3.msra.mxu1 %v210_v31  ;;  %4276 = vmatprep.subr.mxu0 %v193_v32  ;;  %v173_v50 = vld [vmem:[%s10004_s1 + $0x18] sm:$0xff]  ;;  %v172_v54 = vld [vmem:[%s10004_s1 + $0x10] sm:$0xff]  ;;  %v171_v58 = vld [vmem:[%s10004_s1 + $0x8] sm:$0xff] }
  0x14   :  { %4314 = vmatprep.subr.mxu1 %v225_v33  ;;  %4277 = vmatpush3.msra.mxu0 %v177_v34  ;;  %v205_v51 = vld [vmem:[%s10004_s1 + $0x118] sm:$0xff]  ;;  %v204_v55 = vld [vmem:[%s10004_s1 + $0x110] sm:$0xff]  ;;  %v203_v59 = vld [vmem:[%s10004_s1 + $0x108] sm:$0xff] }
  0x15   :  { %4315 = vmatpush3.msra.mxu1 %v209_v35  ;;  %4278 = vmatprep.subr.mxu0 %v192_v36  ;;  %v186_v60 = vld [vmem:[%s10004_s1 + $0x80] sm:$0xff]  ;;  %v27_v63 = vld [vmem:[%s10005_s0 + $0x8] sm:$0xff]  ;;  %v29_v2 = vld [vmem:[%s10005_s0 + $0x18] sm:$0xff] }
  0x16   :  { %4316 = vmatprep.subr.mxu1 %v224_v37  ;;  %4279 = vmatpush3.msra.mxu0 %v176_v38  ;;  %v218_v61 = vld [vmem:[%s10004_s1 + $0x180] sm:$0xff]  ;;  %v265_v3 = vld [vmem:[%s10004_s1 + $0x2f8] sm:$0xff]  ;;  %v28_v5 = vld [vmem:[%s10005_s0 + $0x10] sm:$0xff] }
  0x17   :  { %4317 = vmatpush3.msra.mxu1 %v208_v39  ;;  %4280 = vmatprep.subr.mxu0 %v191_v40  ;;  %v170_v62 = vld [vmem:[%s10004_s1] sm:$0xff]  ;;  %v297_v4 = vld [vmem:[%s10004_s1 + $0x3f8] sm:$0xff]  ;;  %v264_v8 = vld [vmem:[%s10004_s1 + $0x2f0] sm:$0xff] }
  0x18   :  { %4318 = vmatprep.subr.mxu1 %v223_v41  ;;  %4281 = vmatpush3.msra.mxu0 %v175_v42  ;;  %v202_v0 = vld [vmem:[%s10004_s1 + $0x100] sm:$0xff]  ;;  %v249_v6 = vld [vmem:[%s10004_s1 + $0x278] sm:$0xff]  ;;  %v296_v9 = vld [vmem:[%s10004_s1 + $0x3f0] sm:$0xff] }
  0x19   :  { %4319 = vmatpush3.msra.mxu1 %v207_v43  ;;  %4282 = vmatprep.subr.mxu0 %v190_v44  ;;  %v26_v1 = vld [vmem:[%s10005_s0] sm:$0xff]  ;;  %v281_v7 = vld [vmem:[%s10004_s1 + $0x378] sm:$0xff]  ;;  %v248_v10 = vld [vmem:[%s10004_s1 + $0x270] sm:$0xff] }
  0x1a   :  { %4320 = vmatprep.subr.mxu1 %v222_v45  ;;  %4283 = vmatpush3.msra.mxu0 %v174_v46  ;;  %v280_v11 = vld [vmem:[%s10004_s1 + $0x370] sm:$0xff]  ;;  %v263_v12 = vld [vmem:[%s10004_s1 + $0x2e8] sm:$0xff]  ;;  %v262_v16 = vld [vmem:[%s10004_s1 + $0x2e0] sm:$0xff] }
  0x1b   :  { %4321 = vmatpush3.msra.mxu1 %v206_v47  ;;  %4284 = vmatprep.subr.mxu0 %v189_v48  ;;  %v295_v13 = vld [vmem:[%s10004_s1 + $0x3e8] sm:$0xff]  ;;  %v294_v17 = vld [vmem:[%s10004_s1 + $0x3e0] sm:$0xff]  ;;  %v261_v20 = vld [vmem:[%s10004_s1 + $0x2d8] sm:$0xff] }
  0x1c   :  { %4322 = vmatprep.subr.mxu1 %v221_v49  ;;  %4285 = vmatpush3.msra.mxu0 %v173_v50  ;;  %v247_v14 = vld [vmem:[%s10004_s1 + $0x268] sm:$0xff]  ;;  %v246_v18 = vld [vmem:[%s10004_s1 + $0x260] sm:$0xff]  ;;  %v293_v21 = vld [vmem:[%s10004_s1 + $0x3d8] sm:$0xff] }
  0x1d   :  { %4323 = vmatpush3.msra.mxu1 %v205_v51  ;;  %4286 = vmatprep.subr.mxu0 %v188_v52  ;;  %v279_v15 = vld [vmem:[%s10004_s1 + $0x368] sm:$0xff]  ;;  %v278_v19 = vld [vmem:[%s10004_s1 + $0x360] sm:$0xff]  ;;  %v245_v22 = vld [vmem:[%s10004_s1 + $0x258] sm:$0xff] }
  0x1e   :  { %4324 = vmatprep.subr.mxu1 %v220_v53  ;;  %4287 = vmatpush3.msra.mxu0 %v172_v54  ;;  %v277_v23 = vld [vmem:[%s10004_s1 + $0x358] sm:$0xff]  ;;  %v260_v24 = vld [vmem:[%s10004_s1 + $0x2d0] sm:$0xff]  ;;  %v259_v28 = vld [vmem:[%s10004_s1 + $0x2c8] sm:$0xff] }
  0x1f   :  { %4325 = vmatpush3.msra.mxu1 %v204_v55  ;;  %4288 = vmatprep.subr.mxu0 %v187_v56  ;;  %v292_v25 = vld [vmem:[%s10004_s1 + $0x3d0] sm:$0xff]  ;;  %v291_v29 = vld [vmem:[%s10004_s1 + $0x3c8] sm:$0xff]  ;;  %v258_v32 = vld [vmem:[%s10004_s1 + $0x2c0] sm:$0xff] }
  0x20   :  { %4326 = vmatprep.subr.mxu1 %v219_v57  ;;  %4289 = vmatpush3.msra.mxu0 %v171_v58  ;;  %v244_v26 = vld [vmem:[%s10004_s1 + $0x250] sm:$0xff]  ;;  %v243_v30 = vld [vmem:[%s10004_s1 + $0x248] sm:$0xff]  ;;  %v290_v33 = vld [vmem:[%s10004_s1 + $0x3c0] sm:$0xff] }
  0x21   :  { %4327 = vmatpush3.msra.mxu1 %v203_v59  ;;  %4290 = vmatprep.subr.mxu0 %v186_v60  ;;  %v276_v27 = vld [vmem:[%s10004_s1 + $0x350] sm:$0xff]  ;;  %v275_v31 = vld [vmem:[%s10004_s1 + $0x348] sm:$0xff]  ;;  %v242_v34 = vld [vmem:[%s10004_s1 + $0x240] sm:$0xff] }
  0x22   :  { %4328 = vmatprep.subr.mxu1 %v218_v61  ;;  %4291 = vmatpush3.msra.mxu0 %v170_v62  ;;  %v274_v35 = vld [vmem:[%s10004_s1 + $0x340] sm:$0xff]  ;;  %v257_v36 = vld [vmem:[%s10004_s1 + $0x2b8] sm:$0xff]  ;;  %v256_v40 = vld [vmem:[%s10004_s1 + $0x2b0] sm:$0xff] }
  0x23   :  { %1393 = vmatprep.mubr.f32.mxu0 %v27_v63  ;;  %4329 = vmatpush3.msra.mxu1 %v202_v0  ;;  %v289_v37 = vld [vmem:[%s10004_s1 + $0x3b8] sm:$0xff]  ;;  %v288_v41 = vld [vmem:[%s10004_s1 + $0x3b0] sm:$0xff]  ;;  %v255_v44 = vld [vmem:[%s10004_s1 + $0x2a8] sm:$0xff] }
  0x24   :  { %1394 = vmatmul.mubr.f32.vlgmr.msra.gmra.mxu0 %v26_v1  ;;  %1468 = vmatprep.mubr.f32.mxu1 %v29_v2  ;;  %v241_v38 = vld [vmem:[%s10004_s1 + $0x238] sm:$0xff]  ;;  %v240_v42 = vld [vmem:[%s10004_s1 + $0x230] sm:$0xff]  ;;  %v287_v45 = vld [vmem:[%s10004_s1 + $0x3a8] sm:$0xff] }
  0x25   :  { %4336 = vmatprep.subr.mxu0 %v265_v3  ;;  %4374 = vmatprep.subr.mxu1 %v297_v4  ;;  %v273_v39 = vld [vmem:[%s10004_s1 + $0x338] sm:$0xff]  ;;  %v272_v43 = vld [vmem:[%s10004_s1 + $0x330] sm:$0xff]  ;;  %v239_v46 = vld [vmem:[%s10004_s1 + $0x228] sm:$0xff] }
  0x26   :  { %1469 = vmatmul.mubr.f32.vlgmr.msra.gmra.mxu1 %v28_v5  ;;  %4337 = vmatpush3.msra.mxu0 %v249_v6  ;;  %v271_v47 = vld [vmem:[%s10004_s1 + $0x328] sm:$0xff]  ;;  %v254_v48 = vld [vmem:[%s10004_s1 + $0x2a0] sm:$0xff]  ;;  %v253_v52 = vld [vmem:[%s10004_s1 + $0x298] sm:$0xff] }
  0x27   :  { %4375 = vmatpush3.msra.mxu1 %v281_v7  ;;  %4338 = vmatprep.subr.mxu0 %v264_v8  ;;  %v286_v49 = vld [vmem:[%s10004_s1 + $0x3a0] sm:$0xff]  ;;  %v285_v53 = vld [vmem:[%s10004_s1 + $0x398] sm:$0xff]  ;;  %v99_v56 = vld [vmem:[%s10005_s0 + $0x248] sm:$0xff] }
  0x28   :  { %4376 = vmatprep.subr.mxu1 %v296_v9  ;;  %4339 = vmatpush3.msra.mxu0 %v248_v10  ;;  %v238_v50 = vld [vmem:[%s10004_s1 + $0x220] sm:$0xff]  ;;  %v237_v54 = vld [vmem:[%s10004_s1 + $0x218] sm:$0xff]  ;;  %v252_v57 = vld [vmem:[%s10004_s1 + $0x290] sm:$0xff] }
  0x29   :  { %4377 = vmatpush3.msra.mxu1 %v280_v11  ;;  %4340 = vmatprep.subr.mxu0 %v263_v12  ;;  %v270_v51 = vld [vmem:[%s10004_s1 + $0x320] sm:$0xff]  ;;  %v269_v55 = vld [vmem:[%s10004_s1 + $0x318] sm:$0xff]  ;;  %v284_v58 = vld [vmem:[%s10004_s1 + $0x390] sm:$0xff] }
  0x2a   :  { %4378 = vmatprep.subr.mxu1 %v295_v13  ;;  %4341 = vmatpush3.msra.mxu0 %v247_v14  ;;  %v98_v59 = vld [vmem:[%s10005_s0 + $0x240] sm:$0xff]  ;;  %v236_v60 = vld [vmem:[%s10004_s1 + $0x210] sm:$0xff]  ;;  %v101_v62 = vld [vmem:[%s10005_s0 + $0x258] sm:$0xff] }
  0x2b   :  { %4379 = vmatpush3.msra.mxu1 %v279_v15  ;;  %4342 = vmatprep.subr.mxu0 %v262_v16  ;;  %v268_v61 = vld [vmem:[%s10004_s1 + $0x310] sm:$0xff]  ;;  %v251_v63 = vld [vmem:[%s10004_s1 + $0x288] sm:$0xff]  ;;  %v250_v4 = vld [vmem:[%s10004_s1 + $0x280] sm:$0xff] }
  0x2c   :  { %4380 = vmatprep.subr.mxu1 %v294_v17  ;;  %4343 = vmatpush3.msra.mxu0 %v246_v18  ;;  %v283_v0 = vld [vmem:[%s10004_s1 + $0x388] sm:$0xff]  ;;  %v100_v1 = vld [vmem:[%s10005_s0 + $0x250] sm:$0xff]  ;;  %v282_v5 = vld [vmem:[%s10004_s1 + $0x380] sm:$0xff] }
  0x2d   :  { %4381 = vmatpush3.msra.mxu1 %v278_v19  ;;  %4344 = vmatprep.subr.mxu0 %v261_v20  ;;  %v235_v2 = vld [vmem:[%s10004_s1 + $0x208] sm:$0xff]  ;;  %v234_v6 = vld [vmem:[%s10004_s1 + $0x200] sm:$0xff]  ;;  %v33_v10 = vld [vmem:[%s10005_s0 + $0x38] sm:$0xff] }
  0x2e   :  { %4382 = vmatprep.subr.mxu1 %v293_v21  ;;  %4345 = vmatpush3.msra.mxu0 %v245_v22  ;;  %v267_v3 = vld [vmem:[%s10004_s1 + $0x308] sm:$0xff]  ;;  %v266_v8 = vld [vmem:[%s10004_s1 + $0x300] sm:$0xff]  ;;  %v329_v11 = vld [vmem:[%s10004_s1 + $0x4f8] sm:$0xff] }
  0x2f   :  { %4383 = vmatpush3.msra.mxu1 %v277_v23  ;;  %4346 = vmatprep.subr.mxu0 %v260_v24  ;;  %v31_v7 = vld [vmem:[%s10005_s0 + $0x28] sm:$0xff]  ;;  %v30_v9 = vld [vmem:[%s10005_s0 + $0x20] sm:$0xff]  ;;  %v361_v12 = vld [vmem:[%s10004_s1 + $0x5f8] sm:$0xff] }
  0x30   :  { %4384 = vmatprep.subr.mxu1 %v292_v25  ;;  %4347 = vmatpush3.msra.mxu0 %v244_v26  ;;  %v32_v13 = vld [vmem:[%s10005_s0 + $0x30] sm:$0xff]  ;;  %v313_v14 = vld [vmem:[%s10004_s1 + $0x478] sm:$0xff]  ;;  %v103_v18 = vld [vmem:[%s10005_s0 + $0x268] sm:$0xff] }
  0x31   :  { %4385 = vmatpush3.msra.mxu1 %v276_v27  ;;  %4348 = vmatprep.subr.mxu0 %v259_v28  ;;  %v345_v15 = vld [vmem:[%s10004_s1 + $0x578] sm:$0xff]  ;;  %v328_v16 = vld [vmem:[%s10004_s1 + $0x4f0] sm:$0xff]  ;;  %v102_v21 = vld [vmem:[%s10005_s0 + $0x260] sm:$0xff] }
  0x32   :  { %4386 = vmatprep.subr.mxu1 %v291_v29  ;;  %4349 = vmatpush3.msra.mxu0 %v243_v30  ;;  %v360_v17 = vld [vmem:[%s10004_s1 + $0x5f0] sm:$0xff]  ;;  %v327_v22 = vld [vmem:[%s10004_s1 + $0x4e8] sm:$0xff]  ;;  %v105_v24 = vld [vmem:[%s10005_s0 + $0x278] sm:$0xff] }
  0x33   :  { %4387 = vmatpush3.msra.mxu1 %v275_v31  ;;  %4350 = vmatprep.subr.mxu0 %v258_v32  ;;  %v312_v19 = vld [vmem:[%s10004_s1 + $0x470] sm:$0xff]  ;;  %v359_v23 = vld [vmem:[%s10004_s1 + $0x5e8] sm:$0xff]  ;;  %v326_v27 = vld [vmem:[%s10004_s1 + $0x4e0] sm:$0xff] }
  0x34   :  { %4388 = vmatprep.subr.mxu1 %v290_v33  ;;  %4351 = vmatpush3.msra.mxu0 %v242_v34  ;;  %v344_v20 = vld [vmem:[%s10004_s1 + $0x570] sm:$0xff]  ;;  %v311_v25 = vld [vmem:[%s10004_s1 + $0x468] sm:$0xff]  ;;  %v358_v29 = vld [vmem:[%s10004_s1 + $0x5e0] sm:$0xff] }
  0x35   :  { %4389 = vmatpush3.msra.mxu1 %v274_v35  ;;  %4352 = vmatprep.subr.mxu0 %v257_v36  ;;  %v343_v26 = vld [vmem:[%s10004_s1 + $0x568] sm:$0xff]  ;;  %v104_v28 = vld [vmem:[%s10005_s0 + $0x270] sm:$0xff]  ;;  %v310_v30 = vld [vmem:[%s10004_s1 + $0x460] sm:$0xff] }
  0x36   :  { %4390 = vmatprep.subr.mxu1 %v289_v37  ;;  %4353 = vmatpush3.msra.mxu0 %v241_v38  ;;  %v342_v31 = vld [vmem:[%s10004_s1 + $0x560] sm:$0xff]  ;;  %v325_v32 = vld [vmem:[%s10004_s1 + $0x4d8] sm:$0xff]  ;;  %v324_v36 = vld [vmem:[%s10004_s1 + $0x4d0] sm:$0xff] }
  0x37   :  { %4391 = vmatpush3.msra.mxu1 %v273_v39  ;;  %4354 = vmatprep.subr.mxu0 %v256_v40  ;;  %v357_v33 = vld [vmem:[%s10004_s1 + $0x5d8] sm:$0xff]  ;;  %v356_v37 = vld [vmem:[%s10004_s1 + $0x5d0] sm:$0xff]  ;;  %v323_v40 = vld [vmem:[%s10004_s1 + $0x4c8] sm:$0xff] }
  0x38   :  { %4392 = vmatprep.subr.mxu1 %v288_v41  ;;  %4355 = vmatpush3.msra.mxu0 %v240_v42  ;;  %v309_v34 = vld [vmem:[%s10004_s1 + $0x458] sm:$0xff]  ;;  %v308_v38 = vld [vmem:[%s10004_s1 + $0x450] sm:$0xff]  ;;  %v355_v41 = vld [vmem:[%s10004_s1 + $0x5c8] sm:$0xff] }
  0x39   :  { %4393 = vmatpush3.msra.mxu1 %v272_v43  ;;  %4356 = vmatprep.subr.mxu0 %v255_v44  ;;  %v341_v35 = vld [vmem:[%s10004_s1 + $0x558] sm:$0xff]  ;;  %v340_v39 = vld [vmem:[%s10004_s1 + $0x550] sm:$0xff]  ;;  %v307_v42 = vld [vmem:[%s10004_s1 + $0x448] sm:$0xff] }
  0x3a   :  { %4394 = vmatprep.subr.mxu1 %v287_v45  ;;  %4357 = vmatpush3.msra.mxu0 %v239_v46  ;;  %v339_v43 = vld [vmem:[%s10004_s1 + $0x548] sm:$0xff]  ;;  %v322_v44 = vld [vmem:[%s10004_s1 + $0x4c0] sm:$0xff] }
  0x3b   :  { %4395 = vmatpush3.msra.mxu1 %v271_v47  ;;  %4358 = vmatprep.subr.mxu0 %v254_v48  ;;  %v354_v45 = vld [vmem:[%s10004_s1 + $0x5c0] sm:$0xff]  ;;  %v321_v48 = vld [vmem:[%s10004_s1 + $0x4b8] sm:$0xff] }
  0x3c   :  { %4396 = vmatprep.subr.mxu1 %v286_v49  ;;  %4359 = vmatpush3.msra.mxu0 %v238_v50  ;;  %v306_v46 = vld [vmem:[%s10004_s1 + $0x440] sm:$0xff]  ;;  %v353_v49 = vld [vmem:[%s10004_s1 + $0x5b8] sm:$0xff] }
  0x3d   :  { %4397 = vmatpush3.msra.mxu1 %v270_v51  ;;  %4360 = vmatprep.subr.mxu0 %v253_v52  ;;  %v338_v47 = vld [vmem:[%s10004_s1 + $0x540] sm:$0xff]  ;;  %v305_v50 = vld [vmem:[%s10004_s1 + $0x438] sm:$0xff]  ;;  %v320_v52 = vld [vmem:[%s10004_s1 + $0x4b0] sm:$0xff] }
  0x3e   :  { %4398 = vmatprep.subr.mxu1 %v285_v53  ;;  %4361 = vmatpush3.msra.mxu0 %v237_v54  ;;  %v337_v51 = vld [vmem:[%s10004_s1 + $0x538] sm:$0xff]  ;;  %v352_v53 = vld [vmem:[%s10004_s1 + $0x5b0] sm:$0xff] }
  0x3f   :  { %4399 = vmatpush3.msra.mxu1 %v269_v55  ;;  %1398 = vmatprep.mubr.f32.mxu0 %v99_v56  ;;  %v304_v54 = vld [vmem:[%s10004_s1 + $0x430] sm:$0xff]  ;;  %v319_v56 = vld [vmem:[%s10004_s1 + $0x4a8] sm:$0xff] }
  0x40   :  { %4362 = vmatprep.subr.mxu0 %v252_v57  ;;  %4400 = vmatprep.subr.mxu1 %v284_v58  ;;  %v336_v55 = vld [vmem:[%s10004_s1 + $0x530] sm:$0xff]  ;;  %v351_v57 = vld [vmem:[%s10004_s1 + $0x5a8] sm:$0xff] }
  0x41   :  { %1399 = vmatmul.mubr.f32.gmra.mxu0 %v98_v59  ;;  %4401 = vmatpush3.msra.mxu1 %v268_v61  ;;  %v303_v58 = vld [vmem:[%s10004_s1 + $0x428] sm:$0xff]  ;;  %v350_v61 = vld [vmem:[%s10004_s1 + $0x5a0] sm:$0xff] }
  0x42   :  { %4363 = vmatpush3.msra.mxu0 %v236_v60  ;;  %1473 = vmatprep.mubr.f32.mxu1 %v101_v62  ;;  %v335_v59 = vld [vmem:[%s10004_s1 + $0x528] sm:$0xff]  ;;  %v318_v60 = vld [vmem:[%s10004_s1 + $0x4a0] sm:$0xff] }
  0x43   :  { %4364 = vmatprep.subr.mxu0 %v251_v63  ;;  %4402 = vmatprep.subr.mxu1 %v283_v0  ;;  %v302_v62 = vld [vmem:[%s10004_s1 + $0x420] sm:$0xff]  ;;  %v317_v0 = vld [vmem:[%s10004_s1 + $0x498] sm:$0xff] }
  0x44   :  { %1474 = vmatmul.mubr.f32.gmra.mxu1 %v100_v1  ;;  %4365 = vmatpush3.msra.mxu0 %v235_v2  ;;  %v334_v63 = vld [vmem:[%s10004_s1 + $0x520] sm:$0xff]  ;;  %v349_v1 = vld [vmem:[%s10004_s1 + $0x598] sm:$0xff] }
  0x45   :  { %4403 = vmatpush3.msra.mxu1 %v267_v3  ;;  %4366 = vmatprep.subr.mxu0 %v250_v4  ;;  %v301_v2 = vld [vmem:[%s10004_s1 + $0x418] sm:$0xff]  ;;  %v316_v4 = vld [vmem:[%s10004_s1 + $0x490] sm:$0xff] }
  0x46   :  { %4404 = vmatprep.subr.mxu1 %v282_v5  ;;  %4367 = vmatpush3.msra.mxu0 %v234_v6  ;;  %v333_v3 = vld [vmem:[%s10004_s1 + $0x518] sm:$0xff]  ;;  %v348_v5 = vld [vmem:[%s10004_s1 + $0x590] sm:$0xff] }
  0x47   :  { %1543 = vmatprep.mubr.f32.mxu0 %v31_v7  ;;  %4405 = vmatpush3.msra.mxu1 %v266_v8  ;;  %v300_v6 = vld [vmem:[%s10004_s1 + $0x410] sm:$0xff]  ;;  %v315_v8 = vld [vmem:[%s10004_s1 + $0x488] sm:$0xff] }
  0x48   :  { %1544 = vmatmul.mubr.f32.vlgmr.msra.gmra.mxu0 %v30_v9  ;;  %1618 = vmatprep.mubr.f32.mxu1 %v33_v10  ;;  %v332_v7 = vld [vmem:[%s10004_s1 + $0x510] sm:$0xff]  ;;  %v347_v9 = vld [vmem:[%s10004_s1 + $0x588] sm:$0xff] }
  0x49   :  { %4412 = vmatprep.subr.mxu0 %v329_v11  ;;  %4450 = vmatprep.subr.mxu1 %v361_v12  ;;  %v299_v10 = vld [vmem:[%s10004_s1 + $0x408] sm:$0xff]  ;;  %v314_v12 = vld [vmem:[%s10004_s1 + $0x480] sm:$0xff] }
  0x4a   :  { %1619 = vmatmul.mubr.f32.vlgmr.msra.gmra.mxu1 %v32_v13  ;;  %4413 = vmatpush3.msra.mxu0 %v313_v14  ;;  %v331_v11 = vld [vmem:[%s10004_s1 + $0x508] sm:$0xff]  ;;  %v346_v13 = vld [vmem:[%s10004_s1 + $0x580] sm:$0xff] }
  0x4b   :  { %4451 = vmatpush3.msra.mxu1 %v345_v15  ;;  %4414 = vmatprep.subr.mxu0 %v328_v16  ;;  %v298_v14 = vld [vmem:[%s10004_s1 + $0x400] sm:$0xff]  ;;  %v35_v15 = vld [vmem:[%s10005_s0 + $0x48] sm:$0xff] }
  0x4c   :  { %4452 = vmatprep.subr.mxu1 %v360_v17  ;;  %1548 = vmatprep.mubr.f32.mxu0 %v103_v18  ;;  %v330_v16 = vld [vmem:[%s10004_s1 + $0x500] sm:$0xff]  ;;  %v37_v18 = vld [vmem:[%s10005_s0 + $0x58] sm:$0xff] }
  0x4d   :  { %4415 = vmatpush3.msra.mxu0 %v312_v19  ;;  %4453 = vmatpush3.msra.mxu1 %v344_v20  ;;  %v34_v17 = vld [vmem:[%s10005_s0 + $0x40] sm:$0xff]  ;;  %v393_v19 = vld [vmem:[%s10004_s1 + $0x6f8] sm:$0xff] }
  0x4e   :  { %1549 = vmatmul.mubr.f32.gmra.mxu0 %v102_v21  ;;  %4416 = vmatprep.subr.mxu0 %v327_v22  ;;  %v425_v20 = vld [vmem:[%s10004_s1 + $0x7f8] sm:$0xff]  ;;  %v36_v21 = vld [vmem:[%s10005_s0 + $0x50] sm:$0xff] }
  0x4f   :  { %4454 = vmatprep.subr.mxu1 %v359_v23  ;;  %1623 = vmatprep.mubr.f32.mxu1 %v105_v24  ;;  %v377_v22 = vld [vmem:[%s10004_s1 + $0x678] sm:$0xff]  ;;  %v392_v24 = vld [vmem:[%s10004_s1 + $0x6f0] sm:$0xff] }
  0x50   :  { %4417 = vmatpush3.msra.mxu0 %v311_v25  ;;  %4455 = vmatpush3.msra.mxu1 %v343_v26  ;;  %v409_v23 = vld [vmem:[%s10004_s1 + $0x778] sm:$0xff]  ;;  %v424_v25 = vld [vmem:[%s10004_s1 + $0x7f0] sm:$0xff]  ;;  %v107_v26 = vld [vmem:[%s10005_s0 + $0x288] sm:$0xff] }
  0x51   :  { %4418 = vmatprep.subr.mxu0 %v326_v27  ;;  %1624 = vmatmul.mubr.f32.gmra.mxu1 %v104_v28  ;;  %v376_v27 = vld [vmem:[%s10004_s1 + $0x670] sm:$0xff] }
  0x52   :  { %4456 = vmatprep.subr.mxu1 %v358_v29  ;;  %4419 = vmatpush3.msra.mxu0 %v310_v30  ;;  %v408_v28 = vld [vmem:[%s10004_s1 + $0x770] sm:$0xff]  ;;  %v106_v29 = vld [vmem:[%s10005_s0 + $0x280] sm:$0xff]  ;;  %v391_v30 = vld [vmem:[%s10004_s1 + $0x6e8] sm:$0xff] }
  0x53   :  { %4457 = vmatpush3.msra.mxu1 %v342_v31  ;;  %4420 = vmatprep.subr.mxu0 %v325_v32  ;;  %v423_v31 = vld [vmem:[%s10004_s1 + $0x7e8] sm:$0xff]  ;;  %v109_v32 = vld [vmem:[%s10005_s0 + $0x298] sm:$0xff] }
  0x54   :  { %4458 = vmatprep.subr.mxu1 %v357_v33  ;;  %4421 = vmatpush3.msra.mxu0 %v309_v34  ;;  %v375_v33 = vld [vmem:[%s10004_s1 + $0x668] sm:$0xff] }
  0x55   :  { %4459 = vmatpush3.msra.mxu1 %v341_v35  ;;  %4422 = vmatprep.subr.mxu0 %v324_v36  ;;  %v407_v34 = vld [vmem:[%s10004_s1 + $0x768] sm:$0xff]  ;;  %v390_v35 = vld [vmem:[%s10004_s1 + $0x6e0] sm:$0xff]  ;;  %v108_v36 = vld [vmem:[%s10005_s0 + $0x290] sm:$0xff] }
  0x56   :  { %4460 = vmatprep.subr.mxu1 %v356_v37  ;;  %4423 = vmatpush3.msra.mxu0 %v308_v38  ;;  %v422_v37 = vld [vmem:[%s10004_s1 + $0x7e0] sm:$0xff] }
  0x57   :  { %4461 = vmatpush3.msra.mxu1 %v340_v39  ;;  %4424 = vmatprep.subr.mxu0 %v323_v40  ;;  %v374_v38 = vld [vmem:[%s10004_s1 + $0x660] sm:$0xff]  ;;  %v389_v40 = vld [vmem:[%s10004_s1 + $0x6d8] sm:$0xff] }
  0x58   :  { %4462 = vmatprep.subr.mxu1 %v355_v41  ;;  %4425 = vmatpush3.msra.mxu0 %v307_v42  ;;  %v406_v39 = vld [vmem:[%s10004_s1 + $0x760] sm:$0xff]  ;;  %v421_v41 = vld [vmem:[%s10004_s1 + $0x7d8] sm:$0xff] }
  0x59   :  { %4463 = vmatpush3.msra.mxu1 %v339_v43  ;;  %4426 = vmatprep.subr.mxu0 %v322_v44  ;;  %v373_v42 = vld [vmem:[%s10004_s1 + $0x658] sm:$0xff]  ;;  %v388_v44 = vld [vmem:[%s10004_s1 + $0x6d0] sm:$0xff] }
  0x5a   :  { %4464 = vmatprep.subr.mxu1 %v354_v45  ;;  %4427 = vmatpush3.msra.mxu0 %v306_v46  ;;  %v405_v43 = vld [vmem:[%s10004_s1 + $0x758] sm:$0xff]  ;;  %v420_v45 = vld [vmem:[%s10004_s1 + $0x7d0] sm:$0xff] }
  0x5b   :  { %4465 = vmatpush3.msra.mxu1 %v338_v47  ;;  %4428 = vmatprep.subr.mxu0 %v321_v48  ;;  %v372_v46 = vld [vmem:[%s10004_s1 + $0x650] sm:$0xff]  ;;  %v387_v48 = vld [vmem:[%s10004_s1 + $0x6c8] sm:$0xff] }
  0x5c   :  { %4466 = vmatprep.subr.mxu1 %v353_v49  ;;  %4429 = vmatpush3.msra.mxu0 %v305_v50  ;;  %v404_v47 = vld [vmem:[%s10004_s1 + $0x750] sm:$0xff]  ;;  %v419_v49 = vld [vmem:[%s10004_s1 + $0x7c8] sm:$0xff] }
  0x5d   :  { %4467 = vmatpush3.msra.mxu1 %v337_v51  ;;  %4430 = vmatprep.subr.mxu0 %v320_v52  ;;  %v371_v50 = vld [vmem:[%s10004_s1 + $0x648] sm:$0xff]  ;;  %v386_v52 = vld [vmem:[%s10004_s1 + $0x6c0] sm:$0xff] }
  0x5e   :  { %4468 = vmatprep.subr.mxu1 %v352_v53  ;;  %4431 = vmatpush3.msra.mxu0 %v304_v54  ;;  %v403_v51 = vld [vmem:[%s10004_s1 + $0x748] sm:$0xff]  ;;  %v418_v53 = vld [vmem:[%s10004_s1 + $0x7c0] sm:$0xff] }
  0x5f   :  { %4469 = vmatpush3.msra.mxu1 %v336_v55  ;;  %4432 = vmatprep.subr.mxu0 %v319_v56  ;;  %v370_v54 = vld [vmem:[%s10004_s1 + $0x640] sm:$0xff]  ;;  %v385_v56 = vld [vmem:[%s10004_s1 + $0x6b8] sm:$0xff] }
  0x60   :  { %4470 = vmatprep.subr.mxu1 %v351_v57  ;;  %4433 = vmatpush3.msra.mxu0 %v303_v58  ;;  %v402_v55 = vld [vmem:[%s10004_s1 + $0x740] sm:$0xff]  ;;  %v417_v57 = vld [vmem:[%s10004_s1 + $0x7b8] sm:$0xff] }
  0x61   :  { %4471 = vmatpush3.msra.mxu1 %v335_v59  ;;  %4434 = vmatprep.subr.mxu0 %v318_v60  ;;  %v369_v58 = vld [vmem:[%s10004_s1 + $0x638] sm:$0xff]  ;;  %v384_v60 = vld [vmem:[%s10004_s1 + $0x6b0] sm:$0xff] }
  0x62   :  { %4472 = vmatprep.subr.mxu1 %v350_v61  ;;  %4435 = vmatpush3.msra.mxu0 %v302_v62  ;;  %v401_v59 = vld [vmem:[%s10004_s1 + $0x738] sm:$0xff]  ;;  %v416_v61 = vld [vmem:[%s10004_s1 + $0x7b0] sm:$0xff] }
  0x63   :  { %4473 = vmatpush3.msra.mxu1 %v334_v63  ;;  %4436 = vmatprep.subr.mxu0 %v317_v0  ;;  %v368_v62 = vld [vmem:[%s10004_s1 + $0x630] sm:$0xff]  ;;  %v383_v0 = vld [vmem:[%s10004_s1 + $0x6a8] sm:$0xff] }
  0x64   :  { %4474 = vmatprep.subr.mxu1 %v349_v1  ;;  %4437 = vmatpush3.msra.mxu0 %v301_v2  ;;  %v400_v63 = vld [vmem:[%s10004_s1 + $0x730] sm:$0xff]  ;;  %v415_v1 = vld [vmem:[%s10004_s1 + $0x7a8] sm:$0xff] }
  0x65   :  { %4475 = vmatpush3.msra.mxu1 %v333_v3  ;;  %4438 = vmatprep.subr.mxu0 %v316_v4  ;;  %v367_v2 = vld [vmem:[%s10004_s1 + $0x628] sm:$0xff]  ;;  %v382_v4 = vld [vmem:[%s10004_s1 + $0x6a0] sm:$0xff] }
  0x66   :  { %4476 = vmatprep.subr.mxu1 %v348_v5  ;;  %4439 = vmatpush3.msra.mxu0 %v300_v6  ;;  %v399_v3 = vld [vmem:[%s10004_s1 + $0x728] sm:$0xff]  ;;  %v414_v5 = vld [vmem:[%s10004_s1 + $0x7a0] sm:$0xff] }
  0x67   :  { %4477 = vmatpush3.msra.mxu1 %v332_v7  ;;  %4440 = vmatprep.subr.mxu0 %v315_v8  ;;  %v366_v6 = vld [vmem:[%s10004_s1 + $0x620] sm:$0xff]  ;;  %v381_v8 = vld [vmem:[%s10004_s1 + $0x698] sm:$0xff] }
  0x68   :  { %4478 = vmatprep.subr.mxu1 %v347_v9  ;;  %4441 = vmatpush3.msra.mxu0 %v299_v10  ;;  %v398_v7 = vld [vmem:[%s10004_s1 + $0x720] sm:$0xff]  ;;  %v413_v9 = vld [vmem:[%s10004_s1 + $0x798] sm:$0xff] }
  0x69   :  { %4479 = vmatpush3.msra.mxu1 %v331_v11  ;;  %4442 = vmatprep.subr.mxu0 %v314_v12  ;;  %v365_v10 = vld [vmem:[%s10004_s1 + $0x618] sm:$0xff]  ;;  %v380_v12 = vld [vmem:[%s10004_s1 + $0x690] sm:$0xff] }
  0x6a   :  { %4480 = vmatprep.subr.mxu1 %v346_v13  ;;  %4443 = vmatpush3.msra.mxu0 %v298_v14  ;;  %v397_v11 = vld [vmem:[%s10004_s1 + $0x718] sm:$0xff]  ;;  %v412_v13 = vld [vmem:[%s10004_s1 + $0x790] sm:$0xff] }
  0x6b   :  { %1693 = vmatprep.mubr.f32.mxu0 %v35_v15  ;;  %4481 = vmatpush3.msra.mxu1 %v330_v16  ;;  %v364_v14 = vld [vmem:[%s10004_s1 + $0x610] sm:$0xff]  ;;  %v379_v16 = vld [vmem:[%s10004_s1 + $0x688] sm:$0xff] }
  0x6c   :  { %1694 = vmatmul.mubr.f32.vlgmr.msra.gmra.mxu0 %v34_v17  ;;  %1768 = vmatprep.mubr.f32.mxu1 %v37_v18  ;;  %v396_v15 = vld [vmem:[%s10004_s1 + $0x710] sm:$0xff]  ;;  %v411_v17 = vld [vmem:[%s10004_s1 + $0x788] sm:$0xff] }
  0x6d   :  { %4488 = vmatprep.subr.mxu0 %v393_v19  ;;  %4526 = vmatprep.subr.mxu1 %v425_v20  ;;  %v363_v18 = vld [vmem:[%s10004_s1 + $0x608] sm:$0xff]  ;;  %v378_v20 = vld [vmem:[%s10004_s1 + $0x680] sm:$0xff] }
  0x6e   :  { %1769 = vmatmul.mubr.f32.vlgmr.msra.gmra.mxu1 %v36_v21  ;;  %4489 = vmatpush3.msra.mxu0 %v377_v22  ;;  %v395_v19 = vld [vmem:[%s10004_s1 + $0x708] sm:$0xff]  ;;  %v410_v21 = vld [vmem:[%s10004_s1 + $0x780] sm:$0xff] }
  0x6f   :  { %4527 = vmatpush3.msra.mxu1 %v409_v23  ;;  %4490 = vmatprep.subr.mxu0 %v392_v24  ;;  %v362_v22 = vld [vmem:[%s10004_s1 + $0x600] sm:$0xff]  ;;  %v39_v23 = vld [vmem:[%s10005_s0 + $0x68] sm:$0xff] }
  0x70   :  { %4528 = vmatprep.subr.mxu1 %v424_v25  ;;  %1698 = vmatprep.mubr.f32.mxu0 %v107_v26  ;;  %v394_v24 = vld [vmem:[%s10004_s1 + $0x700] sm:$0xff]  ;;  %v41_v26 = vld [vmem:[%s10005_s0 + $0x78] sm:$0xff] }
  0x71   :  { %4491 = vmatpush3.msra.mxu0 %v376_v27  ;;  %4529 = vmatpush3.msra.mxu1 %v408_v28  ;;  %v38_v25 = vld [vmem:[%s10005_s0 + $0x60] sm:$0xff]  ;;  %v457_v27 = vld [vmem:[%s10004_s1 + $0x8f8] sm:$0xff] }
  0x72   :  { %1699 = vmatmul.mubr.f32.gmra.mxu0 %v106_v29  ;;  %4492 = vmatprep.subr.mxu0 %v391_v30  ;;  %v489_v28 = vld [vmem:[%s10004_s1 + $0x9f8] sm:$0xff]  ;;  %v40_v29 = vld [vmem:[%s10005_s0 + $0x70] sm:$0xff] }
  0x73   :  { %4530 = vmatprep.subr.mxu1 %v423_v31  ;;  %1773 = vmatprep.mubr.f32.mxu1 %v109_v32  ;;  %v441_v30 = vld [vmem:[%s10004_s1 + $0x878] sm:$0xff]  ;;  %v456_v32 = vld [vmem:[%s10004_s1 + $0x8f0] sm:$0xff] }
  0x74   :  { %4493 = vmatpush3.msra.mxu0 %v375_v33  ;;  %4531 = vmatpush3.msra.mxu1 %v407_v34  ;;  %v473_v31 = vld [vmem:[%s10004_s1 + $0x978] sm:$0xff]  ;;  %v488_v33 = vld [vmem:[%s10004_s1 + $0x9f0] sm:$0xff]  ;;  %v111_v34 = vld [vmem:[%s10005_s0 + $0x2a8] sm:$0xff] }
  0x75   :  { %4494 = vmatprep.subr.mxu0 %v390_v35  ;;  %1774 = vmatmul.mubr.f32.gmra.mxu1 %v108_v36  ;;  %v440_v35 = vld [vmem:[%s10004_s1 + $0x870] sm:$0xff] }
  0x76   :  { %4532 = vmatprep.subr.mxu1 %v422_v37  ;;  %4495 = vmatpush3.msra.mxu0 %v374_v38  ;;  %v472_v36 = vld [vmem:[%s10004_s1 + $0x970] sm:$0xff]  ;;  %v110_v37 = vld [vmem:[%s10005_s0 + $0x2a0] sm:$0xff]  ;;  %v455_v38 = vld [vmem:[%s10004_s1 + $0x8e8] sm:$0xff] }
  0x77   :  { %4533 = vmatpush3.msra.mxu1 %v406_v39  ;;  %4496 = vmatprep.subr.mxu0 %v389_v40  ;;  %v487_v39 = vld [vmem:[%s10004_s1 + $0x9e8] sm:$0xff]  ;;  %v113_v40 = vld [vmem:[%s10005_s0 + $0x2b8] sm:$0xff] }
  0x78   :  { %4534 = vmatprep.subr.mxu1 %v421_v41  ;;  %4497 = vmatpush3.msra.mxu0 %v373_v42  ;;  %v439_v41 = vld [vmem:[%s10004_s1 + $0x868] sm:$0xff] }
  0x79   :  { %4535 = vmatpush3.msra.mxu1 %v405_v43  ;;  %4498 = vmatprep.subr.mxu0 %v388_v44  ;;  %v471_v42 = vld [vmem:[%s10004_s1 + $0x968] sm:$0xff]  ;;  %v454_v43 = vld [vmem:[%s10004_s1 + $0x8e0] sm:$0xff]  ;;  %v112_v44 = vld [vmem:[%s10005_s0 + $0x2b0] sm:$0xff] }
  0x7a   :  { %4536 = vmatprep.subr.mxu1 %v420_v45  ;;  %4499 = vmatpush3.msra.mxu0 %v372_v46  ;;  %v486_v45 = vld [vmem:[%s10004_s1 + $0x9e0] sm:$0xff] }
  0x7b   :  { %4537 = vmatpush3.msra.mxu1 %v404_v47  ;;  %4500 = vmatprep.subr.mxu0 %v387_v48  ;;  %v438_v46 = vld [vmem:[%s10004_s1 + $0x860] sm:$0xff]  ;;  %v453_v48 = vld [vmem:[%s10004_s1 + $0x8d8] sm:$0xff] }
  0x7c   :  { %4538 = vmatprep.subr.mxu1 %v419_v49  ;;  %4501 = vmatpush3.msra.mxu0 %v371_v50  ;;  %v470_v47 = vld [vmem:[%s10004_s1 + $0x960] sm:$0xff]  ;;  %v485_v49 = vld [vmem:[%s10004_s1 + $0x9d8] sm:$0xff] }
  0x7d   :  { %4539 = vmatpush3.msra.mxu1 %v403_v51  ;;  %4502 = vmatprep.subr.mxu0 %v386_v52  ;;  %v437_v50 = vld [vmem:[%s10004_s1 + $0x858] sm:$0xff]  ;;  %v452_v52 = vld [vmem:[%s10004_s1 + $0x8d0] sm:$0xff] }
  0x7e   :  { %4540 = vmatprep.subr.mxu1 %v418_v53  ;;  %4503 = vmatpush3.msra.mxu0 %v370_v54  ;;  %v469_v51 = vld [vmem:[%s10004_s1 + $0x958] sm:$0xff]  ;;  %v484_v53 = vld [vmem:[%s10004_s1 + $0x9d0] sm:$0xff] }
  0x7f   :  { %4541 = vmatpush3.msra.mxu1 %v402_v55  ;;  %4504 = vmatprep.subr.mxu0 %v385_v56  ;;  %v436_v54 = vld [vmem:[%s10004_s1 + $0x850] sm:$0xff]  ;;  %v451_v56 = vld [vmem:[%s10004_s1 + $0x8c8] sm:$0xff] }
  0x80   :  { %4542 = vmatprep.subr.mxu1 %v417_v57  ;;  %4505 = vmatpush3.msra.mxu0 %v369_v58  ;;  %v468_v55 = vld [vmem:[%s10004_s1 + $0x950] sm:$0xff]  ;;  %v483_v57 = vld [vmem:[%s10004_s1 + $0x9c8] sm:$0xff] }
  0x81   :  { %4543 = vmatpush3.msra.mxu1 %v401_v59  ;;  %4506 = vmatprep.subr.mxu0 %v384_v60  ;;  %v435_v58 = vld [vmem:[%s10004_s1 + $0x848] sm:$0xff]  ;;  %v450_v60 = vld [vmem:[%s10004_s1 + $0x8c0] sm:$0xff] }
  0x82   :  { %4544 = vmatprep.subr.mxu1 %v416_v61  ;;  %4507 = vmatpush3.msra.mxu0 %v368_v62  ;;  %v467_v59 = vld [vmem:[%s10004_s1 + $0x948] sm:$0xff]  ;;  %v482_v61 = vld [vmem:[%s10004_s1 + $0x9c0] sm:$0xff] }
  0x83   :  { %4545 = vmatpush3.msra.mxu1 %v400_v63  ;;  %4508 = vmatprep.subr.mxu0 %v383_v0  ;;  %v434_v62 = vld [vmem:[%s10004_s1 + $0x840] sm:$0xff]  ;;  %v449_v0 = vld [vmem:[%s10004_s1 + $0x8b8] sm:$0xff] }
  0x84   :  { %4546 = vmatprep.subr.mxu1 %v415_v1  ;;  %4509 = vmatpush3.msra.mxu0 %v367_v2  ;;  %v466_v63 = vld [vmem:[%s10004_s1 + $0x940] sm:$0xff]  ;;  %v481_v1 = vld [vmem:[%s10004_s1 + $0x9b8] sm:$0xff] }
  0x85   :  { %4547 = vmatpush3.msra.mxu1 %v399_v3  ;;  %4510 = vmatprep.subr.mxu0 %v382_v4  ;;  %v433_v2 = vld [vmem:[%s10004_s1 + $0x838] sm:$0xff]  ;;  %v448_v4 = vld [vmem:[%s10004_s1 + $0x8b0] sm:$0xff] }
  0x86   :  { %4548 = vmatprep.subr.mxu1 %v414_v5  ;;  %4511 = vmatpush3.msra.mxu0 %v366_v6  ;;  %v465_v3 = vld [vmem:[%s10004_s1 + $0x938] sm:$0xff]  ;;  %v480_v5 = vld [vmem:[%s10004_s1 + $0x9b0] sm:$0xff] }
  0x87   :  { %4549 = vmatpush3.msra.mxu1 %v398_v7  ;;  %4512 = vmatprep.subr.mxu0 %v381_v8  ;;  %v432_v6 = vld [vmem:[%s10004_s1 + $0x830] sm:$0xff]  ;;  %v447_v8 = vld [vmem:[%s10004_s1 + $0x8a8] sm:$0xff] }
  0x88   :  { %4550 = vmatprep.subr.mxu1 %v413_v9  ;;  %4513 = vmatpush3.msra.mxu0 %v365_v10  ;;  %v464_v7 = vld [vmem:[%s10004_s1 + $0x930] sm:$0xff]  ;;  %v479_v9 = vld [vmem:[%s10004_s1 + $0x9a8] sm:$0xff] }
  0x89   :  { %4551 = vmatpush3.msra.mxu1 %v397_v11  ;;  %4514 = vmatprep.subr.mxu0 %v380_v12  ;;  %v431_v10 = vld [vmem:[%s10004_s1 + $0x828] sm:$0xff]  ;;  %v446_v12 = vld [vmem:[%s10004_s1 + $0x8a0] sm:$0xff] }
  0x8a   :  { %4552 = vmatprep.subr.mxu1 %v412_v13  ;;  %4515 = vmatpush3.msra.mxu0 %v364_v14  ;;  %v463_v11 = vld [vmem:[%s10004_s1 + $0x928] sm:$0xff]  ;;  %v478_v13 = vld [vmem:[%s10004_s1 + $0x9a0] sm:$0xff] }
  0x8b   :  { %4553 = vmatpush3.msra.mxu1 %v396_v15  ;;  %4516 = vmatprep.subr.mxu0 %v379_v16  ;;  %v430_v14 = vld [vmem:[%s10004_s1 + $0x820] sm:$0xff]  ;;  %v445_v16 = vld [vmem:[%s10004_s1 + $0x898] sm:$0xff] }
  0x8c   :  { %4554 = vmatprep.subr.mxu1 %v411_v17  ;;  %4517 = vmatpush3.msra.mxu0 %v363_v18  ;;  %v462_v15 = vld [vmem:[%s10004_s1 + $0x920] sm:$0xff]  ;;  %v477_v17 = vld [vmem:[%s10004_s1 + $0x998] sm:$0xff] }
  0x8d   :  { %4555 = vmatpush3.msra.mxu1 %v395_v19  ;;  %4518 = vmatprep.subr.mxu0 %v378_v20  ;;  %v429_v18 = vld [vmem:[%s10004_s1 + $0x818] sm:$0xff]  ;;  %v444_v20 = vld [vmem:[%s10004_s1 + $0x890] sm:$0xff] }
  0x8e   :  { %4556 = vmatprep.subr.mxu1 %v410_v21  ;;  %4519 = vmatpush3.msra.mxu0 %v362_v22  ;;  %v461_v19 = vld [vmem:[%s10004_s1 + $0x918] sm:$0xff]  ;;  %v476_v21 = vld [vmem:[%s10004_s1 + $0x990] sm:$0xff] }
  0x8f   :  { %1843 = vmatprep.mubr.f32.mxu0 %v39_v23  ;;  %4557 = vmatpush3.msra.mxu1 %v394_v24  ;;  %v428_v22 = vld [vmem:[%s10004_s1 + $0x810] sm:$0xff]  ;;  %v443_v24 = vld [vmem:[%s10004_s1 + $0x888] sm:$0xff] }
  0x90   :  { %1844 = vmatmul.mubr.f32.vlgmr.msra.gmra.mxu0 %v38_v25  ;;  %1918 = vmatprep.mubr.f32.mxu1 %v41_v26  ;;  %v460_v23 = vld [vmem:[%s10004_s1 + $0x910] sm:$0xff]  ;;  %v475_v25 = vld [vmem:[%s10004_s1 + $0x988] sm:$0xff] }
  0x91   :  { %4564 = vmatprep.subr.mxu0 %v457_v27  ;;  %4602 = vmatprep.subr.mxu1 %v489_v28  ;;  %v427_v26 = vld [vmem:[%s10004_s1 + $0x808] sm:$0xff]  ;;  %v442_v28 = vld [vmem:[%s10004_s1 + $0x880] sm:$0xff] }
  0x92   :  { %1919 = vmatmul.mubr.f32.vlgmr.msra.gmra.mxu1 %v40_v29  ;;  %4565 = vmatpush3.msra.mxu0 %v441_v30  ;;  %v459_v27 = vld [vmem:[%s10004_s1 + $0x908] sm:$0xff]  ;;  %v474_v29 = vld [vmem:[%s10004_s1 + $0x980] sm:$0xff] }
  0x93   :  { %4603 = vmatpush3.msra.mxu1 %v473_v31  ;;  %4566 = vmatprep.subr.mxu0 %v456_v32  ;;  %v426_v30 = vld [vmem:[%s10004_s1 + $0x800] sm:$0xff]  ;;  %v43_v31 = vld [vmem:[%s10005_s0 + $0x88] sm:$0xff] }
  0x94   :  { %4604 = vmatprep.subr.mxu1 %v488_v33  ;;  %1848 = vmatprep.mubr.f32.mxu0 %v111_v34  ;;  %v458_v32 = vld [vmem:[%s10004_s1 + $0x900] sm:$0xff]  ;;  %v45_v34 = vld [vmem:[%s10005_s0 + $0x98] sm:$0xff] }
  0x95   :  { %4567 = vmatpush3.msra.mxu0 %v440_v35  ;;  %4605 = vmatpush3.msra.mxu1 %v472_v36  ;;  %v42_v33 = vld [vmem:[%s10005_s0 + $0x80] sm:$0xff]  ;;  %v521_v35 = vld [vmem:[%s10004_s1 + $0xaf8] sm:$0xff] }
  0x96   :  { %1849 = vmatmul.mubr.f32.gmra.mxu0 %v110_v37  ;;  %4568 = vmatprep.subr.mxu0 %v455_v38  ;;  %v553_v36 = vld [vmem:[%s10004_s1 + $0xbf8] sm:$0xff]  ;;  %v44_v37 = vld [vmem:[%s10005_s0 + $0x90] sm:$0xff] }
  0x97   :  { %4606 = vmatprep.subr.mxu1 %v487_v39  ;;  %1923 = vmatprep.mubr.f32.mxu1 %v113_v40  ;;  %v505_v38 = vld [vmem:[%s10004_s1 + $0xa78] sm:$0xff]  ;;  %v520_v40 = vld [vmem:[%s10004_s1 + $0xaf0] sm:$0xff] }
  0x98   :  { %4569 = vmatpush3.msra.mxu0 %v439_v41  ;;  %4607 = vmatpush3.msra.mxu1 %v471_v42  ;;  %v537_v39 = vld [vmem:[%s10004_s1 + $0xb78] sm:$0xff]  ;;  %v552_v41 = vld [vmem:[%s10004_s1 + $0xbf0] sm:$0xff]  ;;  %v115_v42 = vld [vmem:[%s10005_s0 + $0x2c8] sm:$0xff] }
  0x99   :  { %4570 = vmatprep.subr.mxu0 %v454_v43  ;;  %1924 = vmatmul.mubr.f32.gmra.mxu1 %v112_v44  ;;  %v504_v43 = vld [vmem:[%s10004_s1 + $0xa70] sm:$0xff] }
  0x9a   :  { %4608 = vmatprep.subr.mxu1 %v486_v45  ;;  %4571 = vmatpush3.msra.mxu0 %v438_v46  ;;  %v536_v44 = vld [vmem:[%s10004_s1 + $0xb70] sm:$0xff]  ;;  %v114_v45 = vld [vmem:[%s10005_s0 + $0x2c0] sm:$0xff]  ;;  %v519_v46 = vld [vmem:[%s10004_s1 + $0xae8] sm:$0xff] }
  0x9b   :  { %4609 = vmatpush3.msra.mxu1 %v470_v47  ;;  %4572 = vmatprep.subr.mxu0 %v453_v48  ;;  %v551_v47 = vld [vmem:[%s10004_s1 + $0xbe8] sm:$0xff]  ;;  %v117_v48 = vld [vmem:[%s10005_s0 + $0x2d8] sm:$0xff] }
  0x9c   :  { %4610 = vmatprep.subr.mxu1 %v485_v49  ;;  %4573 = vmatpush3.msra.mxu0 %v437_v50  ;;  %v503_v49 = vld [vmem:[%s10004_s1 + $0xa68] sm:$0xff] }
  0x9d   :  { %4611 = vmatpush3.msra.mxu1 %v469_v51  ;;  %4574 = vmatprep.subr.mxu0 %v452_v52  ;;  %v535_v50 = vld [vmem:[%s10004_s1 + $0xb68] sm:$0xff]  ;;  %v518_v51 = vld [vmem:[%s10004_s1 + $0xae0] sm:$0xff]  ;;  %v116_v52 = vld [vmem:[%s10005_s0 + $0x2d0] sm:$0xff] }
  0x9e   :  { %4612 = vmatprep.subr.mxu1 %v484_v53  ;;  %4575 = vmatpush3.msra.mxu0 %v436_v54  ;;  %v550_v53 = vld [vmem:[%s10004_s1 + $0xbe0] sm:$0xff] }
  0x9f   :  { %4613 = vmatpush3.msra.mxu1 %v468_v55  ;;  %4576 = vmatprep.subr.mxu0 %v451_v56  ;;  %v502_v54 = vld [vmem:[%s10004_s1 + $0xa60] sm:$0xff]  ;;  %v517_v56 = vld [vmem:[%s10004_s1 + $0xad8] sm:$0xff] }
  0xa0   :  { %4614 = vmatprep.subr.mxu1 %v483_v57  ;;  %4577 = vmatpush3.msra.mxu0 %v435_v58  ;;  %v534_v55 = vld [vmem:[%s10004_s1 + $0xb60] sm:$0xff]  ;;  %v549_v57 = vld [vmem:[%s10004_s1 + $0xbd8] sm:$0xff] }
  0xa1   :  { %4615 = vmatpush3.msra.mxu1 %v467_v59  ;;  %4578 = vmatprep.subr.mxu0 %v450_v60  ;;  %v501_v58 = vld [vmem:[%s10004_s1 + $0xa58] sm:$0xff]  ;;  %v516_v60 = vld [vmem:[%s10004_s1 + $0xad0] sm:$0xff] }
  0xa2   :  { %4616 = vmatprep.subr.mxu1 %v482_v61  ;;  %4579 = vmatpush3.msra.mxu0 %v434_v62  ;;  %v533_v59 = vld [vmem:[%s10004_s1 + $0xb58] sm:$0xff]  ;;  %v548_v61 = vld [vmem:[%s10004_s1 + $0xbd0] sm:$0xff] }
  0xa3   :  { %4617 = vmatpush3.msra.mxu1 %v466_v63  ;;  %4580 = vmatprep.subr.mxu0 %v449_v0  ;;  %v500_v62 = vld [vmem:[%s10004_s1 + $0xa50] sm:$0xff]  ;;  %v515_v0 = vld [vmem:[%s10004_s1 + $0xac8] sm:$0xff] }
  0xa4   :  { %4618 = vmatprep.subr.mxu1 %v481_v1  ;;  %4581 = vmatpush3.msra.mxu0 %v433_v2  ;;  %v532_v63 = vld [vmem:[%s10004_s1 + $0xb50] sm:$0xff]  ;;  %v547_v1 = vld [vmem:[%s10004_s1 + $0xbc8] sm:$0xff] }
  0xa5   :  { %4619 = vmatpush3.msra.mxu1 %v465_v3  ;;  %4582 = vmatprep.subr.mxu0 %v448_v4  ;;  %v499_v2 = vld [vmem:[%s10004_s1 + $0xa48] sm:$0xff]  ;;  %v514_v4 = vld [vmem:[%s10004_s1 + $0xac0] sm:$0xff] }
  0xa6   :  { %4620 = vmatprep.subr.mxu1 %v480_v5  ;;  %4583 = vmatpush3.msra.mxu0 %v432_v6  ;;  %v531_v3 = vld [vmem:[%s10004_s1 + $0xb48] sm:$0xff]  ;;  %v546_v5 = vld [vmem:[%s10004_s1 + $0xbc0] sm:$0xff] }
  0xa7   :  { %4621 = vmatpush3.msra.mxu1 %v464_v7  ;;  %4584 = vmatprep.subr.mxu0 %v447_v8  ;;  %v498_v6 = vld [vmem:[%s10004_s1 + $0xa40] sm:$0xff]  ;;  %v513_v8 = vld [vmem:[%s10004_s1 + $0xab8] sm:$0xff] }
  0xa8   :  { %4622 = vmatprep.subr.mxu1 %v479_v9  ;;  %4585 = vmatpush3.msra.mxu0 %v431_v10  ;;  %v530_v7 = vld [vmem:[%s10004_s1 + $0xb40] sm:$0xff]  ;;  %v545_v9 = vld [vmem:[%s10004_s1 + $0xbb8] sm:$0xff] }
  0xa9   :  { %4623 = vmatpush3.msra.mxu1 %v463_v11  ;;  %4586 = vmatprep.subr.mxu0 %v446_v12  ;;  %v497_v10 = vld [vmem:[%s10004_s1 + $0xa38] sm:$0xff]  ;;  %v512_v12 = vld [vmem:[%s10004_s1 + $0xab0] sm:$0xff] }
  0xaa   :  { %4624 = vmatprep.subr.mxu1 %v478_v13  ;;  %4587 = vmatpush3.msra.mxu0 %v430_v14  ;;  %v529_v11 = vld [vmem:[%s10004_s1 + $0xb38] sm:$0xff]  ;;  %v544_v13 = vld [vmem:[%s10004_s1 + $0xbb0] sm:$0xff] }
  0xab   :  { %4625 = vmatpush3.msra.mxu1 %v462_v15  ;;  %4588 = vmatprep.subr.mxu0 %v445_v16  ;;  %v496_v14 = vld [vmem:[%s10004_s1 + $0xa30] sm:$0xff]  ;;  %v511_v16 = vld [vmem:[%s10004_s1 + $0xaa8] sm:$0xff] }
  0xac   :  { %4626 = vmatprep.subr.mxu1 %v477_v17  ;;  %4589 = vmatpush3.msra.mxu0 %v429_v18  ;;  %v528_v15 = vld [vmem:[%s10004_s1 + $0xb30] sm:$0xff]  ;;  %v543_v17 = vld [vmem:[%s10004_s1 + $0xba8] sm:$0xff] }
  0xad   :  { %4627 = vmatpush3.msra.mxu1 %v461_v19  ;;  %4590 = vmatprep.subr.mxu0 %v444_v20  ;;  %v495_v18 = vld [vmem:[%s10004_s1 + $0xa28] sm:$0xff]  ;;  %v510_v20 = vld [vmem:[%s10004_s1 + $0xaa0] sm:$0xff] }
  0xae   :  { %4628 = vmatprep.subr.mxu1 %v476_v21  ;;  %4591 = vmatpush3.msra.mxu0 %v428_v22  ;;  %v527_v19 = vld [vmem:[%s10004_s1 + $0xb28] sm:$0xff]  ;;  %v542_v21 = vld [vmem:[%s10004_s1 + $0xba0] sm:$0xff] }
  0xaf   :  { %4629 = vmatpush3.msra.mxu1 %v460_v23  ;;  %4592 = vmatprep.subr.mxu0 %v443_v24  ;;  %v494_v22 = vld [vmem:[%s10004_s1 + $0xa20] sm:$0xff]  ;;  %v509_v24 = vld [vmem:[%s10004_s1 + $0xa98] sm:$0xff] }
  0xb0   :  { %4630 = vmatprep.subr.mxu1 %v475_v25  ;;  %4593 = vmatpush3.msra.mxu0 %v427_v26  ;;  %v526_v23 = vld [vmem:[%s10004_s1 + $0xb20] sm:$0xff]  ;;  %v541_v25 = vld [vmem:[%s10004_s1 + $0xb98] sm:$0xff] }
  0xb1   :  { %4631 = vmatpush3.msra.mxu1 %v459_v27  ;;  %4594 = vmatprep.subr.mxu0 %v442_v28  ;;  %v493_v26 = vld [vmem:[%s10004_s1 + $0xa18] sm:$0xff]  ;;  %v508_v28 = vld [vmem:[%s10004_s1 + $0xa90] sm:$0xff] }
  0xb2   :  { %4632 = vmatprep.subr.mxu1 %v474_v29  ;;  %4595 = vmatpush3.msra.mxu0 %v426_v30  ;;  %v525_v27 = vld [vmem:[%s10004_s1 + $0xb18] sm:$0xff]  ;;  %v540_v29 = vld [vmem:[%s10004_s1 + $0xb90] sm:$0xff] }
  0xb3   :  { %1993 = vmatprep.mubr.f32.mxu0 %v43_v31  ;;  %4633 = vmatpush3.msra.mxu1 %v458_v32  ;;  %v492_v30 = vld [vmem:[%s10004_s1 + $0xa10] sm:$0xff]  ;;  %v507_v32 = vld [vmem:[%s10004_s1 + $0xa88] sm:$0xff] }
  0xb4   :  { %1994 = vmatmul.mubr.f32.vlgmr.msra.gmra.mxu0 %v42_v33  ;;  %2068 = vmatprep.mubr.f32.mxu1 %v45_v34  ;;  %v524_v31 = vld [vmem:[%s10004_s1 + $0xb10] sm:$0xff]  ;;  %v539_v33 = vld [vmem:[%s10004_s1 + $0xb88] sm:$0xff] }
  0xb5   :  { %4640 = vmatprep.subr.mxu0 %v521_v35  ;;  %4678 = vmatprep.subr.mxu1 %v553_v36  ;;  %v491_v34 = vld [vmem:[%s10004_s1 + $0xa08] sm:$0xff]  ;;  %v506_v36 = vld [vmem:[%s10004_s1 + $0xa80] sm:$0xff] }
  0xb6   :  { %2069 = vmatmul.mubr.f32.vlgmr.msra.gmra.mxu1 %v44_v37  ;;  %4641 = vmatpush3.msra.mxu0 %v505_v38  ;;  %v523_v35 = vld [vmem:[%s10004_s1 + $0xb08] sm:$0xff]  ;;  %v538_v37 = vld [vmem:[%s10004_s1 + $0xb80] sm:$0xff] }
  0xb7   :  { %4679 = vmatpush3.msra.mxu1 %v537_v39  ;;  %4642 = vmatprep.subr.mxu0 %v520_v40  ;;  %v490_v38 = vld [vmem:[%s10004_s1 + $0xa00] sm:$0xff]  ;;  %v47_v39 = vld [vmem:[%s10005_s0 + $0xa8] sm:$0xff] }
  0xb8   :  { %4680 = vmatprep.subr.mxu1 %v552_v41  ;;  %1998 = vmatprep.mubr.f32.mxu0 %v115_v42  ;;  %v522_v40 = vld [vmem:[%s10004_s1 + $0xb00] sm:$0xff]  ;;  %v49_v42 = vld [vmem:[%s10005_s0 + $0xb8] sm:$0xff] }
  0xb9   :  { %4643 = vmatpush3.msra.mxu0 %v504_v43  ;;  %4681 = vmatpush3.msra.mxu1 %v536_v44  ;;  %v46_v41 = vld [vmem:[%s10005_s0 + $0xa0] sm:$0xff]  ;;  %v585_v43 = vld [vmem:[%s10004_s1 + $0xcf8] sm:$0xff] }
  0xba   :  { %1999 = vmatmul.mubr.f32.gmra.mxu0 %v114_v45  ;;  %4644 = vmatprep.subr.mxu0 %v519_v46  ;;  %v617_v44 = vld [vmem:[%s10004_s1 + $0xdf8] sm:$0xff]  ;;  %v48_v45 = vld [vmem:[%s10005_s0 + $0xb0] sm:$0xff] }
  0xbb   :  { %4682 = vmatprep.subr.mxu1 %v551_v47  ;;  %2073 = vmatprep.mubr.f32.mxu1 %v117_v48  ;;  %v569_v46 = vld [vmem:[%s10004_s1 + $0xc78] sm:$0xff]  ;;  %v584_v48 = vld [vmem:[%s10004_s1 + $0xcf0] sm:$0xff] }
  0xbc   :  { %4645 = vmatpush3.msra.mxu0 %v503_v49  ;;  %4683 = vmatpush3.msra.mxu1 %v535_v50  ;;  %v601_v47 = vld [vmem:[%s10004_s1 + $0xd78] sm:$0xff]  ;;  %v616_v49 = vld [vmem:[%s10004_s1 + $0xdf0] sm:$0xff]  ;;  %v119_v50 = vld [vmem:[%s10005_s0 + $0x2e8] sm:$0xff] }
  0xbd   :  { %4646 = vmatprep.subr.mxu0 %v518_v51  ;;  %2074 = vmatmul.mubr.f32.gmra.mxu1 %v116_v52  ;;  %v568_v51 = vld [vmem:[%s10004_s1 + $0xc70] sm:$0xff] }
  0xbe   :  { %4684 = vmatprep.subr.mxu1 %v550_v53  ;;  %4647 = vmatpush3.msra.mxu0 %v502_v54  ;;  %v600_v52 = vld [vmem:[%s10004_s1 + $0xd70] sm:$0xff]  ;;  %v118_v53 = vld [vmem:[%s10005_s0 + $0x2e0] sm:$0xff]  ;;  %v583_v54 = vld [vmem:[%s10004_s1 + $0xce8] sm:$0xff] }
  0xbf   :  { %4685 = vmatpush3.msra.mxu1 %v534_v55  ;;  %4648 = vmatprep.subr.mxu0 %v517_v56  ;;  %v615_v55 = vld [vmem:[%s10004_s1 + $0xde8] sm:$0xff]  ;;  %v121_v56 = vld [vmem:[%s10005_s0 + $0x2f8] sm:$0xff] }
  0xc0   :  { %4686 = vmatprep.subr.mxu1 %v549_v57  ;;  %4649 = vmatpush3.msra.mxu0 %v501_v58  ;;  %v567_v57 = vld [vmem:[%s10004_s1 + $0xc68] sm:$0xff] }
  0xc1   :  { %4687 = vmatpush3.msra.mxu1 %v533_v59  ;;  %4650 = vmatprep.subr.mxu0 %v516_v60  ;;  %v599_v58 = vld [vmem:[%s10004_s1 + $0xd68] sm:$0xff]  ;;  %v582_v59 = vld [vmem:[%s10004_s1 + $0xce0] sm:$0xff]  ;;  %v120_v60 = vld [vmem:[%s10005_s0 + $0x2f0] sm:$0xff] }
  0xc2   :  { %4688 = vmatprep.subr.mxu1 %v548_v61  ;;  %4651 = vmatpush3.msra.mxu0 %v500_v62  ;;  %v614_v61 = vld [vmem:[%s10004_s1 + $0xde0] sm:$0xff] }
  0xc3   :  { %4689 = vmatpush3.msra.mxu1 %v532_v63  ;;  %4652 = vmatprep.subr.mxu0 %v515_v0  ;;  %v566_v62 = vld [vmem:[%s10004_s1 + $0xc60] sm:$0xff]  ;;  %v581_v0 = vld [vmem:[%s10004_s1 + $0xcd8] sm:$0xff] }
  0xc4   :  { %4690 = vmatprep.subr.mxu1 %v547_v1  ;;  %4653 = vmatpush3.msra.mxu0 %v499_v2  ;;  %v598_v63 = vld [vmem:[%s10004_s1 + $0xd60] sm:$0xff]  ;;  %v613_v1 = vld [vmem:[%s10004_s1 + $0xdd8] sm:$0xff] }
  0xc5   :  { %4691 = vmatpush3.msra.mxu1 %v531_v3  ;;  %4654 = vmatprep.subr.mxu0 %v514_v4  ;;  %v565_v2 = vld [vmem:[%s10004_s1 + $0xc58] sm:$0xff]  ;;  %v580_v4 = vld [vmem:[%s10004_s1 + $0xcd0] sm:$0xff] }
  0xc6   :  { %4692 = vmatprep.subr.mxu1 %v546_v5  ;;  %4655 = vmatpush3.msra.mxu0 %v498_v6  ;;  %v597_v3 = vld [vmem:[%s10004_s1 + $0xd58] sm:$0xff]  ;;  %v612_v5 = vld [vmem:[%s10004_s1 + $0xdd0] sm:$0xff] }
  0xc7   :  { %4693 = vmatpush3.msra.mxu1 %v530_v7  ;;  %4656 = vmatprep.subr.mxu0 %v513_v8  ;;  %v564_v6 = vld [vmem:[%s10004_s1 + $0xc50] sm:$0xff] }
  0xc8   :  { %4694 = vmatprep.subr.mxu1 %v545_v9  ;;  %4657 = vmatpush3.msra.mxu0 %v497_v10  ;;  %v596_v7 = vld [vmem:[%s10004_s1 + $0xd50] sm:$0xff]  ;;  %v579_v9 = vld [vmem:[%s10004_s1 + $0xcc8] sm:$0xff] }
  0xc9   :  { %4695 = vmatpush3.msra.mxu1 %v529_v11  ;;  %4658 = vmatprep.subr.mxu0 %v512_v12  ;;  %v611_v10 = vld [vmem:[%s10004_s1 + $0xdc8] sm:$0xff] }
  0xca   :  { %4696 = vmatprep.subr.mxu1 %v544_v13  ;;  %4659 = vmatpush3.msra.mxu0 %v496_v14  ;;  %v563_v11 = vld [vmem:[%s10004_s1 + $0xc48] sm:$0xff]  ;;  %v7129_v14 = vld [vmem:[%s10006_s2] ss:$0 sm:$0xff] }
  0xcb   :  { %4697 = vmatpush3.msra.mxu1 %v528_v15  ;;  %4660 = vmatprep.subr.mxu0 %v511_v16  ;;  %v595_v12 = vld [vmem:[%s10004_s1 + $0xd48] sm:$0xff]  ;;  %v578_v16 = vld [vmem:[%s10004_s1 + $0xcc0] sm:$0xff] }
  0xcc   :  { %4698 = vmatprep.subr.mxu1 %v543_v17  ;;  %4661 = vmatpush3.msra.mxu0 %v495_v18  ;;  %v610_v17 = vld [vmem:[%s10004_s1 + $0xdc0] sm:$0xff] }
  0xcd   :  { %4699 = vmatpush3.msra.mxu1 %v527_v19  ;;  %4662 = vmatprep.subr.mxu0 %v510_v20  ;;  %v562_v19 = vld [vmem:[%s10004_s1 + $0xc40] sm:$0xff] }
  0xce   :  { %4700 = vmatprep.subr.mxu1 %v542_v21  ;;  %4663 = vmatpush3.msra.mxu0 %v494_v22  ;;  %v594_v20 = vld [vmem:[%s10004_s1 + $0xd40] sm:$0xff]  ;;  %v577_v22 = vld [vmem:[%s10004_s1 + $0xcb8] sm:$0xff] }
  0xcf   :  { %4701 = vmatpush3.msra.mxu1 %v526_v23  ;;  %4664 = vmatprep.subr.mxu0 %v509_v24  ;;  %v609_v23 = vld [vmem:[%s10004_s1 + $0xdb8] sm:$0xff] }
  0xd0   :  { %4702 = vmatprep.subr.mxu1 %v541_v25  ;;  %4665 = vmatpush3.msra.mxu0 %v493_v26  ;;  %v561_v26 = vld [vmem:[%s10004_s1 + $0xc38] sm:$0xff] }
  0xd1   :  { %4703 = vmatpush3.msra.mxu1 %v525_v27  ;;  %4666 = vmatprep.subr.mxu0 %v508_v28  ;;  %v593_v27 = vld [vmem:[%s10004_s1 + $0xd38] sm:$0xff]  ;;  %v576_v28 = vld [vmem:[%s10004_s1 + $0xcb0] sm:$0xff] }
  0xd2   :  { %4704 = vmatprep.subr.mxu1 %v540_v29  ;;  %4667 = vmatpush3.msra.mxu0 %v492_v30  ;;  %v608_v29 = vld [vmem:[%s10004_s1 + $0xdb0] sm:$0xff] }
  0xd3   :  { %4705 = vmatpush3.msra.mxu1 %v524_v31  ;;  %4668 = vmatprep.subr.mxu0 %v507_v32  ;;  %v560_v31 = vld [vmem:[%s10004_s1 + $0xc30] sm:$0xff] }
  0xd4   :  { %4706 = vmatprep.subr.mxu1 %v539_v33  ;;  %4669 = vmatpush3.msra.mxu0 %v491_v34  ;;  %v592_v32 = vld [vmem:[%s10004_s1 + $0xd30] sm:$0xff]  ;;  %v575_v33 = vld [vmem:[%s10004_s1 + $0xca8] sm:$0xff] }
  0xd5   :  { %4707 = vmatpush3.msra.mxu1 %v523_v35  ;;  %4670 = vmatprep.subr.mxu0 %v506_v36  ;;  %v607_v34 = vld [vmem:[%s10004_s1 + $0xda8] sm:$0xff] }
  0xd6   :  { %4708 = vmatprep.subr.mxu1 %v538_v37  ;;  %4671 = vmatpush3.msra.mxu0 %v490_v38  ;;  %v559_v35 = vld [vmem:[%s10004_s1 + $0xc28] sm:$0xff]  ;;  %v574_v37 = vld [vmem:[%s10004_s1 + $0xca0] sm:$0xff] }
  0xd7   :  { %2143 = vmatprep.mubr.f32.mxu0 %v47_v39  ;;  %4709 = vmatpush3.msra.mxu1 %v522_v40  ;;  %v591_v36 = vld [vmem:[%s10004_s1 + $0xd28] sm:$0xff]  ;;  %v606_v38 = vld [vmem:[%s10004_s1 + $0xda0] sm:$0xff] }
  0xd8   :  { %2144 = vmatmul.mubr.f32.vlgmr.msra.gmra.mxu0 %v46_v41  ;;  %2218 = vmatprep.mubr.f32.mxu1 %v49_v42  ;;  %v558_v39 = vld [vmem:[%s10004_s1 + $0xc20] sm:$0xff]  ;;  %v573_v41 = vld [vmem:[%s10004_s1 + $0xc98] sm:$0xff] }
  0xd9   :  { %4716 = vmatprep.subr.mxu0 %v585_v43  ;;  %4754 = vmatprep.subr.mxu1 %v617_v44  ;;  %v590_v40 = vld [vmem:[%s10004_s1 + $0xd20] sm:$0xff]  ;;  %v605_v42 = vld [vmem:[%s10004_s1 + $0xd98] sm:$0xff] }
  0xda   :  { %2219 = vmatmul.mubr.f32.vlgmr.msra.gmra.mxu1 %v48_v45  ;;  %4717 = vmatpush3.msra.mxu0 %v569_v46  ;;  %v557_v43 = vld [vmem:[%s10004_s1 + $0xc18] sm:$0xff]  ;;  %v572_v45 = vld [vmem:[%s10004_s1 + $0xc90] sm:$0xff] }
  0xdb   :  { %4755 = vmatpush3.msra.mxu1 %v601_v47  ;;  %4718 = vmatprep.subr.mxu0 %v584_v48  ;;  %v589_v44 = vld [vmem:[%s10004_s1 + $0xd18] sm:$0xff]  ;;  %v604_v46 = vld [vmem:[%s10004_s1 + $0xd90] sm:$0xff] }
  0xdc   :  { %4756 = vmatprep.subr.mxu1 %v616_v49  ;;  %2148 = vmatprep.mubr.f32.mxu0 %v119_v50  ;;  %v556_v47 = vld [vmem:[%s10004_s1 + $0xc10] sm:$0xff]  ;;  %v571_v49 = vld [vmem:[%s10004_s1 + $0xc88] sm:$0xff] }
  0xdd   :  { %4719 = vmatpush3.msra.mxu0 %v568_v51  ;;  %4757 = vmatpush3.msra.mxu1 %v600_v52  ;;  %v588_v48 = vld [vmem:[%s10004_s1 + $0xd10] sm:$0xff]  ;;  %v603_v50 = vld [vmem:[%s10004_s1 + $0xd88] sm:$0xff] }
  0xde   :  { %2149 = vmatmul.mubr.f32.gmra.mxu0 %v118_v53  ;;  %4720 = vmatprep.subr.mxu0 %v583_v54  ;;  %v555_v51 = vld [vmem:[%s10004_s1 + $0xc08] sm:$0xff]  ;;  %v570_v53 = vld [vmem:[%s10004_s1 + $0xc80] sm:$0xff] }
  0xdf   :  { %4758 = vmatprep.subr.mxu1 %v615_v55  ;;  %2223 = vmatprep.mubr.f32.mxu1 %v121_v56  ;;  %v587_v52 = vld [vmem:[%s10004_s1 + $0xd08] sm:$0xff]  ;;  %v602_v54 = vld [vmem:[%s10004_s1 + $0xd80] sm:$0xff] }
  0xe0   :  { %4721 = vmatpush3.msra.mxu0 %v567_v57  ;;  %4759 = vmatpush3.msra.mxu1 %v599_v58  ;;  %v554_v55 = vld [vmem:[%s10004_s1 + $0xc00] sm:$0xff]  ;;  %v51_v56 = vld [vmem:[%s10005_s0 + $0xc8] sm:$0xff] }
  0xe1   :  { %4722 = vmatprep.subr.mxu0 %v582_v59  ;;  %2224 = vmatmul.mubr.f32.gmra.mxu1 %v120_v60  ;;  %v586_v57 = vld [vmem:[%s10004_s1 + $0xd00] sm:$0xff]  ;;  %v53_v59 = vld [vmem:[%s10005_s0 + $0xd8] sm:$0xff] }
  0xe2   :  { %4760 = vmatprep.subr.mxu1 %v614_v61  ;;  %4723 = vmatpush3.msra.mxu0 %v566_v62  ;;  %v50_v58 = vld [vmem:[%s10005_s0 + $0xc0] sm:$0xff]  ;;  %v649_v60 = vld [vmem:[%s10004_s1 + $0xef8] sm:$0xff]  ;;  %v52_v62 = vld [vmem:[%s10005_s0 + $0xd0] sm:$0xff] }
  0xe3   :  { %4761 = vmatpush3.msra.mxu1 %v598_v63  ;;  %4724 = vmatprep.subr.mxu0 %v581_v0  ;;  %v681_v61 = vld [vmem:[%s10004_s1 + $0xff8] sm:$0xff] }
  0xe4   :  { %4762 = vmatprep.subr.mxu1 %v613_v1  ;;  %v4292_v8 = vpop.f32.mrf.mxu0  ;;  %4725 = vmatpush3.msra.mxu0 %v565_v2  ;;  %v633_v63 = vld [vmem:[%s10004_s1 + $0xe78] sm:$0xff]  ;;  %v648_v1 = vld [vmem:[%s10004_s1 + $0xef0] sm:$0xff] }
  0xe5   :  { %4763 = vmatpush3.msra.mxu1 %v597_v3  ;;  %4726 = vmatprep.subr.mxu0 %v580_v4  ;;  %v665_v0 = vld [vmem:[%s10004_s1 + $0xf78] sm:$0xff]  ;;  %v680_v2 = vld [vmem:[%s10004_s1 + $0xff0] sm:$0xff]  ;;  %v123_v3 = vld [vmem:[%s10005_s0 + $0x308] sm:$0xff] }
  0xe6   :  { %4764 = vmatprep.subr.mxu1 %v612_v5  ;;  %v4330_v13 = vpop.f32.mrf.mxu1  ;;  %v4293_v15 = vpop.f32.mrf.mxu0  ;;  %4727 = vmatpush3.msra.mxu0 %v564_v6  ;;  %v632_v4 = vld [vmem:[%s10004_s1 + $0xe70] sm:$0xff]  ;;  %v122_v6 = vld [vmem:[%s10005_s0 + $0x300] sm:$0xff] }
  0xe7   :  { %4765 = vmatpush3.msra.mxu1 %v596_v7  ;;  %v4294_v18 = vadd.f32 %v4293_v15, %v4292_v8  ;;  %4728 = vmatprep.subr.mxu0 %v579_v9  ;;  %v664_v5 = vld [vmem:[%s10004_s1 + $0xf70] sm:$0xff]  ;;  %v647_v7 = vld [vmem:[%s10004_s1 + $0xee8] sm:$0xff]  ;;  %v125_v9 = vld [vmem:[%s10005_s0 + $0x318] sm:$0xff] }
  0xe8   :  { %4766 = vmatprep.subr.mxu1 %v611_v10  ;;  %v4331_v21 = vpop.f32.mrf.mxu1  ;;  %4729 = vmatpush3.msra.mxu0 %v563_v11  ;;  %v679_v8 = vld [vmem:[%s10004_s1 + $0xfe8] sm:$0xff]  ;;  %v124_v15 = vld [vmem:[%s10005_s0 + $0x310] sm:$0xff] }
  0xe9   :  { %4767 = vmatpush3.msra.mxu1 %v595_v12  ;;  %v1396_v24 = vadd.f32 %v4294_v18, %v7129_v14  ;;  %v4332_v25 = vadd.f32 %v4331_v21, %v4330_v13  ;;  %4730 = vmatprep.subr.mxu0 %v578_v16  ;;  %v631_v10 = vld [vmem:[%s10004_s1 + $0xe68] sm:$0xff]  ;;  %v646_v13 = vld [vmem:[%s10004_s1 + $0xee0] sm:$0xff] }
  0xea   :  { %4768 = vmatprep.subr.mxu1 %v610_v17  ;;  %4731 = vmatpush3.msra.mxu0 %v562_v19  ;;  %v663_v12 = vld [vmem:[%s10004_s1 + $0xf68] sm:$0xff]  ;;  %v678_v16 = vld [vmem:[%s10004_s1 + $0xfe0] sm:$0xff] }
  0xeb   :  { %4769 = vmatpush3.msra.mxu1 %v594_v20  ;;  %v7162_v30 = vadd.f32 %v4332_v25, %v1396_v24  ;;  %4732 = vmatprep.subr.mxu0 %v577_v22  ;;  %v630_v18 = vld [vmem:[%s10004_s1 + $0xe60] sm:$0xff]  ;;  %v645_v22 = vld [vmem:[%s10004_s1 + $0xed8] sm:$0xff] }
  0xec   :  { %4770 = vmatprep.subr.mxu1 %v609_v23  ;;  %4733 = vmatpush3.msra.mxu0 %v561_v26  ;;  %v662_v19 = vld [vmem:[%s10004_s1 + $0xf60] sm:$0xff]  ;;  %v677_v23 = vld [vmem:[%s10004_s1 + $0xfd8] sm:$0xff] }
  0xed   :  { %4771 = vmatpush3.msra.mxu1 %v593_v27  ;;  %4734 = vmatprep.subr.mxu0 %v576_v28  ;;  %v629_v24 = vld [vmem:[%s10004_s1 + $0xe58] sm:$0xff]  ;;  %v644_v28 = vld [vmem:[%s10004_s1 + $0xed0] sm:$0xff] }
  0xee   :  { %4772 = vmatprep.subr.mxu1 %v608_v29  ;;  %4735 = vmatpush3.msra.mxu0 %v560_v31  ;;  %v661_v25 = vld [vmem:[%s10004_s1 + $0xf58] sm:$0xff]  ;;  %v676_v29 = vld [vmem:[%s10004_s1 + $0xfd0] sm:$0xff] }
  0xef   :  { %4773 = vmatpush3.msra.mxu1 %v592_v32  ;;  %4736 = vmatprep.subr.mxu0 %v575_v33  ;;  %v628_v32 = vld [vmem:[%s10004_s1 + $0xe50] sm:$0xff] }
  0xf0   :  { %4774 = vmatprep.subr.mxu1 %v607_v34  ;;  %4737 = vmatpush3.msra.mxu0 %v559_v35  ;;  %v643_v34 = vld [vmem:[%s10004_s1 + $0xec8] sm:$0xff] }
  0xf1   :  { %4775 = vmatpush3.msra.mxu1 %v591_v36  ;;  %4738 = vmatprep.subr.mxu0 %v574_v37  ;;  %v675_v35 = vld [vmem:[%s10004_s1 + $0xfc8] sm:$0xff] }
  0xf2   :  { %4776 = vmatprep.subr.mxu1 %v606_v38  ;;  %4739 = vmatpush3.msra.mxu0 %v558_v39  ;;  %v627_v37 = vld [vmem:[%s10004_s1 + $0xe48] sm:$0xff] }
  0xf3   :  { %4777 = vmatpush3.msra.mxu1 %v590_v40  ;;  %4740 = vmatprep.subr.mxu0 %v573_v41  ;;  %v659_v38 = vld [vmem:[%s10004_s1 + $0xf48] sm:$0xff]  ;;  %v642_v41 = vld [vmem:[%s10004_s1 + $0xec0] sm:$0xff] }
  0xf4   :  { %4778 = vmatprep.subr.mxu1 %v605_v42  ;;  %4741 = vmatpush3.msra.mxu0 %v557_v43  ;;  %v674_v42 = vld [vmem:[%s10004_s1 + $0xfc0] sm:$0xff] }
  0xf5   :  { %4779 = vmatpush3.msra.mxu1 %v589_v44  ;;  %4742 = vmatprep.subr.mxu0 %v572_v45  ;;  %v626_v44 = vld [vmem:[%s10004_s1 + $0xe40] sm:$0xff] }
  0xf6   :  { %4780 = vmatprep.subr.mxu1 %v604_v46  ;;  %4743 = vmatpush3.msra.mxu0 %v556_v47  ;;  %v658_v45 = vld [vmem:[%s10004_s1 + $0xf40] sm:$0xff]  ;;  %v641_v47 = vld [vmem:[%s10004_s1 + $0xeb8] sm:$0xff] }
  0xf7   :  { %4781 = vmatpush3.msra.mxu1 %v588_v48  ;;  %4744 = vmatprep.subr.mxu0 %v571_v49  ;;  %v673_v48 = vld [vmem:[%s10004_s1 + $0xfb8] sm:$0xff] }
  0xf8   :  { %4782 = vmatprep.subr.mxu1 %v603_v50  ;;  %4745 = vmatpush3.msra.mxu0 %v555_v51  ;;  %v625_v51 = vld [vmem:[%s10004_s1 + $0xe38] sm:$0xff] }
  0xf9   :  { %4783 = vmatpush3.msra.mxu1 %v587_v52  ;;  %4746 = vmatprep.subr.mxu0 %v570_v53  ;;  %v657_v52 = vld [vmem:[%s10004_s1 + $0xf38] sm:$0xff] }
  0xfa   :  { %4784 = vmatprep.subr.mxu1 %v602_v54  ;;  %4747 = vmatpush3.msra.mxu0 %v554_v55  ;;  %v640_v54 = vld [vmem:[%s10004_s1 + $0xeb0] sm:$0xff] }
  0xfb   :  { %2293 = vmatprep.mubr.f32.mxu0 %v51_v56  ;;  %4785 = vmatpush3.msra.mxu1 %v586_v57  ;;  %v624_v56 = vld [vmem:[%s10004_s1 + $0xe30] sm:$0xff] }
  0xfc   :  { %2294 = vmatmul.mubr.f32.vlgmr.msra.gmra.mxu0 %v50_v58  ;;  %2368 = vmatprep.mubr.f32.mxu1 %v53_v59  ;;  %v656_v57 = vld [vmem:[%s10004_s1 + $0xf30] sm:$0xff]  ;;  %v639_v59 = vld [vmem:[%s10004_s1 + $0xea8] sm:$0xff] }
  0xfd   :  { %4792 = vmatprep.subr.mxu0 %v649_v60  ;;  %4830 = vmatprep.subr.mxu1 %v681_v61  ;;  %v671_v60 = vld [vmem:[%s10004_s1 + $0xfa8] sm:$0xff] }
  0xfe   :  { %2369 = vmatmul.mubr.f32.vlgmr.msra.gmra.mxu1 %v52_v62  ;;  %4793 = vmatpush3.msra.mxu0 %v633_v63  ;;  %v623_v62 = vld [vmem:[%s10004_s1 + $0xe28] sm:$0xff] }
  0xff   :  { %4831 = vmatpush3.msra.mxu1 %v665_v0  ;;  %4794 = vmatprep.subr.mxu0 %v648_v1  ;;  %v655_v63 = vld [vmem:[%s10004_s1 + $0xf28] sm:$0xff]  ;;  %v638_v1 = vld [vmem:[%s10004_s1 + $0xea0] sm:$0xff] }
 0x100   :  { %4832 = vmatprep.subr.mxu1 %v680_v2  ;;  %2298 = vmatprep.mubr.f32.mxu0 %v123_v3  ;;  %v670_v2 = vld [vmem:[%s10004_s1 + $0xfa0] sm:$0xff] }
 0x101   :  { %4795 = vmatpush3.msra.mxu0 %v632_v4  ;;  %v4295_v11 = vpop.f32.mrf.mxu0  ;;  %4833 = vmatpush3.msra.mxu1 %v664_v5  ;;  %v622_v4 = vld [vmem:[%s10004_s1 + $0xe20] sm:$0xff] }
 0x102   :  { %2299 = vmatmul.mubr.f32.gmra.mxu0 %v122_v6  ;;  %4796 = vmatprep.subr.mxu0 %v647_v7  ;;  %v654_v5 = vld [vmem:[%s10004_s1 + $0xf20] sm:$0xff]  ;;  %v637_v7 = vld [vmem:[%s10004_s1 + $0xe98] sm:$0xff] }
 0x103   :  { %4834 = vmatprep.subr.mxu1 %v679_v8  ;;  %v4296_v17 = vpop.f32.mrf.mxu0  ;;  %2373 = vmatprep.mubr.f32.mxu1 %v125_v9  ;;  %v669_v8 = vld [vmem:[%s10004_s1 + $0xf98] sm:$0xff] }
 0x104   :  { %4797 = vmatpush3.msra.mxu0 %v631_v10  ;;  %v4297_v20 = vadd.f32 %v4296_v17, %v4295_v11  ;;  %v4333_v21 = vpop.f32.mrf.mxu1  ;;  %4835 = vmatpush3.msra.mxu1 %v663_v12  ;;  %v621_v10 = vld [vmem:[%s10004_s1 + $0xe18] sm:$0xff]  ;;  %v636_v12 = vld [vmem:[%s10004_s1 + $0xe90] sm:$0xff] }
 0x105   :  { %4798 = vmatprep.subr.mxu0 %v646_v13  ;;  %2374 = vmatmul.mubr.f32.gmra.mxu1 %v124_v15  ;;  %v653_v11 = vld [vmem:[%s10004_s1 + $0xf18] sm:$0xff]  ;;  %v668_v13 = vld [vmem:[%s10004_s1 + $0xf90] sm:$0xff] }
 0x106   :  { %4836 = vmatprep.subr.mxu1 %v678_v16  ;;  %v1401_v26 = vadd.f32 %v4297_v20, %v7129_v14  ;;  %v4334_v27 = vpop.f32.mrf.mxu1  ;;  %4799 = vmatpush3.msra.mxu0 %v630_v18  ;;  %v660_v14 = vld [vmem:[%s10004_s1 + $0xf50] sm:$0xff]  ;;  %v635_v18 = vld [vmem:[%s10004_s1 + $0xe88] sm:$0xff] }
 0x107   :  { %4837 = vmatpush3.msra.mxu1 %v662_v19  ;;  %v4335_v31 = vadd.f32 %v4334_v27, %v4333_v21  ;;  %4800 = vmatprep.subr.mxu0 %v645_v22  ;;  %v620_v16 = vld [vmem:[%s10004_s1 + $0xe10] sm:$0xff]  ;;  %v667_v19 = vld [vmem:[%s10004_s1 + $0xf88] sm:$0xff]  ;;  %v634_v22 = vld [vmem:[%s10004_s1 + $0xe80] sm:$0xff] }
 0x108   :  { %4838 = vmatprep.subr.mxu1 %v677_v23  ;;  %v4368_v33 = vpop.f32.mrf.mxu0  ;;  %4801 = vmatpush3.msra.mxu0 %v629_v24  ;;  %v652_v17 = vld [vmem:[%s10004_s1 + $0xf10] sm:$0xff]  ;;  %v619_v20 = vld [vmem:[%s10004_s1 + $0xe08] sm:$0xff]  ;;  %v666_v23 = vld [vmem:[%s10004_s1 + $0xf80] sm:$0xff] }
 0x109   :  { %4839 = vmatpush3.msra.mxu1 %v661_v25  ;;  %v1476_v36 = vadd.f32 %v4335_v31, %v1401_v26  ;;  %4802 = vmatprep.subr.mxu0 %v644_v28  ;;  %v651_v21 = vld [vmem:[%s10004_s1 + $0xf08] sm:$0xff]  ;;  %v618_v24 = vld [vmem:[%s10004_s1 + $0xe00] sm:$0xff]  ;;  %v57_v28 = vld [vmem:[%s10005_s0 + $0xf8] sm:$0xff] }
 0x10a   :  { %4840 = vmatprep.subr.mxu1 %v676_v29  ;;  %v4406_v39 = vpop.f32.mrf.mxu1  ;;  %v4369_v40 = vpop.f32.mrf.mxu0  ;;  %4803 = vmatpush3.msra.mxu0 %v628_v32  ;;  %v55_v25 = vld [vmem:[%s10005_s0 + $0xe8] sm:$0xff]  ;;  %v650_v26 = vld [vmem:[%s10004_s1 + $0xf00] sm:$0xff]  ;;  %v713_v29 = vld [vmem:[%s10004_s1 + $0x10f8] sm:$0xff] }
 0x10b   :  { %4841 = vmatpush3.msra.mxu1 %v660_v14  ;;  %v4370_v43 = vadd.f32 %v4369_v40, %v4368_v33  ;;  %4804 = vmatprep.subr.mxu0 %v643_v34  ;;  %v54_v27 = vld [vmem:[%s10005_s0 + $0xe0] sm:$0xff]  ;;  %v745_v31 = vld [vmem:[%s10004_s1 + $0x11f8] sm:$0xff]  ;;  %v56_v32 = vld [vmem:[%s10005_s0 + $0xf0] sm:$0xff] }
 0x10c   :  { %4842 = vmatprep.subr.mxu1 %v675_v35  ;;  %v4407_v46 = vpop.f32.mrf.mxu1  ;;  %4805 = vmatpush3.msra.mxu0 %v627_v37  ;;  %v697_v14 = vld [vmem:[%s10004_s1 + $0x1078] sm:$0xff]  ;;  %v712_v34 = vld [vmem:[%s10004_s1 + $0x10f0] sm:$0xff]  ;;  %v711_v40 = vld [vmem:[%s10004_s1 + $0x10e8] sm:$0xff] }
 0x10d   :  { %4843 = vmatpush3.msra.mxu1 %v659_v38  ;;  %v1546_v49 = vadd.f32 %v4370_v43, %v7162_v30  ;;  %v4408_v50 = vadd.f32 %v4407_v46, %v4406_v39  ;;  %4806 = vmatprep.subr.mxu0 %v642_v41  ;;  %v672_v30 = vld [vmem:[%s10004_s1 + $0xfb0] sm:$0xff]  ;;  %v729_v33 = vld [vmem:[%s10004_s1 + $0x1178] sm:$0xff]  ;;  %v126_v39 = vld [vmem:[%s10005_s0 + $0x320] sm:$0xff] }
 0x10e   :  { %4844 = vmatprep.subr.mxu1 %v674_v42  ;;  %v4371_v53 = vpop.f32.mrf.mxu0  ;;  %4807 = vmatpush3.msra.mxu0 %v626_v44  ;;  %v744_v35 = vld [vmem:[%s10004_s1 + $0x11f0] sm:$0xff]  ;;  %v743_v41 = vld [vmem:[%s10004_s1 + $0x11e8] sm:$0xff]  ;;  %v129_v42 = vld [vmem:[%s10005_s0 + $0x338] sm:$0xff] }
 0x10f   :  { %4845 = vmatpush3.msra.mxu1 %v658_v45  ;;  %v7382_v55 = vadd.f32 %v4408_v50, %v1546_v49  ;;  %4808 = vmatprep.subr.mxu0 %v641_v47  ;;  %v696_v37 = vld [vmem:[%s10004_s1 + $0x1070] sm:$0xff]  ;;  %v695_v43 = vld [vmem:[%s10004_s1 + $0x1068] sm:$0xff]  ;;  %v710_v45 = vld [vmem:[%s10004_s1 + $0x10e0] sm:$0xff] }
 0x110   :  { %4846 = vmatprep.subr.mxu1 %v673_v48  ;;  %v4372_v58 = vpop.f32.mrf.mxu0  ;;  %4809 = vmatpush3.msra.mxu0 %v625_v51  ;;  %v728_v38 = vld [vmem:[%s10004_s1 + $0x1170] sm:$0xff]  ;;  %v727_v44 = vld [vmem:[%s10004_s1 + $0x1168] sm:$0xff]  ;;  %v742_v47 = vld [vmem:[%s10004_s1 + $0x11e0] sm:$0xff] }
 0x111   :  { %4847 = vmatpush3.msra.mxu1 %v657_v52  ;;  %v4373_v61 = vadd.f32 %v4372_v58, %v4371_v53  ;;  %4810 = vmatprep.subr.mxu0 %v640_v54  ;;  %v4409_v0 = vpop.f32.mrf.mxu1  ;;  %v128_v46 = vld [vmem:[%s10005_s0 + $0x330] sm:$0xff]  ;;  %v694_v48 = vld [vmem:[%s10004_s1 + $0x1060] sm:$0xff]  ;;  %v709_v50 = vld [vmem:[%s10004_s1 + $0x10d8] sm:$0xff] }
 0x112   :  { %4848 = vmatprep.subr.mxu1 %v672_v30  ;;  %4811 = vmatpush3.msra.mxu0 %v624_v56  ;;  %v726_v49 = vld [vmem:[%s10004_s1 + $0x1160] sm:$0xff]  ;;  %v741_v51 = vld [vmem:[%s10004_s1 + $0x11d8] sm:$0xff]  ;;  %v708_v54 = vld [vmem:[%s10004_s1 + $0x10d0] sm:$0xff] }
 0x113   :  { %4849 = vmatpush3.msra.mxu1 %v656_v57  ;;  %v1551_v3 = vadd.f32 %v4373_v61, %v1476_v36  ;;  %4812 = vmatprep.subr.mxu0 %v639_v59  ;;  %v4410_v6 = vpop.f32.mrf.mxu1  ;;  %v127_v36 = vld [vmem:[%s10005_s0 + $0x328] sm:$0xff]  ;;  %v693_v52 = vld [vmem:[%s10004_s1 + $0x1058] sm:$0xff]  ;;  %v740_v30 = vld [vmem:[%s10004_s1 + $0x11d0] sm:$0xff] }
 0x114   :  { %4850 = vmatprep.subr.mxu1 %v671_v60  ;;  %4813 = vmatpush3.msra.mxu0 %v623_v62  ;;  %v4411_v9 = vadd.f32 %v4410_v6, %v4409_v0  ;;  %v725_v53 = vld [vmem:[%s10004_s1 + $0x1158] sm:$0xff]  ;;  %v692_v56 = vld [vmem:[%s10004_s1 + $0x1050] sm:$0xff]  ;;  %v707_v58 = vld [vmem:[%s10004_s1 + $0x10c8] sm:$0xff] }
 0x115   :  { %4851 = vmatpush3.msra.mxu1 %v655_v63  ;;  %4814 = vmatprep.subr.mxu0 %v638_v1  ;;  %v724_v57 = vld [vmem:[%s10004_s1 + $0x1150] sm:$0xff]  ;;  %v739_v59 = vld [vmem:[%s10004_s1 + $0x11c8] sm:$0xff]  ;;  %v706_v62 = vld [vmem:[%s10004_s1 + $0x10c0] sm:$0xff] }
 0x116   :  { %4852 = vmatprep.subr.mxu1 %v670_v2  ;;  %4815 = vmatpush3.msra.mxu0 %v622_v4  ;;  %v7432_v15 = vadd.f32 %v4411_v9, %v1551_v3  ;;  %v691_v60 = vld [vmem:[%s10004_s1 + $0x1048] sm:$0xff]  ;;  %v738_v63 = vld [vmem:[%s10004_s1 + $0x11c0] sm:$0xff]  ;;  %v705_v2 = vld [vmem:[%s10004_s1 + $0x10b8] sm:$0xff] }
 0x117   :  { %4853 = vmatpush3.msra.mxu1 %v654_v5  ;;  %4816 = vmatprep.subr.mxu0 %v637_v7  ;;  %v723_v61 = vld [vmem:[%s10004_s1 + $0x1148] sm:$0xff]  ;;  %v690_v0 = vld [vmem:[%s10004_s1 + $0x1040] sm:$0xff]  ;;  %v737_v3 = vld [vmem:[%s10004_s1 + $0x11b8] sm:$0xff] }
 0x118   :  { %4854 = vmatprep.subr.mxu1 %v669_v8  ;;  %4817 = vmatpush3.msra.mxu0 %v621_v10  ;;  %v722_v1 = vld [vmem:[%s10004_s1 + $0x1140] sm:$0xff]  ;;  %v689_v4 = vld [vmem:[%s10004_s1 + $0x1038] sm:$0xff]  ;;  %v704_v6 = vld [vmem:[%s10004_s1 + $0x10b0] sm:$0xff] }
 0x119   :  { %4855 = vmatpush3.msra.mxu1 %v653_v11  ;;  %4818 = vmatprep.subr.mxu0 %v636_v12  ;;  %v721_v5 = vld [vmem:[%s10004_s1 + $0x1138] sm:$0xff]  ;;  %v736_v7 = vld [vmem:[%s10004_s1 + $0x11b0] sm:$0xff]  ;;  %v703_v10 = vld [vmem:[%s10004_s1 + $0x10a8] sm:$0xff] }
 0x11a   :  { %4856 = vmatprep.subr.mxu1 %v668_v13  ;;  %4819 = vmatpush3.msra.mxu0 %v620_v16  ;;  %v688_v8 = vld [vmem:[%s10004_s1 + $0x1030] sm:$0xff]  ;;  %v735_v11 = vld [vmem:[%s10004_s1 + $0x11a8] sm:$0xff]  ;;  %v702_v16 = vld [vmem:[%s10004_s1 + $0x10a0] sm:$0xff] }
 0x11b   :  { %4857 = vmatpush3.msra.mxu1 %v652_v17  ;;  %4820 = vmatprep.subr.mxu0 %v635_v18  ;;  %v720_v9 = vld [vmem:[%s10004_s1 + $0x1130] sm:$0xff]  ;;  %v687_v12 = vld [vmem:[%s10004_s1 + $0x1028] sm:$0xff]  ;;  %v734_v17 = vld [vmem:[%s10004_s1 + $0x11a0] sm:$0xff] }
 0x11c   :  { %4858 = vmatprep.subr.mxu1 %v667_v19  ;;  %4821 = vmatpush3.msra.mxu0 %v619_v20  ;;  %v719_v13 = vld [vmem:[%s10004_s1 + $0x1128] sm:$0xff]  ;;  %v686_v18 = vld [vmem:[%s10004_s1 + $0x1020] sm:$0xff]  ;;  %v701_v20 = vld [vmem:[%s10004_s1 + $0x1098] sm:$0xff] }
 0x11d   :  { %4859 = vmatpush3.msra.mxu1 %v651_v21  ;;  %4822 = vmatprep.subr.mxu0 %v634_v22  ;;  %v718_v19 = vld [vmem:[%s10004_s1 + $0x1120] sm:$0xff]  ;;  %v733_v21 = vld [vmem:[%s10004_s1 + $0x1198] sm:$0xff] }
 0x11e   :  { %4860 = vmatprep.subr.mxu1 %v666_v23  ;;  %4823 = vmatpush3.msra.mxu0 %v618_v24  ;;  %v685_v22 = vld [vmem:[%s10004_s1 + $0x1018] sm:$0xff]  ;;  %v700_v24 = vld [vmem:[%s10004_s1 + $0x1090] sm:$0xff] }
 0x11f   :  { %2443 = vmatprep.mubr.f32.mxu0 %v55_v25  ;;  %4861 = vmatpush3.msra.mxu1 %v650_v26  ;;  %v717_v23 = vld [vmem:[%s10004_s1 + $0x1118] sm:$0xff]  ;;  %v732_v25 = vld [vmem:[%s10004_s1 + $0x1190] sm:$0xff] }
 0x120   :  { %2444 = vmatmul.mubr.f32.vlgmr.msra.gmra.mxu0 %v54_v27  ;;  %2518 = vmatprep.mubr.f32.mxu1 %v57_v28  ;;  %v684_v26 = vld [vmem:[%s10004_s1 + $0x1010] sm:$0xff]  ;;  %v699_v28 = vld [vmem:[%s10004_s1 + $0x1088] sm:$0xff] }
 0x121   :  { %4868 = vmatprep.subr.mxu0 %v713_v29  ;;  %4906 = vmatprep.subr.mxu1 %v745_v31  ;;  %v716_v27 = vld [vmem:[%s10004_s1 + $0x1110] sm:$0xff]  ;;  %v731_v29 = vld [vmem:[%s10004_s1 + $0x1188] sm:$0xff] }
 0x122   :  { %2519 = vmatmul.mubr.f32.vlgmr.msra.gmra.mxu1 %v56_v32  ;;  %4869 = vmatpush3.msra.mxu0 %v697_v14  ;;  %v683_v31 = vld [vmem:[%s10004_s1 + $0x1008] sm:$0xff]  ;;  %v698_v14 = vld [vmem:[%s10004_s1 + $0x1080] sm:$0xff] }
 0x123   :  { %4907 = vmatpush3.msra.mxu1 %v729_v33  ;;  %4870 = vmatprep.subr.mxu0 %v712_v34  ;;  %v715_v32 = vld [vmem:[%s10004_s1 + $0x1108] sm:$0xff]  ;;  %v730_v33 = vld [vmem:[%s10004_s1 + $0x1180] sm:$0xff] }
 0x124   :  { %4908 = vmatprep.subr.mxu1 %v744_v35  ;;  %2448 = vmatprep.mubr.f32.mxu0 %v127_v36  ;;  %v682_v34 = vld [vmem:[%s10004_s1 + $0x1000] sm:$0xff]  ;;  %v59_v35 = vld [vmem:[%s10005_s0 + $0x108] sm:$0xff] }
 0x125   :  { %4871 = vmatpush3.msra.mxu0 %v696_v37  ;;  %4909 = vmatpush3.msra.mxu1 %v728_v38  ;;  %v714_v36 = vld [vmem:[%s10004_s1 + $0x1100] sm:$0xff]  ;;  %v61_v38 = vld [vmem:[%s10005_s0 + $0x118] sm:$0xff] }
 0x126   :  { %2449 = vmatmul.mubr.f32.gmra.mxu0 %v126_v39  ;;  %4872 = vmatprep.subr.mxu0 %v711_v40  ;;  %v58_v37 = vld [vmem:[%s10005_s0 + $0x100] sm:$0xff]  ;;  %v777_v39 = vld [vmem:[%s10004_s1 + $0x12f8] sm:$0xff] }
 0x127   :  { %4910 = vmatprep.subr.mxu1 %v743_v41  ;;  %2523 = vmatprep.mubr.f32.mxu1 %v129_v42  ;;  %v809_v40 = vld [vmem:[%s10004_s1 + $0x13f8] sm:$0xff]  ;;  %v60_v41 = vld [vmem:[%s10005_s0 + $0x110] sm:$0xff] }
 0x128   :  { %4873 = vmatpush3.msra.mxu0 %v695_v43  ;;  %4911 = vmatpush3.msra.mxu1 %v727_v44  ;;  %v761_v42 = vld [vmem:[%s10004_s1 + $0x1278] sm:$0xff]  ;;  %v776_v44 = vld [vmem:[%s10004_s1 + $0x12f0] sm:$0xff] }
 0x129   :  { %4874 = vmatprep.subr.mxu0 %v710_v45  ;;  %2524 = vmatmul.mubr.f32.gmra.mxu1 %v128_v46  ;;  %v793_v43 = vld [vmem:[%s10004_s1 + $0x1378] sm:$0xff]  ;;  %v808_v45 = vld [vmem:[%s10004_s1 + $0x13f0] sm:$0xff]  ;;  %v131_v46 = vld [vmem:[%s10005_s0 + $0x348] sm:$0xff] }
 0x12a   :  { %4912 = vmatprep.subr.mxu1 %v742_v47  ;;  %4875 = vmatpush3.msra.mxu0 %v694_v48  ;;  %v760_v47 = vld [vmem:[%s10004_s1 + $0x1270] sm:$0xff] }
 0x12b   :  { %4913 = vmatpush3.msra.mxu1 %v726_v49  ;;  %4876 = vmatprep.subr.mxu0 %v709_v50  ;;  %v792_v48 = vld [vmem:[%s10004_s1 + $0x1370] sm:$0xff]  ;;  %v130_v49 = vld [vmem:[%s10005_s0 + $0x340] sm:$0xff]  ;;  %v775_v50 = vld [vmem:[%s10004_s1 + $0x12e8] sm:$0xff] }
 0x12c   :  { %4914 = vmatprep.subr.mxu1 %v741_v51  ;;  %4877 = vmatpush3.msra.mxu0 %v693_v52  ;;  %v807_v51 = vld [vmem:[%s10004_s1 + $0x13e8] sm:$0xff]  ;;  %v133_v52 = vld [vmem:[%s10005_s0 + $0x358] sm:$0xff] }
 0x12d   :  { %4915 = vmatpush3.msra.mxu1 %v725_v53  ;;  %4878 = vmatprep.subr.mxu0 %v708_v54  ;;  %v759_v53 = vld [vmem:[%s10004_s1 + $0x1268] sm:$0xff] }
 0x12e   :  { %4916 = vmatprep.subr.mxu1 %v740_v30  ;;  %4879 = vmatpush3.msra.mxu0 %v692_v56  ;;  %v791_v54 = vld [vmem:[%s10004_s1 + $0x1368] sm:$0xff]  ;;  %v774_v30 = vld [vmem:[%s10004_s1 + $0x12e0] sm:$0xff]  ;;  %v132_v56 = vld [vmem:[%s10005_s0 + $0x350] sm:$0xff] }
 0x12f   :  { %4917 = vmatpush3.msra.mxu1 %v724_v57  ;;  %4880 = vmatprep.subr.mxu0 %v707_v58  ;;  %v806_v57 = vld [vmem:[%s10004_s1 + $0x13e0] sm:$0xff] }
 0x130   :  { %4918 = vmatprep.subr.mxu1 %v739_v59  ;;  %4881 = vmatpush3.msra.mxu0 %v691_v60  ;;  %v758_v58 = vld [vmem:[%s10004_s1 + $0x1260] sm:$0xff]  ;;  %v773_v60 = vld [vmem:[%s10004_s1 + $0x12d8] sm:$0xff] }
 0x131   :  { %4919 = vmatpush3.msra.mxu1 %v723_v61  ;;  %4882 = vmatprep.subr.mxu0 %v706_v62  ;;  %v790_v59 = vld [vmem:[%s10004_s1 + $0x1360] sm:$0xff]  ;;  %v805_v61 = vld [vmem:[%s10004_s1 + $0x13d8] sm:$0xff] }
 0x132   :  { %4920 = vmatprep.subr.mxu1 %v738_v63  ;;  %4883 = vmatpush3.msra.mxu0 %v690_v0  ;;  %v757_v62 = vld [vmem:[%s10004_s1 + $0x1258] sm:$0xff]  ;;  %v772_v0 = vld [vmem:[%s10004_s1 + $0x12d0] sm:$0xff] }
 0x133   :  { %4921 = vmatpush3.msra.mxu1 %v722_v1  ;;  %4884 = vmatprep.subr.mxu0 %v705_v2  ;;  %v789_v63 = vld [vmem:[%s10004_s1 + $0x1358] sm:$0xff]  ;;  %v804_v1 = vld [vmem:[%s10004_s1 + $0x13d0] sm:$0xff] }
 0x134   :  { %4922 = vmatprep.subr.mxu1 %v737_v3  ;;  %4885 = vmatpush3.msra.mxu0 %v689_v4  ;;  %v756_v2 = vld [vmem:[%s10004_s1 + $0x1250] sm:$0xff]  ;;  %v771_v4 = vld [vmem:[%s10004_s1 + $0x12c8] sm:$0xff] }
 0x135   :  { %4923 = vmatpush3.msra.mxu1 %v721_v5  ;;  %4886 = vmatprep.subr.mxu0 %v704_v6  ;;  %v788_v3 = vld [vmem:[%s10004_s1 + $0x1350] sm:$0xff]  ;;  %v803_v5 = vld [vmem:[%s10004_s1 + $0x13c8] sm:$0xff] }
 0x136   :  { %4924 = vmatprep.subr.mxu1 %v736_v7  ;;  %4887 = vmatpush3.msra.mxu0 %v688_v8  ;;  %v755_v6 = vld [vmem:[%s10004_s1 + $0x1248] sm:$0xff]  ;;  %v770_v8 = vld [vmem:[%s10004_s1 + $0x12c0] sm:$0xff] }
 0x137   :  { %4925 = vmatpush3.msra.mxu1 %v720_v9  ;;  %4888 = vmatprep.subr.mxu0 %v703_v10  ;;  %v787_v7 = vld [vmem:[%s10004_s1 + $0x1348] sm:$0xff]  ;;  %v802_v9 = vld [vmem:[%s10004_s1 + $0x13c0] sm:$0xff] }
 0x138   :  { %4926 = vmatprep.subr.mxu1 %v735_v11  ;;  %4889 = vmatpush3.msra.mxu0 %v687_v12  ;;  %v754_v10 = vld [vmem:[%s10004_s1 + $0x1240] sm:$0xff]  ;;  %v769_v12 = vld [vmem:[%s10004_s1 + $0x12b8] sm:$0xff] }
 0x139   :  { %4927 = vmatpush3.msra.mxu1 %v719_v13  ;;  %4890 = vmatprep.subr.mxu0 %v702_v16  ;;  %v786_v11 = vld [vmem:[%s10004_s1 + $0x1340] sm:$0xff]  ;;  %v801_v13 = vld [vmem:[%s10004_s1 + $0x13b8] sm:$0xff] }
 0x13a   :  { %4928 = vmatprep.subr.mxu1 %v734_v17  ;;  %4891 = vmatpush3.msra.mxu0 %v686_v18  ;;  %v753_v16 = vld [vmem:[%s10004_s1 + $0x1238] sm:$0xff]  ;;  %v768_v18 = vld [vmem:[%s10004_s1 + $0x12b0] sm:$0xff] }
 0x13b   :  { %4929 = vmatpush3.msra.mxu1 %v718_v19  ;;  %4892 = vmatprep.subr.mxu0 %v701_v20  ;;  %v785_v17 = vld [vmem:[%s10004_s1 + $0x1338] sm:$0xff]  ;;  %v800_v19 = vld [vmem:[%s10004_s1 + $0x13b0] sm:$0xff] }
 0x13c   :  { %4930 = vmatprep.subr.mxu1 %v733_v21  ;;  %4893 = vmatpush3.msra.mxu0 %v685_v22  ;;  %v752_v20 = vld [vmem:[%s10004_s1 + $0x1230] sm:$0xff]  ;;  %v767_v22 = vld [vmem:[%s10004_s1 + $0x12a8] sm:$0xff] }
 0x13d   :  { %4931 = vmatpush3.msra.mxu1 %v717_v23  ;;  %4894 = vmatprep.subr.mxu0 %v700_v24  ;;  %v784_v21 = vld [vmem:[%s10004_s1 + $0x1330] sm:$0xff]  ;;  %v799_v23 = vld [vmem:[%s10004_s1 + $0x13a8] sm:$0xff] }
 0x13e   :  { %4932 = vmatprep.subr.mxu1 %v732_v25  ;;  %4895 = vmatpush3.msra.mxu0 %v684_v26  ;;  %v751_v24 = vld [vmem:[%s10004_s1 + $0x1228] sm:$0xff]  ;;  %v766_v26 = vld [vmem:[%s10004_s1 + $0x12a0] sm:$0xff] }
 0x13f   :  { %4933 = vmatpush3.msra.mxu1 %v716_v27  ;;  %4896 = vmatprep.subr.mxu0 %v699_v28  ;;  %v783_v25 = vld [vmem:[%s10004_s1 + $0x1328] sm:$0xff]  ;;  %v798_v27 = vld [vmem:[%s10004_s1 + $0x13a0] sm:$0xff] }
 0x140   :  { %4934 = vmatprep.subr.mxu1 %v731_v29  ;;  %4897 = vmatpush3.msra.mxu0 %v683_v31  ;;  %v750_v28 = vld [vmem:[%s10004_s1 + $0x1220] sm:$0xff]  ;;  %v765_v31 = vld [vmem:[%s10004_s1 + $0x1298] sm:$0xff] }
 0x141   :  { %4935 = vmatpush3.msra.mxu1 %v715_v32  ;;  %4898 = vmatprep.subr.mxu0 %v698_v14  ;;  %v782_v29 = vld [vmem:[%s10004_s1 + $0x1320] sm:$0xff]  ;;  %v797_v32 = vld [vmem:[%s10004_s1 + $0x1398] sm:$0xff] }
 0x142   :  { %4936 = vmatprep.subr.mxu1 %v730_v33  ;;  %4899 = vmatpush3.msra.mxu0 %v682_v34  ;;  %v749_v14 = vld [vmem:[%s10004_s1 + $0x1218] sm:$0xff]  ;;  %v764_v34 = vld [vmem:[%s10004_s1 + $0x1290] sm:$0xff] }
 0x143   :  { %2593 = vmatprep.mubr.f32.mxu0 %v59_v35  ;;  %4937 = vmatpush3.msra.mxu1 %v714_v36  ;;  %v781_v33 = vld [vmem:[%s10004_s1 + $0x1318] sm:$0xff]  ;;  %v796_v35 = vld [vmem:[%s10004_s1 + $0x1390] sm:$0xff] }
 0x144   :  { %2594 = vmatmul.mubr.f32.vlgmr.msra.gmra.mxu0 %v58_v37  ;;  %2668 = vmatprep.mubr.f32.mxu1 %v61_v38  ;;  %v748_v36 = vld [vmem:[%s10004_s1 + $0x1210] sm:$0xff]  ;;  %v763_v38 = vld [vmem:[%s10004_s1 + $0x1288] sm:$0xff] }
 0x145   :  { %4944 = vmatprep.subr.mxu0 %v777_v39  ;;  %4982 = vmatprep.subr.mxu1 %v809_v40  ;;  %v780_v37 = vld [vmem:[%s10004_s1 + $0x1310] sm:$0xff]  ;;  %v795_v39 = vld [vmem:[%s10004_s1 + $0x1388] sm:$0xff] }
 0x146   :  { %2669 = vmatmul.mubr.f32.vlgmr.msra.gmra.mxu1 %v60_v41  ;;  %4945 = vmatpush3.msra.mxu0 %v761_v42  ;;  %v747_v40 = vld [vmem:[%s10004_s1 + $0x1208] sm:$0xff]  ;;  %v762_v42 = vld [vmem:[%s10004_s1 + $0x1280] sm:$0xff] }
 0x147   :  { %4983 = vmatpush3.msra.mxu1 %v793_v43  ;;  %4946 = vmatprep.subr.mxu0 %v776_v44  ;;  %v779_v41 = vld [vmem:[%s10004_s1 + $0x1308] sm:$0xff]  ;;  %v794_v43 = vld [vmem:[%s10004_s1 + $0x1380] sm:$0xff] }
 0x148   :  { %4984 = vmatprep.subr.mxu1 %v808_v45  ;;  %2598 = vmatprep.mubr.f32.mxu0 %v131_v46  ;;  %v746_v44 = vld [vmem:[%s10004_s1 + $0x1200] sm:$0xff]  ;;  %v63_v45 = vld [vmem:[%s10005_s0 + $0x128] sm:$0xff] }
 0x149   :  { %4947 = vmatpush3.msra.mxu0 %v760_v47  ;;  %4985 = vmatpush3.msra.mxu1 %v792_v48  ;;  %v778_v46 = vld [vmem:[%s10004_s1 + $0x1300] sm:$0xff]  ;;  %v65_v48 = vld [vmem:[%s10005_s0 + $0x138] sm:$0xff] }
 0x14a   :  { %2599 = vmatmul.mubr.f32.gmra.mxu0 %v130_v49  ;;  %4948 = vmatprep.subr.mxu0 %v775_v50  ;;  %v62_v47 = vld [vmem:[%s10005_s0 + $0x120] sm:$0xff]  ;;  %v841_v49 = vld [vmem:[%s10004_s1 + $0x14f8] sm:$0xff] }
 0x14b   :  { %4986 = vmatprep.subr.mxu1 %v807_v51  ;;  %2673 = vmatprep.mubr.f32.mxu1 %v133_v52  ;;  %v873_v50 = vld [vmem:[%s10004_s1 + $0x15f8] sm:$0xff]  ;;  %v64_v51 = vld [vmem:[%s10005_s0 + $0x130] sm:$0xff] }
 0x14c   :  { %4949 = vmatpush3.msra.mxu0 %v759_v53  ;;  %4987 = vmatpush3.msra.mxu1 %v791_v54  ;;  %v825_v52 = vld [vmem:[%s10004_s1 + $0x1478] sm:$0xff]  ;;  %v840_v54 = vld [vmem:[%s10004_s1 + $0x14f0] sm:$0xff] }
 0x14d   :  { %4950 = vmatprep.subr.mxu0 %v774_v30  ;;  %2674 = vmatmul.mubr.f32.gmra.mxu1 %v132_v56  ;;  %v857_v53 = vld [vmem:[%s10004_s1 + $0x1578] sm:$0xff]  ;;  %v872_v30 = vld [vmem:[%s10004_s1 + $0x15f0] sm:$0xff]  ;;  %v135_v56 = vld [vmem:[%s10005_s0 + $0x368] sm:$0xff] }
 0x14e   :  { %4988 = vmatprep.subr.mxu1 %v806_v57  ;;  %4951 = vmatpush3.msra.mxu0 %v758_v58  ;;  %v824_v57 = vld [vmem:[%s10004_s1 + $0x1470] sm:$0xff] }
 0x14f   :  { %4989 = vmatpush3.msra.mxu1 %v790_v59  ;;  %4952 = vmatprep.subr.mxu0 %v773_v60  ;;  %v856_v58 = vld [vmem:[%s10004_s1 + $0x1570] sm:$0xff]  ;;  %v134_v59 = vld [vmem:[%s10005_s0 + $0x360] sm:$0xff]  ;;  %v839_v60 = vld [vmem:[%s10004_s1 + $0x14e8] sm:$0xff] }
 0x150   :  { %4990 = vmatprep.subr.mxu1 %v805_v61  ;;  %4953 = vmatpush3.msra.mxu0 %v757_v62  ;;  %v871_v61 = vld [vmem:[%s10004_s1 + $0x15e8] sm:$0xff]  ;;  %v137_v62 = vld [vmem:[%s10005_s0 + $0x378] sm:$0xff] }
 0x151   :  { %4991 = vmatpush3.msra.mxu1 %v789_v63  ;;  %4954 = vmatprep.subr.mxu0 %v772_v0  ;;  %v823_v63 = vld [vmem:[%s10004_s1 + $0x1468] sm:$0xff] }
 0x152   :  { %4992 = vmatprep.subr.mxu1 %v804_v1  ;;  %4955 = vmatpush3.msra.mxu0 %v756_v2  ;;  %v855_v0 = vld [vmem:[%s10004_s1 + $0x1568] sm:$0xff]  ;;  %v838_v1 = vld [vmem:[%s10004_s1 + $0x14e0] sm:$0xff]  ;;  %v136_v2 = vld [vmem:[%s10005_s0 + $0x370] sm:$0xff] }
 0x153   :  { %4993 = vmatpush3.msra.mxu1 %v788_v3  ;;  %4956 = vmatprep.subr.mxu0 %v771_v4  ;;  %v870_v3 = vld [vmem:[%s10004_s1 + $0x15e0] sm:$0xff] }
 0x154   :  { %4994 = vmatprep.subr.mxu1 %v803_v5  ;;  %4957 = vmatpush3.msra.mxu0 %v755_v6  ;;  %v822_v4 = vld [vmem:[%s10004_s1 + $0x1460] sm:$0xff]  ;;  %v837_v6 = vld [vmem:[%s10004_s1 + $0x14d8] sm:$0xff] }
 0x155   :  { %4995 = vmatpush3.msra.mxu1 %v787_v7  ;;  %4958 = vmatprep.subr.mxu0 %v770_v8  ;;  %v854_v5 = vld [vmem:[%s10004_s1 + $0x1560] sm:$0xff]  ;;  %v869_v7 = vld [vmem:[%s10004_s1 + $0x15d8] sm:$0xff] }
 0x156   :  { %4996 = vmatprep.subr.mxu1 %v802_v9  ;;  %4959 = vmatpush3.msra.mxu0 %v754_v10  ;;  %v821_v8 = vld [vmem:[%s10004_s1 + $0x1458] sm:$0xff]  ;;  %v836_v10 = vld [vmem:[%s10004_s1 + $0x14d0] sm:$0xff] }
 0x157   :  { %4997 = vmatpush3.msra.mxu1 %v786_v11  ;;  %4960 = vmatprep.subr.mxu0 %v769_v12  ;;  %v853_v9 = vld [vmem:[%s10004_s1 + $0x1558] sm:$0xff]  ;;  %v868_v11 = vld [vmem:[%s10004_s1 + $0x15d0] sm:$0xff] }
 0x158   :  { %4998 = vmatprep.subr.mxu1 %v801_v13  ;;  %4961 = vmatpush3.msra.mxu0 %v753_v16  ;;  %v820_v12 = vld [vmem:[%s10004_s1 + $0x1450] sm:$0xff]  ;;  %v835_v16 = vld [vmem:[%s10004_s1 + $0x14c8] sm:$0xff] }
 0x159   :  { %4999 = vmatpush3.msra.mxu1 %v785_v17  ;;  %4962 = vmatprep.subr.mxu0 %v768_v18  ;;  %v852_v13 = vld [vmem:[%s10004_s1 + $0x1550] sm:$0xff]  ;;  %v867_v17 = vld [vmem:[%s10004_s1 + $0x15c8] sm:$0xff] }
 0x15a   :  { %5000 = vmatprep.subr.mxu1 %v800_v19  ;;  %4963 = vmatpush3.msra.mxu0 %v752_v20  ;;  %v819_v18 = vld [vmem:[%s10004_s1 + $0x1448] sm:$0xff]  ;;  %v834_v20 = vld [vmem:[%s10004_s1 + $0x14c0] sm:$0xff] }
 0x15b   :  { %5001 = vmatpush3.msra.mxu1 %v784_v21  ;;  %4964 = vmatprep.subr.mxu0 %v767_v22  ;;  %v851_v19 = vld [vmem:[%s10004_s1 + $0x1548] sm:$0xff]  ;;  %v866_v21 = vld [vmem:[%s10004_s1 + $0x15c0] sm:$0xff] }
 0x15c   :  { %5002 = vmatprep.subr.mxu1 %v799_v23  ;;  %4965 = vmatpush3.msra.mxu0 %v751_v24  ;;  %v818_v22 = vld [vmem:[%s10004_s1 + $0x1440] sm:$0xff]  ;;  %v833_v24 = vld [vmem:[%s10004_s1 + $0x14b8] sm:$0xff] }
 0x15d   :  { %5003 = vmatpush3.msra.mxu1 %v783_v25  ;;  %4966 = vmatprep.subr.mxu0 %v766_v26  ;;  %v850_v23 = vld [vmem:[%s10004_s1 + $0x1540] sm:$0xff]  ;;  %v865_v25 = vld [vmem:[%s10004_s1 + $0x15b8] sm:$0xff] }
 0x15e   :  { %5004 = vmatprep.subr.mxu1 %v798_v27  ;;  %4967 = vmatpush3.msra.mxu0 %v750_v28  ;;  %v817_v26 = vld [vmem:[%s10004_s1 + $0x1438] sm:$0xff]  ;;  %v832_v28 = vld [vmem:[%s10004_s1 + $0x14b0] sm:$0xff] }
 0x15f   :  { %5005 = vmatpush3.msra.mxu1 %v782_v29  ;;  %4968 = vmatprep.subr.mxu0 %v765_v31  ;;  %v849_v27 = vld [vmem:[%s10004_s1 + $0x1538] sm:$0xff]  ;;  %v864_v29 = vld [vmem:[%s10004_s1 + $0x15b0] sm:$0xff] }
 0x160   :  { %5006 = vmatprep.subr.mxu1 %v797_v32  ;;  %4969 = vmatpush3.msra.mxu0 %v749_v14  ;;  %v816_v31 = vld [vmem:[%s10004_s1 + $0x1430] sm:$0xff]  ;;  %v831_v14 = vld [vmem:[%s10004_s1 + $0x14a8] sm:$0xff] }
 0x161   :  { %5007 = vmatpush3.msra.mxu1 %v781_v33  ;;  %4970 = vmatprep.subr.mxu0 %v764_v34  ;;  %v848_v32 = vld [vmem:[%s10004_s1 + $0x1530] sm:$0xff]  ;;  %v863_v33 = vld [vmem:[%s10004_s1 + $0x15a8] sm:$0xff] }
 0x162   :  { %5008 = vmatprep.subr.mxu1 %v796_v35  ;;  %4971 = vmatpush3.msra.mxu0 %v748_v36  ;;  %v815_v34 = vld [vmem:[%s10004_s1 + $0x1428] sm:$0xff]  ;;  %v830_v36 = vld [vmem:[%s10004_s1 + $0x14a0] sm:$0xff] }
 0x163   :  { %5009 = vmatpush3.msra.mxu1 %v780_v37  ;;  %4972 = vmatprep.subr.mxu0 %v763_v38  ;;  %v847_v35 = vld [vmem:[%s10004_s1 + $0x1528] sm:$0xff]  ;;  %v862_v37 = vld [vmem:[%s10004_s1 + $0x15a0] sm:$0xff] }
 0x164   :  { %5010 = vmatprep.subr.mxu1 %v795_v39  ;;  %4973 = vmatpush3.msra.mxu0 %v747_v40  ;;  %v814_v38 = vld [vmem:[%s10004_s1 + $0x1420] sm:$0xff]  ;;  %v829_v40 = vld [vmem:[%s10004_s1 + $0x1498] sm:$0xff] }
 0x165   :  { %5011 = vmatpush3.msra.mxu1 %v779_v41  ;;  %4974 = vmatprep.subr.mxu0 %v762_v42  ;;  %v846_v39 = vld [vmem:[%s10004_s1 + $0x1520] sm:$0xff]  ;;  %v861_v41 = vld [vmem:[%s10004_s1 + $0x1598] sm:$0xff] }
 0x166   :  { %5012 = vmatprep.subr.mxu1 %v794_v43  ;;  %4975 = vmatpush3.msra.mxu0 %v746_v44  ;;  %v813_v42 = vld [vmem:[%s10004_s1 + $0x1418] sm:$0xff]  ;;  %v828_v44 = vld [vmem:[%s10004_s1 + $0x1490] sm:$0xff] }
 0x167   :  { %2743 = vmatprep.mubr.f32.mxu0 %v63_v45  ;;  %5013 = vmatpush3.msra.mxu1 %v778_v46  ;;  %v845_v43 = vld [vmem:[%s10004_s1 + $0x1518] sm:$0xff]  ;;  %v860_v45 = vld [vmem:[%s10004_s1 + $0x1590] sm:$0xff] }
 0x168   :  { %2744 = vmatmul.mubr.f32.vlgmr.msra.gmra.mxu0 %v62_v47  ;;  %2818 = vmatprep.mubr.f32.mxu1 %v65_v48  ;;  %v812_v46 = vld [vmem:[%s10004_s1 + $0x1410] sm:$0xff]  ;;  %v827_v48 = vld [vmem:[%s10004_s1 + $0x1488] sm:$0xff] }
 0x169   :  { %5020 = vmatprep.subr.mxu0 %v841_v49  ;;  %5058 = vmatprep.subr.mxu1 %v873_v50  ;;  %v844_v47 = vld [vmem:[%s10004_s1 + $0x1510] sm:$0xff]  ;;  %v859_v49 = vld [vmem:[%s10004_s1 + $0x1588] sm:$0xff] }
 0x16a   :  { %2819 = vmatmul.mubr.f32.vlgmr.msra.gmra.mxu1 %v64_v51  ;;  %5021 = vmatpush3.msra.mxu0 %v825_v52  ;;  %v811_v50 = vld [vmem:[%s10004_s1 + $0x1408] sm:$0xff]  ;;  %v826_v52 = vld [vmem:[%s10004_s1 + $0x1480] sm:$0xff] }
 0x16b   :  { %5059 = vmatpush3.msra.mxu1 %v857_v53  ;;  %5022 = vmatprep.subr.mxu0 %v840_v54  ;;  %v843_v51 = vld [vmem:[%s10004_s1 + $0x1508] sm:$0xff]  ;;  %v858_v53 = vld [vmem:[%s10004_s1 + $0x1580] sm:$0xff] }
 0x16c   :  { %5060 = vmatprep.subr.mxu1 %v872_v30  ;;  %2748 = vmatprep.mubr.f32.mxu0 %v135_v56  ;;  %v810_v54 = vld [vmem:[%s10004_s1 + $0x1400] sm:$0xff]  ;;  %v67_v30 = vld [vmem:[%s10005_s0 + $0x148] sm:$0xff] }
 0x16d   :  { %5023 = vmatpush3.msra.mxu0 %v824_v57  ;;  %5061 = vmatpush3.msra.mxu1 %v856_v58  ;;  %v842_v56 = vld [vmem:[%s10004_s1 + $0x1500] sm:$0xff]  ;;  %v69_v58 = vld [vmem:[%s10005_s0 + $0x158] sm:$0xff] }
 0x16e   :  { %2749 = vmatmul.mubr.f32.gmra.mxu0 %v134_v59  ;;  %5024 = vmatprep.subr.mxu0 %v839_v60  ;;  %v66_v57 = vld [vmem:[%s10005_s0 + $0x140] sm:$0xff]  ;;  %v905_v59 = vld [vmem:[%s10004_s1 + $0x16f8] sm:$0xff] }
 0x16f   :  { %5062 = vmatprep.subr.mxu1 %v871_v61  ;;  %2823 = vmatprep.mubr.f32.mxu1 %v137_v62  ;;  %v937_v60 = vld [vmem:[%s10004_s1 + $0x17f8] sm:$0xff]  ;;  %v68_v61 = vld [vmem:[%s10005_s0 + $0x150] sm:$0xff] }
 0x170   :  { %5025 = vmatpush3.msra.mxu0 %v823_v63  ;;  %5063 = vmatpush3.msra.mxu1 %v855_v0  ;;  %v889_v62 = vld [vmem:[%s10004_s1 + $0x1678] sm:$0xff]  ;;  %v904_v0 = vld [vmem:[%s10004_s1 + $0x16f0] sm:$0xff] }
 0x171   :  { %5026 = vmatprep.subr.mxu0 %v838_v1  ;;  %2824 = vmatmul.mubr.f32.gmra.mxu1 %v136_v2  ;;  %v921_v63 = vld [vmem:[%s10004_s1 + $0x1778] sm:$0xff]  ;;  %v936_v1 = vld [vmem:[%s10004_s1 + $0x17f0] sm:$0xff]  ;;  %v139_v2 = vld [vmem:[%s10005_s0 + $0x388] sm:$0xff] }
 0x172   :  { %5064 = vmatprep.subr.mxu1 %v870_v3  ;;  %5027 = vmatpush3.msra.mxu0 %v822_v4  ;;  %v888_v3 = vld [vmem:[%s10004_s1 + $0x1670] sm:$0xff] }
 0x173   :  { %5065 = vmatpush3.msra.mxu1 %v854_v5  ;;  %5028 = vmatprep.subr.mxu0 %v837_v6  ;;  %v920_v4 = vld [vmem:[%s10004_s1 + $0x1770] sm:$0xff]  ;;  %v138_v5 = vld [vmem:[%s10005_s0 + $0x380] sm:$0xff]  ;;  %v903_v6 = vld [vmem:[%s10004_s1 + $0x16e8] sm:$0xff] }
 0x174   :  { %5066 = vmatprep.subr.mxu1 %v869_v7  ;;  %5029 = vmatpush3.msra.mxu0 %v821_v8  ;;  %v935_v7 = vld [vmem:[%s10004_s1 + $0x17e8] sm:$0xff]  ;;  %v141_v8 = vld [vmem:[%s10005_s0 + $0x398] sm:$0xff] }
 0x175   :  { %5067 = vmatpush3.msra.mxu1 %v853_v9  ;;  %5030 = vmatprep.subr.mxu0 %v836_v10  ;;  %v887_v9 = vld [vmem:[%s10004_s1 + $0x1668] sm:$0xff] }
 0x176   :  { %5068 = vmatprep.subr.mxu1 %v868_v11  ;;  %5031 = vmatpush3.msra.mxu0 %v820_v12  ;;  %v919_v10 = vld [vmem:[%s10004_s1 + $0x1768] sm:$0xff]  ;;  %v902_v11 = vld [vmem:[%s10004_s1 + $0x16e0] sm:$0xff]  ;;  %v140_v12 = vld [vmem:[%s10005_s0 + $0x390] sm:$0xff] }
 0x177   :  { %5069 = vmatpush3.msra.mxu1 %v852_v13  ;;  %5032 = vmatprep.subr.mxu0 %v835_v16  ;;  %v934_v13 = vld [vmem:[%s10004_s1 + $0x17e0] sm:$0xff] }
 0x178   :  { %5070 = vmatprep.subr.mxu1 %v867_v17  ;;  %5033 = vmatpush3.msra.mxu0 %v819_v18  ;;  %v886_v16 = vld [vmem:[%s10004_s1 + $0x1660] sm:$0xff]  ;;  %v901_v18 = vld [vmem:[%s10004_s1 + $0x16d8] sm:$0xff] }
 0x179   :  { %5071 = vmatpush3.msra.mxu1 %v851_v19  ;;  %5034 = vmatprep.subr.mxu0 %v834_v20  ;;  %v918_v17 = vld [vmem:[%s10004_s1 + $0x1760] sm:$0xff]  ;;  %v933_v19 = vld [vmem:[%s10004_s1 + $0x17d8] sm:$0xff] }
 0x17a   :  { %5072 = vmatprep.subr.mxu1 %v866_v21  ;;  %5035 = vmatpush3.msra.mxu0 %v818_v22  ;;  %v885_v20 = vld [vmem:[%s10004_s1 + $0x1658] sm:$0xff]  ;;  %v900_v22 = vld [vmem:[%s10004_s1 + $0x16d0] sm:$0xff] }
 0x17b   :  { %5073 = vmatpush3.msra.mxu1 %v850_v23  ;;  %5036 = vmatprep.subr.mxu0 %v833_v24  ;;  %v917_v21 = vld [vmem:[%s10004_s1 + $0x1758] sm:$0xff]  ;;  %v932_v23 = vld [vmem:[%s10004_s1 + $0x17d0] sm:$0xff] }
 0x17c   :  { %5074 = vmatprep.subr.mxu1 %v865_v25  ;;  %5037 = vmatpush3.msra.mxu0 %v817_v26  ;;  %v884_v24 = vld [vmem:[%s10004_s1 + $0x1650] sm:$0xff]  ;;  %v899_v26 = vld [vmem:[%s10004_s1 + $0x16c8] sm:$0xff] }
 0x17d   :  { %5075 = vmatpush3.msra.mxu1 %v849_v27  ;;  %5038 = vmatprep.subr.mxu0 %v832_v28  ;;  %v916_v25 = vld [vmem:[%s10004_s1 + $0x1750] sm:$0xff]  ;;  %v931_v27 = vld [vmem:[%s10004_s1 + $0x17c8] sm:$0xff] }
 0x17e   :  { %5076 = vmatprep.subr.mxu1 %v864_v29  ;;  %5039 = vmatpush3.msra.mxu0 %v816_v31  ;;  %v883_v28 = vld [vmem:[%s10004_s1 + $0x1648] sm:$0xff]  ;;  %v898_v31 = vld [vmem:[%s10004_s1 + $0x16c0] sm:$0xff] }
 0x17f   :  { %5077 = vmatpush3.msra.mxu1 %v848_v32  ;;  %5040 = vmatprep.subr.mxu0 %v831_v14  ;;  %v915_v29 = vld [vmem:[%s10004_s1 + $0x1748] sm:$0xff]  ;;  %v930_v32 = vld [vmem:[%s10004_s1 + $0x17c0] sm:$0xff] }
 0x180   :  { %5078 = vmatprep.subr.mxu1 %v863_v33  ;;  %5041 = vmatpush3.msra.mxu0 %v815_v34  ;;  %v882_v14 = vld [vmem:[%s10004_s1 + $0x1640] sm:$0xff]  ;;  %v897_v34 = vld [vmem:[%s10004_s1 + $0x16b8] sm:$0xff] }
 0x181   :  { %5079 = vmatpush3.msra.mxu1 %v847_v35  ;;  %5042 = vmatprep.subr.mxu0 %v830_v36  ;;  %v914_v33 = vld [vmem:[%s10004_s1 + $0x1740] sm:$0xff]  ;;  %v929_v35 = vld [vmem:[%s10004_s1 + $0x17b8] sm:$0xff] }
 0x182   :  { %5080 = vmatprep.subr.mxu1 %v862_v37  ;;  %5043 = vmatpush3.msra.mxu0 %v814_v38  ;;  %v881_v36 = vld [vmem:[%s10004_s1 + $0x1638] sm:$0xff]  ;;  %v896_v38 = vld [vmem:[%s10004_s1 + $0x16b0] sm:$0xff] }
 0x183   :  { %5081 = vmatpush3.msra.mxu1 %v846_v39  ;;  %5044 = vmatprep.subr.mxu0 %v829_v40  ;;  %v913_v37 = vld [vmem:[%s10004_s1 + $0x1738] sm:$0xff]  ;;  %v928_v39 = vld [vmem:[%s10004_s1 + $0x17b0] sm:$0xff] }
 0x184   :  { %5082 = vmatprep.subr.mxu1 %v861_v41  ;;  %5045 = vmatpush3.msra.mxu0 %v813_v42  ;;  %v880_v40 = vld [vmem:[%s10004_s1 + $0x1630] sm:$0xff]  ;;  %v895_v42 = vld [vmem:[%s10004_s1 + $0x16a8] sm:$0xff] }
 0x185   :  { %5083 = vmatpush3.msra.mxu1 %v845_v43  ;;  %5046 = vmatprep.subr.mxu0 %v828_v44  ;;  %v912_v41 = vld [vmem:[%s10004_s1 + $0x1730] sm:$0xff]  ;;  %v927_v43 = vld [vmem:[%s10004_s1 + $0x17a8] sm:$0xff] }
 0x186   :  { %5084 = vmatprep.subr.mxu1 %v860_v45  ;;  %5047 = vmatpush3.msra.mxu0 %v812_v46  ;;  %v879_v44 = vld [vmem:[%s10004_s1 + $0x1628] sm:$0xff]  ;;  %v894_v46 = vld [vmem:[%s10004_s1 + $0x16a0] sm:$0xff] }
 0x187   :  { %5085 = vmatpush3.msra.mxu1 %v844_v47  ;;  %5048 = vmatprep.subr.mxu0 %v827_v48  ;;  %v911_v45 = vld [vmem:[%s10004_s1 + $0x1728] sm:$0xff]  ;;  %v926_v47 = vld [vmem:[%s10004_s1 + $0x17a0] sm:$0xff] }
 0x188   :  { %5086 = vmatprep.subr.mxu1 %v859_v49  ;;  %5049 = vmatpush3.msra.mxu0 %v811_v50  ;;  %v878_v48 = vld [vmem:[%s10004_s1 + $0x1620] sm:$0xff]  ;;  %v893_v50 = vld [vmem:[%s10004_s1 + $0x1698] sm:$0xff] }
 0x189   :  { %5087 = vmatpush3.msra.mxu1 %v843_v51  ;;  %5050 = vmatprep.subr.mxu0 %v826_v52  ;;  %v910_v49 = vld [vmem:[%s10004_s1 + $0x1720] sm:$0xff]  ;;  %v925_v51 = vld [vmem:[%s10004_s1 + $0x1798] sm:$0xff] }
 0x18a   :  { %5088 = vmatprep.subr.mxu1 %v858_v53  ;;  %5051 = vmatpush3.msra.mxu0 %v810_v54  ;;  %v877_v52 = vld [vmem:[%s10004_s1 + $0x1618] sm:$0xff]  ;;  %v892_v54 = vld [vmem:[%s10004_s1 + $0x1690] sm:$0xff] }
 0x18b   :  { %2893 = vmatprep.mubr.f32.mxu0 %v67_v30  ;;  %5089 = vmatpush3.msra.mxu1 %v842_v56  ;;  %v909_v53 = vld [vmem:[%s10004_s1 + $0x1718] sm:$0xff]  ;;  %v924_v30 = vld [vmem:[%s10004_s1 + $0x1790] sm:$0xff] }
 0x18c   :  { %2894 = vmatmul.mubr.f32.vlgmr.msra.gmra.mxu0 %v66_v57  ;;  %2968 = vmatprep.mubr.f32.mxu1 %v69_v58  ;;  %v876_v56 = vld [vmem:[%s10004_s1 + $0x1610] sm:$0xff]  ;;  %v891_v58 = vld [vmem:[%s10004_s1 + $0x1688] sm:$0xff] }
 0x18d   :  { %5096 = vmatprep.subr.mxu0 %v905_v59  ;;  %5134 = vmatprep.subr.mxu1 %v937_v60  ;;  %v908_v57 = vld [vmem:[%s10004_s1 + $0x1710] sm:$0xff]  ;;  %v923_v59 = vld [vmem:[%s10004_s1 + $0x1788] sm:$0xff] }
 0x18e   :  { %2969 = vmatmul.mubr.f32.vlgmr.msra.gmra.mxu1 %v68_v61  ;;  %5097 = vmatpush3.msra.mxu0 %v889_v62  ;;  %v875_v60 = vld [vmem:[%s10004_s1 + $0x1608] sm:$0xff]  ;;  %v890_v62 = vld [vmem:[%s10004_s1 + $0x1680] sm:$0xff] }
 0x18f   :  { %5135 = vmatpush3.msra.mxu1 %v921_v63  ;;  %5098 = vmatprep.subr.mxu0 %v904_v0  ;;  %v907_v61 = vld [vmem:[%s10004_s1 + $0x1708] sm:$0xff]  ;;  %v922_v63 = vld [vmem:[%s10004_s1 + $0x1780] sm:$0xff] }
 0x190   :  { %5136 = vmatprep.subr.mxu1 %v936_v1  ;;  %2898 = vmatprep.mubr.f32.mxu0 %v139_v2  ;;  %v874_v0 = vld [vmem:[%s10004_s1 + $0x1600] sm:$0xff]  ;;  %v71_v1 = vld [vmem:[%s10005_s0 + $0x168] sm:$0xff] }
 0x191   :  { %5099 = vmatpush3.msra.mxu0 %v888_v3  ;;  %5137 = vmatpush3.msra.mxu1 %v920_v4  ;;  %v906_v2 = vld [vmem:[%s10004_s1 + $0x1700] sm:$0xff]  ;;  %v73_v4 = vld [vmem:[%s10005_s0 + $0x178] sm:$0xff] }
 0x192   :  { %2899 = vmatmul.mubr.f32.gmra.mxu0 %v138_v5  ;;  %5100 = vmatprep.subr.mxu0 %v903_v6  ;;  %v70_v3 = vld [vmem:[%s10005_s0 + $0x160] sm:$0xff]  ;;  %v969_v5 = vld [vmem:[%s10004_s1 + $0x18f8] sm:$0xff] }
 0x193   :  { %5138 = vmatprep.subr.mxu1 %v935_v7  ;;  %2973 = vmatprep.mubr.f32.mxu1 %v141_v8  ;;  %v1001_v6 = vld [vmem:[%s10004_s1 + $0x19f8] sm:$0xff]  ;;  %v72_v7 = vld [vmem:[%s10005_s0 + $0x170] sm:$0xff] }
 0x194   :  { %5101 = vmatpush3.msra.mxu0 %v887_v9  ;;  %5139 = vmatpush3.msra.mxu1 %v919_v10  ;;  %v953_v8 = vld [vmem:[%s10004_s1 + $0x1878] sm:$0xff]  ;;  %v968_v10 = vld [vmem:[%s10004_s1 + $0x18f0] sm:$0xff] }
 0x195   :  { %5102 = vmatprep.subr.mxu0 %v902_v11  ;;  %2974 = vmatmul.mubr.f32.gmra.mxu1 %v140_v12  ;;  %v985_v9 = vld [vmem:[%s10004_s1 + $0x1978] sm:$0xff]  ;;  %v1000_v11 = vld [vmem:[%s10004_s1 + $0x19f0] sm:$0xff]  ;;  %v143_v12 = vld [vmem:[%s10005_s0 + $0x3a8] sm:$0xff] }
 0x196   :  { %5140 = vmatprep.subr.mxu1 %v934_v13  ;;  %5103 = vmatpush3.msra.mxu0 %v886_v16  ;;  %v952_v13 = vld [vmem:[%s10004_s1 + $0x1870] sm:$0xff] }
 0x197   :  { %5141 = vmatpush3.msra.mxu1 %v918_v17  ;;  %5104 = vmatprep.subr.mxu0 %v901_v18  ;;  %v984_v16 = vld [vmem:[%s10004_s1 + $0x1970] sm:$0xff]  ;;  %v142_v17 = vld [vmem:[%s10005_s0 + $0x3a0] sm:$0xff]  ;;  %v967_v18 = vld [vmem:[%s10004_s1 + $0x18e8] sm:$0xff] }
 0x198   :  { %5142 = vmatprep.subr.mxu1 %v933_v19  ;;  %5105 = vmatpush3.msra.mxu0 %v885_v20  ;;  %v999_v19 = vld [vmem:[%s10004_s1 + $0x19e8] sm:$0xff]  ;;  %v145_v20 = vld [vmem:[%s10005_s0 + $0x3b8] sm:$0xff] }
 0x199   :  { %5143 = vmatpush3.msra.mxu1 %v917_v21  ;;  %5106 = vmatprep.subr.mxu0 %v900_v22  ;;  %v951_v21 = vld [vmem:[%s10004_s1 + $0x1868] sm:$0xff] }
 0x19a   :  { %5144 = vmatprep.subr.mxu1 %v932_v23  ;;  %5107 = vmatpush3.msra.mxu0 %v884_v24  ;;  %v983_v22 = vld [vmem:[%s10004_s1 + $0x1968] sm:$0xff]  ;;  %v966_v23 = vld [vmem:[%s10004_s1 + $0x18e0] sm:$0xff]  ;;  %v144_v24 = vld [vmem:[%s10005_s0 + $0x3b0] sm:$0xff] }
 0x19b   :  { %5145 = vmatpush3.msra.mxu1 %v916_v25  ;;  %5108 = vmatprep.subr.mxu0 %v899_v26  ;;  %v998_v25 = vld [vmem:[%s10004_s1 + $0x19e0] sm:$0xff] }
 0x19c   :  { %5146 = vmatprep.subr.mxu1 %v931_v27  ;;  %5109 = vmatpush3.msra.mxu0 %v883_v28  ;;  %v950_v26 = vld [vmem:[%s10004_s1 + $0x1860] sm:$0xff]  ;;  %v965_v28 = vld [vmem:[%s10004_s1 + $0x18d8] sm:$0xff] }
 0x19d   :  { %5147 = vmatpush3.msra.mxu1 %v915_v29  ;;  %5110 = vmatprep.subr.mxu0 %v898_v31  ;;  %v982_v27 = vld [vmem:[%s10004_s1 + $0x1960] sm:$0xff]  ;;  %v997_v29 = vld [vmem:[%s10004_s1 + $0x19d8] sm:$0xff] }
 0x19e   :  { %5148 = vmatprep.subr.mxu1 %v930_v32  ;;  %5111 = vmatpush3.msra.mxu0 %v882_v14  ;;  %v949_v31 = vld [vmem:[%s10004_s1 + $0x1858] sm:$0xff]  ;;  %v964_v14 = vld [vmem:[%s10004_s1 + $0x18d0] sm:$0xff] }
 0x19f   :  { %5149 = vmatpush3.msra.mxu1 %v914_v33  ;;  %5112 = vmatprep.subr.mxu0 %v897_v34  ;;  %v981_v32 = vld [vmem:[%s10004_s1 + $0x1958] sm:$0xff]  ;;  %v996_v33 = vld [vmem:[%s10004_s1 + $0x19d0] sm:$0xff] }
 0x1a0   :  { %5150 = vmatprep.subr.mxu1 %v929_v35  ;;  %5113 = vmatpush3.msra.mxu0 %v881_v36  ;;  %v948_v34 = vld [vmem:[%s10004_s1 + $0x1850] sm:$0xff]  ;;  %v963_v36 = vld [vmem:[%s10004_s1 + $0x18c8] sm:$0xff] }
 0x1a1   :  { %5151 = vmatpush3.msra.mxu1 %v913_v37  ;;  %5114 = vmatprep.subr.mxu0 %v896_v38  ;;  %v980_v35 = vld [vmem:[%s10004_s1 + $0x1950] sm:$0xff]  ;;  %v995_v37 = vld [vmem:[%s10004_s1 + $0x19c8] sm:$0xff] }
 0x1a2   :  { %5152 = vmatprep.subr.mxu1 %v928_v39  ;;  %5115 = vmatpush3.msra.mxu0 %v880_v40  ;;  %v947_v38 = vld [vmem:[%s10004_s1 + $0x1848] sm:$0xff]  ;;  %v962_v40 = vld [vmem:[%s10004_s1 + $0x18c0] sm:$0xff] }
 0x1a3   :  { %5153 = vmatpush3.msra.mxu1 %v912_v41  ;;  %5116 = vmatprep.subr.mxu0 %v895_v42  ;;  %v979_v39 = vld [vmem:[%s10004_s1 + $0x1948] sm:$0xff]  ;;  %v994_v41 = vld [vmem:[%s10004_s1 + $0x19c0] sm:$0xff] }
 0x1a4   :  { %5154 = vmatprep.subr.mxu1 %v927_v43  ;;  %5117 = vmatpush3.msra.mxu0 %v879_v44  ;;  %v946_v42 = vld [vmem:[%s10004_s1 + $0x1840] sm:$0xff]  ;;  %v961_v44 = vld [vmem:[%s10004_s1 + $0x18b8] sm:$0xff] }
 0x1a5   :  { %5155 = vmatpush3.msra.mxu1 %v911_v45  ;;  %5118 = vmatprep.subr.mxu0 %v894_v46  ;;  %v978_v43 = vld [vmem:[%s10004_s1 + $0x1940] sm:$0xff]  ;;  %v993_v45 = vld [vmem:[%s10004_s1 + $0x19b8] sm:$0xff] }
 0x1a6   :  { %5156 = vmatprep.subr.mxu1 %v926_v47  ;;  %5119 = vmatpush3.msra.mxu0 %v878_v48  ;;  %v945_v46 = vld [vmem:[%s10004_s1 + $0x1838] sm:$0xff]  ;;  %v960_v48 = vld [vmem:[%s10004_s1 + $0x18b0] sm:$0xff] }
 0x1a7   :  { %5157 = vmatpush3.msra.mxu1 %v910_v49  ;;  %5120 = vmatprep.subr.mxu0 %v893_v50  ;;  %v977_v47 = vld [vmem:[%s10004_s1 + $0x1938] sm:$0xff]  ;;  %v992_v49 = vld [vmem:[%s10004_s1 + $0x19b0] sm:$0xff] }
 0x1a8   :  { %5158 = vmatprep.subr.mxu1 %v925_v51  ;;  %5121 = vmatpush3.msra.mxu0 %v877_v52  ;;  %v944_v50 = vld [vmem:[%s10004_s1 + $0x1830] sm:$0xff]  ;;  %v959_v52 = vld [vmem:[%s10004_s1 + $0x18a8] sm:$0xff] }
 0x1a9   :  { %5159 = vmatpush3.msra.mxu1 %v909_v53  ;;  %5122 = vmatprep.subr.mxu0 %v892_v54  ;;  %v976_v51 = vld [vmem:[%s10004_s1 + $0x1930] sm:$0xff]  ;;  %v991_v53 = vld [vmem:[%s10004_s1 + $0x19a8] sm:$0xff] }
 0x1aa   :  { %5160 = vmatprep.subr.mxu1 %v924_v30  ;;  %5123 = vmatpush3.msra.mxu0 %v876_v56  ;;  %v943_v54 = vld [vmem:[%s10004_s1 + $0x1828] sm:$0xff]  ;;  %v958_v56 = vld [vmem:[%s10004_s1 + $0x18a0] sm:$0xff] }
 0x1ab   :  { %5161 = vmatpush3.msra.mxu1 %v908_v57  ;;  %5124 = vmatprep.subr.mxu0 %v891_v58  ;;  %v975_v30 = vld [vmem:[%s10004_s1 + $0x1928] sm:$0xff]  ;;  %v990_v57 = vld [vmem:[%s10004_s1 + $0x19a0] sm:$0xff] }
 0x1ac   :  { %5162 = vmatprep.subr.mxu1 %v923_v59  ;;  %5125 = vmatpush3.msra.mxu0 %v875_v60  ;;  %v942_v58 = vld [vmem:[%s10004_s1 + $0x1820] sm:$0xff]  ;;  %v957_v60 = vld [vmem:[%s10004_s1 + $0x1898] sm:$0xff] }
 0x1ad   :  { %5163 = vmatpush3.msra.mxu1 %v907_v61  ;;  %5126 = vmatprep.subr.mxu0 %v890_v62  ;;  %v974_v59 = vld [vmem:[%s10004_s1 + $0x1920] sm:$0xff]  ;;  %v989_v61 = vld [vmem:[%s10004_s1 + $0x1998] sm:$0xff] }
 0x1ae   :  { %5164 = vmatprep.subr.mxu1 %v922_v63  ;;  %5127 = vmatpush3.msra.mxu0 %v874_v0  ;;  %v941_v62 = vld [vmem:[%s10004_s1 + $0x1818] sm:$0xff]  ;;  %v956_v0 = vld [vmem:[%s10004_s1 + $0x1890] sm:$0xff] }
 0x1af   :  { %3043 = vmatprep.mubr.f32.mxu0 %v71_v1  ;;  %5165 = vmatpush3.msra.mxu1 %v906_v2  ;;  %v973_v63 = vld [vmem:[%s10004_s1 + $0x1918] sm:$0xff]  ;;  %v988_v1 = vld [vmem:[%s10004_s1 + $0x1990] sm:$0xff] }
 0x1b0   :  { %3044 = vmatmul.mubr.f32.vlgmr.msra.gmra.mxu0 %v70_v3  ;;  %3118 = vmatprep.mubr.f32.mxu1 %v73_v4  ;;  %v940_v2 = vld [vmem:[%s10004_s1 + $0x1810] sm:$0xff]  ;;  %v955_v4 = vld [vmem:[%s10004_s1 + $0x1888] sm:$0xff] }
 0x1b1   :  { %5172 = vmatprep.subr.mxu0 %v969_v5  ;;  %5210 = vmatprep.subr.mxu1 %v1001_v6  ;;  %v972_v3 = vld [vmem:[%s10004_s1 + $0x1910] sm:$0xff]  ;;  %v987_v5 = vld [vmem:[%s10004_s1 + $0x1988] sm:$0xff] }
 0x1b2   :  { %3119 = vmatmul.mubr.f32.vlgmr.msra.gmra.mxu1 %v72_v7  ;;  %5173 = vmatpush3.msra.mxu0 %v953_v8  ;;  %v939_v6 = vld [vmem:[%s10004_s1 + $0x1808] sm:$0xff]  ;;  %v954_v8 = vld [vmem:[%s10004_s1 + $0x1880] sm:$0xff] }
 0x1b3   :  { %5211 = vmatpush3.msra.mxu1 %v985_v9  ;;  %5174 = vmatprep.subr.mxu0 %v968_v10  ;;  %v971_v7 = vld [vmem:[%s10004_s1 + $0x1908] sm:$0xff]  ;;  %v986_v9 = vld [vmem:[%s10004_s1 + $0x1980] sm:$0xff] }
 0x1b4   :  { %5212 = vmatprep.subr.mxu1 %v1000_v11  ;;  %3048 = vmatprep.mubr.f32.mxu0 %v143_v12  ;;  %v938_v10 = vld [vmem:[%s10004_s1 + $0x1800] sm:$0xff]  ;;  %v75_v11 = vld [vmem:[%s10005_s0 + $0x188] sm:$0xff] }
 0x1b5   :  { %5175 = vmatpush3.msra.mxu0 %v952_v13  ;;  %5213 = vmatpush3.msra.mxu1 %v984_v16  ;;  %v970_v12 = vld [vmem:[%s10004_s1 + $0x1900] sm:$0xff]  ;;  %v77_v16 = vld [vmem:[%s10005_s0 + $0x198] sm:$0xff] }
 0x1b6   :  { %3049 = vmatmul.mubr.f32.gmra.mxu0 %v142_v17  ;;  %5176 = vmatprep.subr.mxu0 %v967_v18  ;;  %v74_v13 = vld [vmem:[%s10005_s0 + $0x180] sm:$0xff]  ;;  %v1033_v17 = vld [vmem:[%s10004_s1 + $0x1af8] sm:$0xff] }
 0x1b7   :  { %5214 = vmatprep.subr.mxu1 %v999_v19  ;;  %3123 = vmatprep.mubr.f32.mxu1 %v145_v20  ;;  %v1065_v18 = vld [vmem:[%s10004_s1 + $0x1bf8] sm:$0xff]  ;;  %v76_v19 = vld [vmem:[%s10005_s0 + $0x190] sm:$0xff] }
 0x1b8   :  { %5177 = vmatpush3.msra.mxu0 %v951_v21  ;;  %5215 = vmatpush3.msra.mxu1 %v983_v22  ;;  %v1017_v20 = vld [vmem:[%s10004_s1 + $0x1a78] sm:$0xff]  ;;  %v1032_v22 = vld [vmem:[%s10004_s1 + $0x1af0] sm:$0xff] }
 0x1b9   :  { %5178 = vmatprep.subr.mxu0 %v966_v23  ;;  %3124 = vmatmul.mubr.f32.gmra.mxu1 %v144_v24  ;;  %v1049_v21 = vld [vmem:[%s10004_s1 + $0x1b78] sm:$0xff]  ;;  %v1064_v23 = vld [vmem:[%s10004_s1 + $0x1bf0] sm:$0xff]  ;;  %v147_v24 = vld [vmem:[%s10005_s0 + $0x3c8] sm:$0xff] }
 0x1ba   :  { %5216 = vmatprep.subr.mxu1 %v998_v25  ;;  %5179 = vmatpush3.msra.mxu0 %v950_v26  ;;  %v1016_v25 = vld [vmem:[%s10004_s1 + $0x1a70] sm:$0xff] }
 0x1bb   :  { %5217 = vmatpush3.msra.mxu1 %v982_v27  ;;  %5180 = vmatprep.subr.mxu0 %v965_v28  ;;  %v1048_v26 = vld [vmem:[%s10004_s1 + $0x1b70] sm:$0xff]  ;;  %v146_v27 = vld [vmem:[%s10005_s0 + $0x3c0] sm:$0xff]  ;;  %v1031_v28 = vld [vmem:[%s10004_s1 + $0x1ae8] sm:$0xff] }
 0x1bc   :  { %5218 = vmatprep.subr.mxu1 %v997_v29  ;;  %5181 = vmatpush3.msra.mxu0 %v949_v31  ;;  %v1063_v29 = vld [vmem:[%s10004_s1 + $0x1be8] sm:$0xff]  ;;  %v149_v31 = vld [vmem:[%s10005_s0 + $0x3d8] sm:$0xff] }
 0x1bd   :  { %5219 = vmatpush3.msra.mxu1 %v981_v32  ;;  %5182 = vmatprep.subr.mxu0 %v964_v14  ;;  %v1015_v32 = vld [vmem:[%s10004_s1 + $0x1a68] sm:$0xff] }
 0x1be   :  { %5220 = vmatprep.subr.mxu1 %v996_v33  ;;  %5183 = vmatpush3.msra.mxu0 %v948_v34  ;;  %v1047_v14 = vld [vmem:[%s10004_s1 + $0x1b68] sm:$0xff]  ;;  %v1030_v33 = vld [vmem:[%s10004_s1 + $0x1ae0] sm:$0xff]  ;;  %v148_v34 = vld [vmem:[%s10005_s0 + $0x3d0] sm:$0xff] }
 0x1bf   :  { %5221 = vmatpush3.msra.mxu1 %v980_v35  ;;  %5184 = vmatprep.subr.mxu0 %v963_v36  ;;  %v1062_v35 = vld [vmem:[%s10004_s1 + $0x1be0] sm:$0xff] }
 0x1c0   :  { %5222 = vmatprep.subr.mxu1 %v995_v37  ;;  %5185 = vmatpush3.msra.mxu0 %v947_v38  ;;  %v1014_v36 = vld [vmem:[%s10004_s1 + $0x1a60] sm:$0xff]  ;;  %v1029_v38 = vld [vmem:[%s10004_s1 + $0x1ad8] sm:$0xff] }
 0x1c1   :  { %5223 = vmatpush3.msra.mxu1 %v979_v39  ;;  %5186 = vmatprep.subr.mxu0 %v962_v40  ;;  %v1046_v37 = vld [vmem:[%s10004_s1 + $0x1b60] sm:$0xff]  ;;  %v1061_v39 = vld [vmem:[%s10004_s1 + $0x1bd8] sm:$0xff] }
 0x1c2   :  { %5224 = vmatprep.subr.mxu1 %v994_v41  ;;  %5187 = vmatpush3.msra.mxu0 %v946_v42  ;;  %v1013_v40 = vld [vmem:[%s10004_s1 + $0x1a58] sm:$0xff]  ;;  %v1028_v42 = vld [vmem:[%s10004_s1 + $0x1ad0] sm:$0xff] }
 0x1c3   :  { %5225 = vmatpush3.msra.mxu1 %v978_v43  ;;  %5188 = vmatprep.subr.mxu0 %v961_v44  ;;  %v1045_v41 = vld [vmem:[%s10004_s1 + $0x1b58] sm:$0xff]  ;;  %v1060_v43 = vld [vmem:[%s10004_s1 + $0x1bd0] sm:$0xff] }
 0x1c4   :  { %5226 = vmatprep.subr.mxu1 %v993_v45  ;;  %5189 = vmatpush3.msra.mxu0 %v945_v46  ;;  %v1012_v44 = vld [vmem:[%s10004_s1 + $0x1a50] sm:$0xff]  ;;  %v1027_v46 = vld [vmem:[%s10004_s1 + $0x1ac8] sm:$0xff] }
 0x1c5   :  { %5227 = vmatpush3.msra.mxu1 %v977_v47  ;;  %5190 = vmatprep.subr.mxu0 %v960_v48  ;;  %v1044_v45 = vld [vmem:[%s10004_s1 + $0x1b50] sm:$0xff]  ;;  %v1059_v47 = vld [vmem:[%s10004_s1 + $0x1bc8] sm:$0xff] }
 0x1c6   :  { %5228 = vmatprep.subr.mxu1 %v992_v49  ;;  %5191 = vmatpush3.msra.mxu0 %v944_v50  ;;  %v1011_v48 = vld [vmem:[%s10004_s1 + $0x1a48] sm:$0xff]  ;;  %v1026_v50 = vld [vmem:[%s10004_s1 + $0x1ac0] sm:$0xff] }
 0x1c7   :  { %5229 = vmatpush3.msra.mxu1 %v976_v51  ;;  %5192 = vmatprep.subr.mxu0 %v959_v52  ;;  %v1043_v49 = vld [vmem:[%s10004_s1 + $0x1b48] sm:$0xff]  ;;  %v1058_v51 = vld [vmem:[%s10004_s1 + $0x1bc0] sm:$0xff] }
 0x1c8   :  { %5230 = vmatprep.subr.mxu1 %v991_v53  ;;  %5193 = vmatpush3.msra.mxu0 %v943_v54  ;;  %v1010_v52 = vld [vmem:[%s10004_s1 + $0x1a40] sm:$0xff]  ;;  %v1025_v54 = vld [vmem:[%s10004_s1 + $0x1ab8] sm:$0xff] }
 0x1c9   :  { %5231 = vmatpush3.msra.mxu1 %v975_v30  ;;  %5194 = vmatprep.subr.mxu0 %v958_v56  ;;  %v1042_v53 = vld [vmem:[%s10004_s1 + $0x1b40] sm:$0xff]  ;;  %v1057_v30 = vld [vmem:[%s10004_s1 + $0x1bb8] sm:$0xff] }
 0x1ca   :  { %5232 = vmatprep.subr.mxu1 %v990_v57  ;;  %5195 = vmatpush3.msra.mxu0 %v942_v58  ;;  %v1009_v56 = vld [vmem:[%s10004_s1 + $0x1a38] sm:$0xff]  ;;  %v1024_v58 = vld [vmem:[%s10004_s1 + $0x1ab0] sm:$0xff] }
 0x1cb   :  { %5233 = vmatpush3.msra.mxu1 %v974_v59  ;;  %5196 = vmatprep.subr.mxu0 %v957_v60  ;;  %v1041_v57 = vld [vmem:[%s10004_s1 + $0x1b38] sm:$0xff]  ;;  %v1056_v59 = vld [vmem:[%s10004_s1 + $0x1bb0] sm:$0xff] }
 0x1cc   :  { %5234 = vmatprep.subr.mxu1 %v989_v61  ;;  %5197 = vmatpush3.msra.mxu0 %v941_v62  ;;  %v1008_v60 = vld [vmem:[%s10004_s1 + $0x1a30] sm:$0xff]  ;;  %v1023_v62 = vld [vmem:[%s10004_s1 + $0x1aa8] sm:$0xff] }
 0x1cd   :  { %5235 = vmatpush3.msra.mxu1 %v973_v63  ;;  %5198 = vmatprep.subr.mxu0 %v956_v0  ;;  %v1040_v61 = vld [vmem:[%s10004_s1 + $0x1b30] sm:$0xff]  ;;  %v1055_v63 = vld [vmem:[%s10004_s1 + $0x1ba8] sm:$0xff] }
 0x1ce   :  { %5236 = vmatprep.subr.mxu1 %v988_v1  ;;  %5199 = vmatpush3.msra.mxu0 %v940_v2  ;;  %v1007_v0 = vld [vmem:[%s10004_s1 + $0x1a28] sm:$0xff]  ;;  %v1022_v2 = vld [vmem:[%s10004_s1 + $0x1aa0] sm:$0xff] }
 0x1cf   :  { %5237 = vmatpush3.msra.mxu1 %v972_v3  ;;  %5200 = vmatprep.subr.mxu0 %v955_v4  ;;  %v1039_v1 = vld [vmem:[%s10004_s1 + $0x1b28] sm:$0xff]  ;;  %v1054_v3 = vld [vmem:[%s10004_s1 + $0x1ba0] sm:$0xff] }
 0x1d0   :  { %5238 = vmatprep.subr.mxu1 %v987_v5  ;;  %5201 = vmatpush3.msra.mxu0 %v939_v6  ;;  %v1006_v4 = vld [vmem:[%s10004_s1 + $0x1a20] sm:$0xff]  ;;  %v1021_v6 = vld [vmem:[%s10004_s1 + $0x1a98] sm:$0xff] }
 0x1d1   :  { %5239 = vmatpush3.msra.mxu1 %v971_v7  ;;  %5202 = vmatprep.subr.mxu0 %v954_v8  ;;  %v1038_v5 = vld [vmem:[%s10004_s1 + $0x1b20] sm:$0xff]  ;;  %v1053_v7 = vld [vmem:[%s10004_s1 + $0x1b98] sm:$0xff] }
 0x1d2   :  { %5240 = vmatprep.subr.mxu1 %v986_v9  ;;  %5203 = vmatpush3.msra.mxu0 %v938_v10  ;;  %v1005_v8 = vld [vmem:[%s10004_s1 + $0x1a18] sm:$0xff]  ;;  %v1020_v10 = vld [vmem:[%s10004_s1 + $0x1a90] sm:$0xff] }
 0x1d3   :  { %3193 = vmatprep.mubr.f32.mxu0 %v75_v11  ;;  %5241 = vmatpush3.msra.mxu1 %v970_v12  ;;  %v1037_v9 = vld [vmem:[%s10004_s1 + $0x1b18] sm:$0xff]  ;;  %v1052_v11 = vld [vmem:[%s10004_s1 + $0x1b90] sm:$0xff] }
 0x1d4   :  { %3194 = vmatmul.mubr.f32.vlgmr.msra.gmra.mxu0 %v74_v13  ;;  %3268 = vmatprep.mubr.f32.mxu1 %v77_v16  ;;  %v1004_v12 = vld [vmem:[%s10004_s1 + $0x1a10] sm:$0xff]  ;;  %v1019_v16 = vld [vmem:[%s10004_s1 + $0x1a88] sm:$0xff] }
 0x1d5   :  { %5248 = vmatprep.subr.mxu0 %v1033_v17  ;;  %5286 = vmatprep.subr.mxu1 %v1065_v18  ;;  %v1036_v13 = vld [vmem:[%s10004_s1 + $0x1b10] sm:$0xff]  ;;  %v1051_v17 = vld [vmem:[%s10004_s1 + $0x1b88] sm:$0xff] }
 0x1d6   :  { %3269 = vmatmul.mubr.f32.vlgmr.msra.gmra.mxu1 %v76_v19  ;;  %5249 = vmatpush3.msra.mxu0 %v1017_v20  ;;  %v1003_v18 = vld [vmem:[%s10004_s1 + $0x1a08] sm:$0xff]  ;;  %v1018_v20 = vld [vmem:[%s10004_s1 + $0x1a80] sm:$0xff] }
 0x1d7   :  { %5287 = vmatpush3.msra.mxu1 %v1049_v21  ;;  %5250 = vmatprep.subr.mxu0 %v1032_v22  ;;  %v1035_v19 = vld [vmem:[%s10004_s1 + $0x1b08] sm:$0xff]  ;;  %v1050_v21 = vld [vmem:[%s10004_s1 + $0x1b80] sm:$0xff] }
 0x1d8   :  { %5288 = vmatprep.subr.mxu1 %v1064_v23  ;;  %3198 = vmatprep.mubr.f32.mxu0 %v147_v24  ;;  %v1002_v22 = vld [vmem:[%s10004_s1 + $0x1a00] sm:$0xff]  ;;  %v79_v23 = vld [vmem:[%s10005_s0 + $0x1a8] sm:$0xff] }
 0x1d9   :  { %5251 = vmatpush3.msra.mxu0 %v1016_v25  ;;  %5289 = vmatpush3.msra.mxu1 %v1048_v26  ;;  %v1034_v24 = vld [vmem:[%s10004_s1 + $0x1b00] sm:$0xff]  ;;  %v81_v26 = vld [vmem:[%s10005_s0 + $0x1b8] sm:$0xff] }
 0x1da   :  { %3199 = vmatmul.mubr.f32.gmra.mxu0 %v146_v27  ;;  %5252 = vmatprep.subr.mxu0 %v1031_v28  ;;  %v78_v25 = vld [vmem:[%s10005_s0 + $0x1a0] sm:$0xff]  ;;  %v1097_v27 = vld [vmem:[%s10004_s1 + $0x1cf8] sm:$0xff] }
 0x1db   :  { %5290 = vmatprep.subr.mxu1 %v1063_v29  ;;  %3273 = vmatprep.mubr.f32.mxu1 %v149_v31  ;;  %v1129_v28 = vld [vmem:[%s10004_s1 + $0x1df8] sm:$0xff]  ;;  %v80_v29 = vld [vmem:[%s10005_s0 + $0x1b0] sm:$0xff] }
 0x1dc   :  { %5253 = vmatpush3.msra.mxu0 %v1015_v32  ;;  %5291 = vmatpush3.msra.mxu1 %v1047_v14  ;;  %v1081_v31 = vld [vmem:[%s10004_s1 + $0x1c78] sm:$0xff]  ;;  %v1096_v14 = vld [vmem:[%s10004_s1 + $0x1cf0] sm:$0xff] }
 0x1dd   :  { %5254 = vmatprep.subr.mxu0 %v1030_v33  ;;  %3274 = vmatmul.mubr.f32.gmra.mxu1 %v148_v34  ;;  %v1113_v32 = vld [vmem:[%s10004_s1 + $0x1d78] sm:$0xff]  ;;  %v1128_v33 = vld [vmem:[%s10004_s1 + $0x1df0] sm:$0xff]  ;;  %v151_v34 = vld [vmem:[%s10005_s0 + $0x3e8] sm:$0xff] }
 0x1de   :  { %5292 = vmatprep.subr.mxu1 %v1062_v35  ;;  %5255 = vmatpush3.msra.mxu0 %v1014_v36  ;;  %v1080_v35 = vld [vmem:[%s10004_s1 + $0x1c70] sm:$0xff] }
 0x1df   :  { %5293 = vmatpush3.msra.mxu1 %v1046_v37  ;;  %5256 = vmatprep.subr.mxu0 %v1029_v38  ;;  %v1112_v36 = vld [vmem:[%s10004_s1 + $0x1d70] sm:$0xff]  ;;  %v150_v37 = vld [vmem:[%s10005_s0 + $0x3e0] sm:$0xff]  ;;  %v1095_v38 = vld [vmem:[%s10004_s1 + $0x1ce8] sm:$0xff] }
 0x1e0   :  { %5294 = vmatprep.subr.mxu1 %v1061_v39  ;;  %5257 = vmatpush3.msra.mxu0 %v1013_v40  ;;  %v1127_v39 = vld [vmem:[%s10004_s1 + $0x1de8] sm:$0xff]  ;;  %v153_v40 = vld [vmem:[%s10005_s0 + $0x3f8] sm:$0xff] }
 0x1e1   :  { %5295 = vmatpush3.msra.mxu1 %v1045_v41  ;;  %5258 = vmatprep.subr.mxu0 %v1028_v42  ;;  %v1079_v41 = vld [vmem:[%s10004_s1 + $0x1c68] sm:$0xff] }
 0x1e2   :  { %5296 = vmatprep.subr.mxu1 %v1060_v43  ;;  %5259 = vmatpush3.msra.mxu0 %v1012_v44  ;;  %v1111_v42 = vld [vmem:[%s10004_s1 + $0x1d68] sm:$0xff]  ;;  %v1094_v43 = vld [vmem:[%s10004_s1 + $0x1ce0] sm:$0xff]  ;;  %v152_v44 = vld [vmem:[%s10005_s0 + $0x3f0] sm:$0xff] }
 0x1e3   :  { %5297 = vmatpush3.msra.mxu1 %v1044_v45  ;;  %5260 = vmatprep.subr.mxu0 %v1027_v46  ;;  %v1126_v45 = vld [vmem:[%s10004_s1 + $0x1de0] sm:$0xff] }
 0x1e4   :  { %5298 = vmatprep.subr.mxu1 %v1059_v47  ;;  %5261 = vmatpush3.msra.mxu0 %v1011_v48  ;;  %v1078_v46 = vld [vmem:[%s10004_s1 + $0x1c60] sm:$0xff]  ;;  %v1093_v48 = vld [vmem:[%s10004_s1 + $0x1cd8] sm:$0xff] }
 0x1e5   :  { %5299 = vmatpush3.msra.mxu1 %v1043_v49  ;;  %5262 = vmatprep.subr.mxu0 %v1026_v50  ;;  %v1110_v47 = vld [vmem:[%s10004_s1 + $0x1d60] sm:$0xff]  ;;  %v1125_v49 = vld [vmem:[%s10004_s1 + $0x1dd8] sm:$0xff] }
 0x1e6   :  { %5300 = vmatprep.subr.mxu1 %v1058_v51  ;;  %5263 = vmatpush3.msra.mxu0 %v1010_v52  ;;  %v1077_v50 = vld [vmem:[%s10004_s1 + $0x1c58] sm:$0xff]  ;;  %v1092_v52 = vld [vmem:[%s10004_s1 + $0x1cd0] sm:$0xff] }
 0x1e7   :  { %5301 = vmatpush3.msra.mxu1 %v1042_v53  ;;  %5264 = vmatprep.subr.mxu0 %v1025_v54  ;;  %v1109_v51 = vld [vmem:[%s10004_s1 + $0x1d58] sm:$0xff]  ;;  %v1124_v53 = vld [vmem:[%s10004_s1 + $0x1dd0] sm:$0xff] }
 0x1e8   :  { %5302 = vmatprep.subr.mxu1 %v1057_v30  ;;  %5265 = vmatpush3.msra.mxu0 %v1009_v56  ;;  %v1076_v54 = vld [vmem:[%s10004_s1 + $0x1c50] sm:$0xff]  ;;  %v1091_v56 = vld [vmem:[%s10004_s1 + $0x1cc8] sm:$0xff] }
 0x1e9   :  { %5303 = vmatpush3.msra.mxu1 %v1041_v57  ;;  %5266 = vmatprep.subr.mxu0 %v1024_v58  ;;  %v1108_v30 = vld [vmem:[%s10004_s1 + $0x1d50] sm:$0xff]  ;;  %v1123_v57 = vld [vmem:[%s10004_s1 + $0x1dc8] sm:$0xff] }
 0x1ea   :  { %5304 = vmatprep.subr.mxu1 %v1056_v59  ;;  %5267 = vmatpush3.msra.mxu0 %v1008_v60  ;;  %v1075_v58 = vld [vmem:[%s10004_s1 + $0x1c48] sm:$0xff]  ;;  %v1090_v60 = vld [vmem:[%s10004_s1 + $0x1cc0] sm:$0xff] }
 0x1eb   :  { %5305 = vmatpush3.msra.mxu1 %v1040_v61  ;;  %5268 = vmatprep.subr.mxu0 %v1023_v62  ;;  %v1107_v59 = vld [vmem:[%s10004_s1 + $0x1d48] sm:$0xff]  ;;  %v1122_v61 = vld [vmem:[%s10004_s1 + $0x1dc0] sm:$0xff] }
 0x1ec   :  { %5306 = vmatprep.subr.mxu1 %v1055_v63  ;;  %5269 = vmatpush3.msra.mxu0 %v1007_v0  ;;  %v1074_v62 = vld [vmem:[%s10004_s1 + $0x1c40] sm:$0xff]  ;;  %v1089_v0 = vld [vmem:[%s10004_s1 + $0x1cb8] sm:$0xff] }
 0x1ed   :  { %5307 = vmatpush3.msra.mxu1 %v1039_v1  ;;  %5270 = vmatprep.subr.mxu0 %v1022_v2  ;;  %v1106_v63 = vld [vmem:[%s10004_s1 + $0x1d40] sm:$0xff]  ;;  %v1121_v1 = vld [vmem:[%s10004_s1 + $0x1db8] sm:$0xff] }
 0x1ee   :  { %5308 = vmatprep.subr.mxu1 %v1054_v3  ;;  %5271 = vmatpush3.msra.mxu0 %v1006_v4  ;;  %v1073_v2 = vld [vmem:[%s10004_s1 + $0x1c38] sm:$0xff]  ;;  %v1088_v4 = vld [vmem:[%s10004_s1 + $0x1cb0] sm:$0xff] }
 0x1ef   :  { %5309 = vmatpush3.msra.mxu1 %v1038_v5  ;;  %5272 = vmatprep.subr.mxu0 %v1021_v6  ;;  %v1105_v3 = vld [vmem:[%s10004_s1 + $0x1d38] sm:$0xff]  ;;  %v1120_v5 = vld [vmem:[%s10004_s1 + $0x1db0] sm:$0xff] }
 0x1f0   :  { %5310 = vmatprep.subr.mxu1 %v1053_v7  ;;  %5273 = vmatpush3.msra.mxu0 %v1005_v8  ;;  %v1072_v6 = vld [vmem:[%s10004_s1 + $0x1c30] sm:$0xff]  ;;  %v1087_v8 = vld [vmem:[%s10004_s1 + $0x1ca8] sm:$0xff] }
 0x1f1   :  { %5311 = vmatpush3.msra.mxu1 %v1037_v9  ;;  %5274 = vmatprep.subr.mxu0 %v1020_v10  ;;  %v1104_v7 = vld [vmem:[%s10004_s1 + $0x1d30] sm:$0xff]  ;;  %v1119_v9 = vld [vmem:[%s10004_s1 + $0x1da8] sm:$0xff] }
 0x1f2   :  { %5312 = vmatprep.subr.mxu1 %v1052_v11  ;;  %5275 = vmatpush3.msra.mxu0 %v1004_v12  ;;  %v1071_v10 = vld [vmem:[%s10004_s1 + $0x1c28] sm:$0xff]  ;;  %v1086_v12 = vld [vmem:[%s10004_s1 + $0x1ca0] sm:$0xff] }
 0x1f3   :  { %5313 = vmatpush3.msra.mxu1 %v1036_v13  ;;  %5276 = vmatprep.subr.mxu0 %v1019_v16  ;;  %v1103_v11 = vld [vmem:[%s10004_s1 + $0x1d28] sm:$0xff]  ;;  %v1118_v13 = vld [vmem:[%s10004_s1 + $0x1da0] sm:$0xff] }
 0x1f4   :  { %5314 = vmatprep.subr.mxu1 %v1051_v17  ;;  %5277 = vmatpush3.msra.mxu0 %v1003_v18  ;;  %v1070_v16 = vld [vmem:[%s10004_s1 + $0x1c20] sm:$0xff]  ;;  %v1085_v18 = vld [vmem:[%s10004_s1 + $0x1c98] sm:$0xff] }
 0x1f5   :  { %5315 = vmatpush3.msra.mxu1 %v1035_v19  ;;  %5278 = vmatprep.subr.mxu0 %v1018_v20  ;;  %v1102_v17 = vld [vmem:[%s10004_s1 + $0x1d20] sm:$0xff]  ;;  %v1117_v19 = vld [vmem:[%s10004_s1 + $0x1d98] sm:$0xff] }
 0x1f6   :  { %5316 = vmatprep.subr.mxu1 %v1050_v21  ;;  %5279 = vmatpush3.msra.mxu0 %v1002_v22  ;;  %v1069_v20 = vld [vmem:[%s10004_s1 + $0x1c18] sm:$0xff]  ;;  %v1084_v22 = vld [vmem:[%s10004_s1 + $0x1c90] sm:$0xff] }
 0x1f7   :  { %3343 = vmatprep.mubr.f32.mxu0 %v79_v23  ;;  %5317 = vmatpush3.msra.mxu1 %v1034_v24  ;;  %v1101_v21 = vld [vmem:[%s10004_s1 + $0x1d18] sm:$0xff]  ;;  %v1116_v23 = vld [vmem:[%s10004_s1 + $0x1d90] sm:$0xff] }
 0x1f8   :  { %3344 = vmatmul.mubr.f32.vlgmr.msra.gmra.mxu0 %v78_v25  ;;  %3418 = vmatprep.mubr.f32.mxu1 %v81_v26  ;;  %v1068_v24 = vld [vmem:[%s10004_s1 + $0x1c10] sm:$0xff]  ;;  %v1083_v26 = vld [vmem:[%s10004_s1 + $0x1c88] sm:$0xff] }
 0x1f9   :  { %5324 = vmatprep.subr.mxu0 %v1097_v27  ;;  %5362 = vmatprep.subr.mxu1 %v1129_v28  ;;  %v1100_v25 = vld [vmem:[%s10004_s1 + $0x1d10] sm:$0xff]  ;;  %v1115_v27 = vld [vmem:[%s10004_s1 + $0x1d88] sm:$0xff] }
 0x1fa   :  { %3419 = vmatmul.mubr.f32.vlgmr.msra.gmra.mxu1 %v80_v29  ;;  %5325 = vmatpush3.msra.mxu0 %v1081_v31  ;;  %v1067_v28 = vld [vmem:[%s10004_s1 + $0x1c08] sm:$0xff]  ;;  %v1082_v31 = vld [vmem:[%s10004_s1 + $0x1c80] sm:$0xff] }
 0x1fb   :  { %5363 = vmatpush3.msra.mxu1 %v1113_v32  ;;  %5326 = vmatprep.subr.mxu0 %v1096_v14  ;;  %v1099_v29 = vld [vmem:[%s10004_s1 + $0x1d08] sm:$0xff]  ;;  %v1114_v32 = vld [vmem:[%s10004_s1 + $0x1d80] sm:$0xff] }
 0x1fc   :  { %5364 = vmatprep.subr.mxu1 %v1128_v33  ;;  %3348 = vmatprep.mubr.f32.mxu0 %v151_v34  ;;  %v1066_v14 = vld [vmem:[%s10004_s1 + $0x1c00] sm:$0xff]  ;;  %v83_v33 = vld [vmem:[%s10005_s0 + $0x1c8] sm:$0xff] }
 0x1fd   :  { %5327 = vmatpush3.msra.mxu0 %v1080_v35  ;;  %5365 = vmatpush3.msra.mxu1 %v1112_v36  ;;  %v1098_v34 = vld [vmem:[%s10004_s1 + $0x1d00] sm:$0xff]  ;;  %v85_v36 = vld [vmem:[%s10005_s0 + $0x1d8] sm:$0xff] }
 0x1fe   :  { %3349 = vmatmul.mubr.f32.gmra.mxu0 %v150_v37  ;;  %5328 = vmatprep.subr.mxu0 %v1095_v38  ;;  %v82_v35 = vld [vmem:[%s10005_s0 + $0x1c0] sm:$0xff]  ;;  %v1161_v37 = vld [vmem:[%s10004_s1 + $0x1ef8] sm:$0xff] }
 0x1ff   :  { %5366 = vmatprep.subr.mxu1 %v1127_v39  ;;  %3423 = vmatprep.mubr.f32.mxu1 %v153_v40  ;;  %v1193_v38 = vld [vmem:[%s10004_s1 + $0x1ff8] sm:$0xff]  ;;  %v84_v39 = vld [vmem:[%s10005_s0 + $0x1d0] sm:$0xff] }
 0x200   :  { %5329 = vmatpush3.msra.mxu0 %v1079_v41  ;;  %5367 = vmatpush3.msra.mxu1 %v1111_v42  ;;  %v1145_v40 = vld [vmem:[%s10004_s1 + $0x1e78] sm:$0xff]  ;;  %v1160_v42 = vld [vmem:[%s10004_s1 + $0x1ef0] sm:$0xff] }
 0x201   :  { %5330 = vmatprep.subr.mxu0 %v1094_v43  ;;  %3424 = vmatmul.mubr.f32.gmra.mxu1 %v152_v44  ;;  %v1177_v41 = vld [vmem:[%s10004_s1 + $0x1f78] sm:$0xff]  ;;  %v1192_v43 = vld [vmem:[%s10004_s1 + $0x1ff0] sm:$0xff]  ;;  %v155_v44 = vld [vmem:[%s10005_s0 + $0x408] sm:$0xff] }
 0x202   :  { %5368 = vmatprep.subr.mxu1 %v1126_v45  ;;  %5331 = vmatpush3.msra.mxu0 %v1078_v46  ;;  %v1144_v45 = vld [vmem:[%s10004_s1 + $0x1e70] sm:$0xff] }
 0x203   :  { %5369 = vmatpush3.msra.mxu1 %v1110_v47  ;;  %5332 = vmatprep.subr.mxu0 %v1093_v48  ;;  %v1176_v46 = vld [vmem:[%s10004_s1 + $0x1f70] sm:$0xff]  ;;  %v154_v47 = vld [vmem:[%s10005_s0 + $0x400] sm:$0xff]  ;;  %v1159_v48 = vld [vmem:[%s10004_s1 + $0x1ee8] sm:$0xff] }
 0x204   :  { %5370 = vmatprep.subr.mxu1 %v1125_v49  ;;  %5333 = vmatpush3.msra.mxu0 %v1077_v50  ;;  %v1191_v49 = vld [vmem:[%s10004_s1 + $0x1fe8] sm:$0xff]  ;;  %v157_v50 = vld [vmem:[%s10005_s0 + $0x418] sm:$0xff] }
 0x205   :  { %5371 = vmatpush3.msra.mxu1 %v1109_v51  ;;  %5334 = vmatprep.subr.mxu0 %v1092_v52  ;;  %v1143_v51 = vld [vmem:[%s10004_s1 + $0x1e68] sm:$0xff] }
 0x206   :  { %5372 = vmatprep.subr.mxu1 %v1124_v53  ;;  %5335 = vmatpush3.msra.mxu0 %v1076_v54  ;;  %v1175_v52 = vld [vmem:[%s10004_s1 + $0x1f68] sm:$0xff]  ;;  %v1158_v53 = vld [vmem:[%s10004_s1 + $0x1ee0] sm:$0xff]  ;;  %v156_v54 = vld [vmem:[%s10005_s0 + $0x410] sm:$0xff] }
 0x207   :  { %5373 = vmatpush3.msra.mxu1 %v1108_v30  ;;  %5336 = vmatprep.subr.mxu0 %v1091_v56  ;;  %v1190_v30 = vld [vmem:[%s10004_s1 + $0x1fe0] sm:$0xff] }
 0x208   :  { %5374 = vmatprep.subr.mxu1 %v1123_v57  ;;  %5337 = vmatpush3.msra.mxu0 %v1075_v58  ;;  %v1142_v56 = vld [vmem:[%s10004_s1 + $0x1e60] sm:$0xff]  ;;  %v1157_v58 = vld [vmem:[%s10004_s1 + $0x1ed8] sm:$0xff] }
 0x209   :  { %5375 = vmatpush3.msra.mxu1 %v1107_v59  ;;  %5338 = vmatprep.subr.mxu0 %v1090_v60  ;;  %v1174_v57 = vld [vmem:[%s10004_s1 + $0x1f60] sm:$0xff]  ;;  %v1189_v59 = vld [vmem:[%s10004_s1 + $0x1fd8] sm:$0xff] }
 0x20a   :  { %5376 = vmatprep.subr.mxu1 %v1122_v61  ;;  %5339 = vmatpush3.msra.mxu0 %v1074_v62  ;;  %v1141_v60 = vld [vmem:[%s10004_s1 + $0x1e58] sm:$0xff]  ;;  %v1156_v62 = vld [vmem:[%s10004_s1 + $0x1ed0] sm:$0xff] }
 0x20b   :  { %5377 = vmatpush3.msra.mxu1 %v1106_v63  ;;  %5340 = vmatprep.subr.mxu0 %v1089_v0  ;;  %v1173_v61 = vld [vmem:[%s10004_s1 + $0x1f58] sm:$0xff]  ;;  %v1188_v63 = vld [vmem:[%s10004_s1 + $0x1fd0] sm:$0xff] }
 0x20c   :  { %5378 = vmatprep.subr.mxu1 %v1121_v1  ;;  %5341 = vmatpush3.msra.mxu0 %v1073_v2  ;;  %v1140_v0 = vld [vmem:[%s10004_s1 + $0x1e50] sm:$0xff]  ;;  %v1155_v2 = vld [vmem:[%s10004_s1 + $0x1ec8] sm:$0xff] }
 0x20d   :  { %5379 = vmatpush3.msra.mxu1 %v1105_v3  ;;  %5342 = vmatprep.subr.mxu0 %v1088_v4  ;;  %v1172_v1 = vld [vmem:[%s10004_s1 + $0x1f50] sm:$0xff]  ;;  %v1187_v3 = vld [vmem:[%s10004_s1 + $0x1fc8] sm:$0xff] }
 0x20e   :  { %5380 = vmatprep.subr.mxu1 %v1120_v5  ;;  %5343 = vmatpush3.msra.mxu0 %v1072_v6  ;;  %v1139_v4 = vld [vmem:[%s10004_s1 + $0x1e48] sm:$0xff]  ;;  %v1154_v6 = vld [vmem:[%s10004_s1 + $0x1ec0] sm:$0xff] }
 0x20f   :  { %5381 = vmatpush3.msra.mxu1 %v1104_v7  ;;  %5344 = vmatprep.subr.mxu0 %v1087_v8  ;;  %v1171_v5 = vld [vmem:[%s10004_s1 + $0x1f48] sm:$0xff]  ;;  %v1186_v7 = vld [vmem:[%s10004_s1 + $0x1fc0] sm:$0xff] }
 0x210   :  { %5382 = vmatprep.subr.mxu1 %v1119_v9  ;;  %5345 = vmatpush3.msra.mxu0 %v1071_v10  ;;  %v1138_v8 = vld [vmem:[%s10004_s1 + $0x1e40] sm:$0xff]  ;;  %v1153_v10 = vld [vmem:[%s10004_s1 + $0x1eb8] sm:$0xff] }
 0x211   :  { %5383 = vmatpush3.msra.mxu1 %v1103_v11  ;;  %5346 = vmatprep.subr.mxu0 %v1086_v12  ;;  %v1170_v9 = vld [vmem:[%s10004_s1 + $0x1f40] sm:$0xff]  ;;  %v1185_v11 = vld [vmem:[%s10004_s1 + $0x1fb8] sm:$0xff] }
 0x212   :  { %5384 = vmatprep.subr.mxu1 %v1118_v13  ;;  %5347 = vmatpush3.msra.mxu0 %v1070_v16  ;;  %v1137_v12 = vld [vmem:[%s10004_s1 + $0x1e38] sm:$0xff]  ;;  %v1152_v16 = vld [vmem:[%s10004_s1 + $0x1eb0] sm:$0xff] }
 0x213   :  { %5385 = vmatpush3.msra.mxu1 %v1102_v17  ;;  %5348 = vmatprep.subr.mxu0 %v1085_v18  ;;  %v1169_v13 = vld [vmem:[%s10004_s1 + $0x1f38] sm:$0xff]  ;;  %v1184_v17 = vld [vmem:[%s10004_s1 + $0x1fb0] sm:$0xff] }
 0x214   :  { %5386 = vmatprep.subr.mxu1 %v1117_v19  ;;  %5349 = vmatpush3.msra.mxu0 %v1069_v20  ;;  %v1136_v18 = vld [vmem:[%s10004_s1 + $0x1e30] sm:$0xff]  ;;  %v1151_v20 = vld [vmem:[%s10004_s1 + $0x1ea8] sm:$0xff] }
 0x215   :  { %5387 = vmatpush3.msra.mxu1 %v1101_v21  ;;  %5350 = vmatprep.subr.mxu0 %v1084_v22  ;;  %v1168_v19 = vld [vmem:[%s10004_s1 + $0x1f30] sm:$0xff]  ;;  %v1183_v21 = vld [vmem:[%s10004_s1 + $0x1fa8] sm:$0xff] }
 0x216   :  { %5388 = vmatprep.subr.mxu1 %v1116_v23  ;;  %5351 = vmatpush3.msra.mxu0 %v1068_v24  ;;  %v1135_v22 = vld [vmem:[%s10004_s1 + $0x1e28] sm:$0xff]  ;;  %v1150_v24 = vld [vmem:[%s10004_s1 + $0x1ea0] sm:$0xff] }
 0x217   :  { %5389 = vmatpush3.msra.mxu1 %v1100_v25  ;;  %5352 = vmatprep.subr.mxu0 %v1083_v26  ;;  %v1167_v23 = vld [vmem:[%s10004_s1 + $0x1f28] sm:$0xff]  ;;  %v1182_v25 = vld [vmem:[%s10004_s1 + $0x1fa0] sm:$0xff] }
 0x218   :  { %5390 = vmatprep.subr.mxu1 %v1115_v27  ;;  %5353 = vmatpush3.msra.mxu0 %v1067_v28  ;;  %v1134_v26 = vld [vmem:[%s10004_s1 + $0x1e20] sm:$0xff]  ;;  %v1149_v28 = vld [vmem:[%s10004_s1 + $0x1e98] sm:$0xff] }
 0x219   :  { %5391 = vmatpush3.msra.mxu1 %v1099_v29  ;;  %5354 = vmatprep.subr.mxu0 %v1082_v31  ;;  %v1166_v27 = vld [vmem:[%s10004_s1 + $0x1f20] sm:$0xff]  ;;  %v1181_v29 = vld [vmem:[%s10004_s1 + $0x1f98] sm:$0xff] }
 0x21a   :  { %5392 = vmatprep.subr.mxu1 %v1114_v32  ;;  %5355 = vmatpush3.msra.mxu0 %v1066_v14  ;;  %v1133_v31 = vld [vmem:[%s10004_s1 + $0x1e18] sm:$0xff]  ;;  %v1148_v14 = vld [vmem:[%s10004_s1 + $0x1e90] sm:$0xff] }
 0x21b   :  { %3493 = vmatprep.mubr.f32.mxu0 %v83_v33  ;;  %5393 = vmatpush3.msra.mxu1 %v1098_v34  ;;  %v1165_v32 = vld [vmem:[%s10004_s1 + $0x1f18] sm:$0xff]  ;;  %v1180_v33 = vld [vmem:[%s10004_s1 + $0x1f90] sm:$0xff] }
 0x21c   :  { %3494 = vmatmul.mubr.f32.vlgmr.msra.gmra.mxu0 %v82_v35  ;;  %3568 = vmatprep.mubr.f32.mxu1 %v85_v36  ;;  %v1132_v34 = vld [vmem:[%s10004_s1 + $0x1e10] sm:$0xff]  ;;  %v1147_v36 = vld [vmem:[%s10004_s1 + $0x1e88] sm:$0xff] }
 0x21d   :  { %5400 = vmatprep.subr.mxu0 %v1161_v37  ;;  %5438 = vmatprep.subr.mxu1 %v1193_v38  ;;  %v1164_v35 = vld [vmem:[%s10004_s1 + $0x1f10] sm:$0xff]  ;;  %v1179_v37 = vld [vmem:[%s10004_s1 + $0x1f88] sm:$0xff] }
 0x21e   :  { %3569 = vmatmul.mubr.f32.vlgmr.msra.gmra.mxu1 %v84_v39  ;;  %5401 = vmatpush3.msra.mxu0 %v1145_v40  ;;  %v1131_v38 = vld [vmem:[%s10004_s1 + $0x1e08] sm:$0xff]  ;;  %v1146_v40 = vld [vmem:[%s10004_s1 + $0x1e80] sm:$0xff] }
 0x21f   :  { %5439 = vmatpush3.msra.mxu1 %v1177_v41  ;;  %5402 = vmatprep.subr.mxu0 %v1160_v42  ;;  %v1163_v39 = vld [vmem:[%s10004_s1 + $0x1f08] sm:$0xff]  ;;  %v1178_v41 = vld [vmem:[%s10004_s1 + $0x1f80] sm:$0xff] }
 0x220   :  { %5440 = vmatprep.subr.mxu1 %v1192_v43  ;;  %3498 = vmatprep.mubr.f32.mxu0 %v155_v44  ;;  %v1130_v42 = vld [vmem:[%s10004_s1 + $0x1e00] sm:$0xff]  ;;  %v87_v43 = vld [vmem:[%s10005_s0 + $0x1e8] sm:$0xff] }
 0x221   :  { %5403 = vmatpush3.msra.mxu0 %v1144_v45  ;;  %5441 = vmatpush3.msra.mxu1 %v1176_v46  ;;  %v1162_v44 = vld [vmem:[%s10004_s1 + $0x1f00] sm:$0xff]  ;;  %v89_v46 = vld [vmem:[%s10005_s0 + $0x1f8] sm:$0xff] }
 0x222   :  { %3499 = vmatmul.mubr.f32.gmra.mxu0 %v154_v47  ;;  %5404 = vmatprep.subr.mxu0 %v1159_v48  ;;  %v86_v45 = vld [vmem:[%s10005_s0 + $0x1e0] sm:$0xff]  ;;  %v1225_v47 = vld [vmem:[%s10004_s1 + $0x20f8] sm:$0xff] }
 0x223   :  { %5442 = vmatprep.subr.mxu1 %v1191_v49  ;;  %3573 = vmatprep.mubr.f32.mxu1 %v157_v50  ;;  %v1257_v48 = vld [vmem:[%s10004_s1 + $0x21f8] sm:$0xff]  ;;  %v88_v49 = vld [vmem:[%s10005_s0 + $0x1f0] sm:$0xff] }
 0x224   :  { %5405 = vmatpush3.msra.mxu0 %v1143_v51  ;;  %5443 = vmatpush3.msra.mxu1 %v1175_v52  ;;  %v1209_v50 = vld [vmem:[%s10004_s1 + $0x2078] sm:$0xff]  ;;  %v1224_v52 = vld [vmem:[%s10004_s1 + $0x20f0] sm:$0xff] }
 0x225   :  { %5406 = vmatprep.subr.mxu0 %v1158_v53  ;;  %3574 = vmatmul.mubr.f32.gmra.mxu1 %v156_v54  ;;  %v1241_v51 = vld [vmem:[%s10004_s1 + $0x2178] sm:$0xff]  ;;  %v1256_v53 = vld [vmem:[%s10004_s1 + $0x21f0] sm:$0xff]  ;;  %v159_v54 = vld [vmem:[%s10005_s0 + $0x428] sm:$0xff] }
 0x226   :  { %5444 = vmatprep.subr.mxu1 %v1190_v30  ;;  %5407 = vmatpush3.msra.mxu0 %v1142_v56  ;;  %v1208_v30 = vld [vmem:[%s10004_s1 + $0x2070] sm:$0xff] }
 0x227   :  { %5445 = vmatpush3.msra.mxu1 %v1174_v57  ;;  %5408 = vmatprep.subr.mxu0 %v1157_v58  ;;  %v1240_v56 = vld [vmem:[%s10004_s1 + $0x2170] sm:$0xff]  ;;  %v158_v57 = vld [vmem:[%s10005_s0 + $0x420] sm:$0xff]  ;;  %v1223_v58 = vld [vmem:[%s10004_s1 + $0x20e8] sm:$0xff] }
 0x228   :  { %5446 = vmatprep.subr.mxu1 %v1189_v59  ;;  %5409 = vmatpush3.msra.mxu0 %v1141_v60  ;;  %v1255_v59 = vld [vmem:[%s10004_s1 + $0x21e8] sm:$0xff]  ;;  %v161_v60 = vld [vmem:[%s10005_s0 + $0x438] sm:$0xff] }
 0x229   :  { %5447 = vmatpush3.msra.mxu1 %v1173_v61  ;;  %5410 = vmatprep.subr.mxu0 %v1156_v62  ;;  %v1207_v61 = vld [vmem:[%s10004_s1 + $0x2068] sm:$0xff] }
 0x22a   :  { %5448 = vmatprep.subr.mxu1 %v1188_v63  ;;  %5411 = vmatpush3.msra.mxu0 %v1140_v0  ;;  %v1239_v62 = vld [vmem:[%s10004_s1 + $0x2168] sm:$0xff]  ;;  %v1222_v63 = vld [vmem:[%s10004_s1 + $0x20e0] sm:$0xff]  ;;  %v160_v0 = vld [vmem:[%s10005_s0 + $0x430] sm:$0xff] }
 0x22b   :  { %5449 = vmatpush3.msra.mxu1 %v1172_v1  ;;  %5412 = vmatprep.subr.mxu0 %v1155_v2  ;;  %v1254_v1 = vld [vmem:[%s10004_s1 + $0x21e0] sm:$0xff] }
 0x22c   :  { %5450 = vmatprep.subr.mxu1 %v1187_v3  ;;  %5413 = vmatpush3.msra.mxu0 %v1139_v4  ;;  %v1206_v2 = vld [vmem:[%s10004_s1 + $0x2060] sm:$0xff]  ;;  %v1221_v4 = vld [vmem:[%s10004_s1 + $0x20d8] sm:$0xff] }
 0x22d   :  { %5451 = vmatpush3.msra.mxu1 %v1171_v5  ;;  %5414 = vmatprep.subr.mxu0 %v1154_v6  ;;  %v1238_v3 = vld [vmem:[%s10004_s1 + $0x2160] sm:$0xff]  ;;  %v1253_v5 = vld [vmem:[%s10004_s1 + $0x21d8] sm:$0xff] }
 0x22e   :  { %5452 = vmatprep.subr.mxu1 %v1186_v7  ;;  %5415 = vmatpush3.msra.mxu0 %v1138_v8  ;;  %v1205_v6 = vld [vmem:[%s10004_s1 + $0x2058] sm:$0xff]  ;;  %v1220_v8 = vld [vmem:[%s10004_s1 + $0x20d0] sm:$0xff] }
 0x22f   :  { %5453 = vmatpush3.msra.mxu1 %v1170_v9  ;;  %5416 = vmatprep.subr.mxu0 %v1153_v10  ;;  %v1237_v7 = vld [vmem:[%s10004_s1 + $0x2158] sm:$0xff]  ;;  %v1252_v9 = vld [vmem:[%s10004_s1 + $0x21d0] sm:$0xff] }
 0x230   :  { %5454 = vmatprep.subr.mxu1 %v1185_v11  ;;  %5417 = vmatpush3.msra.mxu0 %v1137_v12  ;;  %v1204_v10 = vld [vmem:[%s10004_s1 + $0x2050] sm:$0xff]  ;;  %v1219_v12 = vld [vmem:[%s10004_s1 + $0x20c8] sm:$0xff] }
 0x231   :  { %5455 = vmatpush3.msra.mxu1 %v1169_v13  ;;  %5418 = vmatprep.subr.mxu0 %v1152_v16  ;;  %v1236_v11 = vld [vmem:[%s10004_s1 + $0x2150] sm:$0xff]  ;;  %v1251_v13 = vld [vmem:[%s10004_s1 + $0x21c8] sm:$0xff] }
 0x232   :  { %5456 = vmatprep.subr.mxu1 %v1184_v17  ;;  %5419 = vmatpush3.msra.mxu0 %v1136_v18  ;;  %v1203_v16 = vld [vmem:[%s10004_s1 + $0x2048] sm:$0xff]  ;;  %v1218_v18 = vld [vmem:[%s10004_s1 + $0x20c0] sm:$0xff] }
 0x233   :  { %5457 = vmatpush3.msra.mxu1 %v1168_v19  ;;  %5420 = vmatprep.subr.mxu0 %v1151_v20  ;;  %v1235_v17 = vld [vmem:[%s10004_s1 + $0x2148] sm:$0xff]  ;;  %v1250_v19 = vld [vmem:[%s10004_s1 + $0x21c0] sm:$0xff] }
 0x234   :  { %5458 = vmatprep.subr.mxu1 %v1183_v21  ;;  %5421 = vmatpush3.msra.mxu0 %v1135_v22  ;;  %v1202_v20 = vld [vmem:[%s10004_s1 + $0x2040] sm:$0xff]  ;;  %v1217_v22 = vld [vmem:[%s10004_s1 + $0x20b8] sm:$0xff] }
 0x235   :  { %5459 = vmatpush3.msra.mxu1 %v1167_v23  ;;  %5422 = vmatprep.subr.mxu0 %v1150_v24  ;;  %v1234_v21 = vld [vmem:[%s10004_s1 + $0x2140] sm:$0xff]  ;;  %v1249_v23 = vld [vmem:[%s10004_s1 + $0x21b8] sm:$0xff] }
 0x236   :  { %5460 = vmatprep.subr.mxu1 %v1182_v25  ;;  %5423 = vmatpush3.msra.mxu0 %v1134_v26  ;;  %v1201_v24 = vld [vmem:[%s10004_s1 + $0x2038] sm:$0xff]  ;;  %v1216_v26 = vld [vmem:[%s10004_s1 + $0x20b0] sm:$0xff] }
 0x237   :  { %5461 = vmatpush3.msra.mxu1 %v1166_v27  ;;  %5424 = vmatprep.subr.mxu0 %v1149_v28  ;;  %v1233_v25 = vld [vmem:[%s10004_s1 + $0x2138] sm:$0xff]  ;;  %v1248_v27 = vld [vmem:[%s10004_s1 + $0x21b0] sm:$0xff] }
 0x238   :  { %5462 = vmatprep.subr.mxu1 %v1181_v29  ;;  %5425 = vmatpush3.msra.mxu0 %v1133_v31  ;;  %v1200_v28 = vld [vmem:[%s10004_s1 + $0x2030] sm:$0xff]  ;;  %v1215_v31 = vld [vmem:[%s10004_s1 + $0x20a8] sm:$0xff] }
 0x239   :  { %5463 = vmatpush3.msra.mxu1 %v1165_v32  ;;  %5426 = vmatprep.subr.mxu0 %v1148_v14  ;;  %v1232_v29 = vld [vmem:[%s10004_s1 + $0x2130] sm:$0xff]  ;;  %v1247_v32 = vld [vmem:[%s10004_s1 + $0x21a8] sm:$0xff] }
 0x23a   :  { %5464 = vmatprep.subr.mxu1 %v1180_v33  ;;  %5427 = vmatpush3.msra.mxu0 %v1132_v34  ;;  %v1199_v14 = vld [vmem:[%s10004_s1 + $0x2028] sm:$0xff]  ;;  %v1214_v34 = vld [vmem:[%s10004_s1 + $0x20a0] sm:$0xff] }
 0x23b   :  { %5465 = vmatpush3.msra.mxu1 %v1164_v35  ;;  %5428 = vmatprep.subr.mxu0 %v1147_v36  ;;  %v1231_v33 = vld [vmem:[%s10004_s1 + $0x2128] sm:$0xff]  ;;  %v1246_v35 = vld [vmem:[%s10004_s1 + $0x21a0] sm:$0xff] }
 0x23c   :  { %5466 = vmatprep.subr.mxu1 %v1179_v37  ;;  %5429 = vmatpush3.msra.mxu0 %v1131_v38  ;;  %v1198_v36 = vld [vmem:[%s10004_s1 + $0x2020] sm:$0xff]  ;;  %v1213_v38 = vld [vmem:[%s10004_s1 + $0x2098] sm:$0xff] }
 0x23d   :  { %5467 = vmatpush3.msra.mxu1 %v1163_v39  ;;  %5430 = vmatprep.subr.mxu0 %v1146_v40  ;;  %v1230_v37 = vld [vmem:[%s10004_s1 + $0x2120] sm:$0xff]  ;;  %v1245_v39 = vld [vmem:[%s10004_s1 + $0x2198] sm:$0xff] }
 0x23e   :  { %5468 = vmatprep.subr.mxu1 %v1178_v41  ;;  %5431 = vmatpush3.msra.mxu0 %v1130_v42  ;;  %v1197_v40 = vld [vmem:[%s10004_s1 + $0x2018] sm:$0xff]  ;;  %v1212_v42 = vld [vmem:[%s10004_s1 + $0x2090] sm:$0xff] }
 0x23f   :  { %3643 = vmatprep.mubr.f32.mxu0 %v87_v43  ;;  %5469 = vmatpush3.msra.mxu1 %v1162_v44  ;;  %v1229_v41 = vld [vmem:[%s10004_s1 + $0x2118] sm:$0xff]  ;;  %v1244_v43 = vld [vmem:[%s10004_s1 + $0x2190] sm:$0xff] }
 0x240   :  { %3644 = vmatmul.mubr.f32.vlgmr.msra.gmra.mxu0 %v86_v45  ;;  %3718 = vmatprep.mubr.f32.mxu1 %v89_v46  ;;  %v1196_v44 = vld [vmem:[%s10004_s1 + $0x2010] sm:$0xff]  ;;  %v1211_v46 = vld [vmem:[%s10004_s1 + $0x2088] sm:$0xff] }
 0x241   :  { %5476 = vmatprep.subr.mxu0 %v1225_v47  ;;  %5514 = vmatprep.subr.mxu1 %v1257_v48  ;;  %v1228_v45 = vld [vmem:[%s10004_s1 + $0x2110] sm:$0xff]  ;;  %v1243_v47 = vld [vmem:[%s10004_s1 + $0x2188] sm:$0xff] }
 0x242   :  { %3719 = vmatmul.mubr.f32.vlgmr.msra.gmra.mxu1 %v88_v49  ;;  %5477 = vmatpush3.msra.mxu0 %v1209_v50  ;;  %v1195_v48 = vld [vmem:[%s10004_s1 + $0x2008] sm:$0xff]  ;;  %v1210_v50 = vld [vmem:[%s10004_s1 + $0x2080] sm:$0xff] }
 0x243   :  { %5515 = vmatpush3.msra.mxu1 %v1241_v51  ;;  %5478 = vmatprep.subr.mxu0 %v1224_v52  ;;  %v1227_v49 = vld [vmem:[%s10004_s1 + $0x2108] sm:$0xff]  ;;  %v1242_v51 = vld [vmem:[%s10004_s1 + $0x2180] sm:$0xff] }
 0x244   :  { %5516 = vmatprep.subr.mxu1 %v1256_v53  ;;  %3648 = vmatprep.mubr.f32.mxu0 %v159_v54  ;;  %v1194_v52 = vld [vmem:[%s10004_s1 + $0x2000] sm:$0xff]  ;;  %v91_v53 = vld [vmem:[%s10005_s0 + $0x208] sm:$0xff] }
 0x245   :  { %5479 = vmatpush3.msra.mxu0 %v1208_v30  ;;  %5517 = vmatpush3.msra.mxu1 %v1240_v56  ;;  %v1226_v54 = vld [vmem:[%s10004_s1 + $0x2100] sm:$0xff]  ;;  %v93_v56 = vld [vmem:[%s10005_s0 + $0x218] sm:$0xff] }
 0x246   :  { %3649 = vmatmul.mubr.f32.gmra.mxu0 %v158_v57  ;;  %5480 = vmatprep.subr.mxu0 %v1223_v58  ;;  %v90_v30 = vld [vmem:[%s10005_s0 + $0x200] sm:$0xff]  ;;  %v1289_v57 = vld [vmem:[%s10004_s1 + $0x22f8] sm:$0xff] }
 0x247   :  { %5518 = vmatprep.subr.mxu1 %v1255_v59  ;;  %3723 = vmatprep.mubr.f32.mxu1 %v161_v60  ;;  %v1321_v58 = vld [vmem:[%s10004_s1 + $0x23f8] sm:$0xff]  ;;  %v92_v59 = vld [vmem:[%s10005_s0 + $0x210] sm:$0xff] }
 0x248   :  { %5481 = vmatpush3.msra.mxu0 %v1207_v61  ;;  %5519 = vmatpush3.msra.mxu1 %v1239_v62  ;;  %v1273_v60 = vld [vmem:[%s10004_s1 + $0x2278] sm:$0xff]  ;;  %v1288_v62 = vld [vmem:[%s10004_s1 + $0x22f0] sm:$0xff] }
 0x249   :  { %5482 = vmatprep.subr.mxu0 %v1222_v63  ;;  %3724 = vmatmul.mubr.f32.gmra.mxu1 %v160_v0  ;;  %v1305_v61 = vld [vmem:[%s10004_s1 + $0x2378] sm:$0xff]  ;;  %v1320_v63 = vld [vmem:[%s10004_s1 + $0x23f0] sm:$0xff]  ;;  %v163_v0 = vld [vmem:[%s10005_s0 + $0x448] sm:$0xff] }
 0x24a   :  { %5520 = vmatprep.subr.mxu1 %v1254_v1  ;;  %5483 = vmatpush3.msra.mxu0 %v1206_v2  ;;  %v1272_v1 = vld [vmem:[%s10004_s1 + $0x2270] sm:$0xff] }
 0x24b   :  { %5521 = vmatpush3.msra.mxu1 %v1238_v3  ;;  %5484 = vmatprep.subr.mxu0 %v1221_v4  ;;  %v1304_v2 = vld [vmem:[%s10004_s1 + $0x2370] sm:$0xff]  ;;  %v162_v3 = vld [vmem:[%s10005_s0 + $0x440] sm:$0xff]  ;;  %v1287_v4 = vld [vmem:[%s10004_s1 + $0x22e8] sm:$0xff] }
 0x24c   :  { %5522 = vmatprep.subr.mxu1 %v1253_v5  ;;  %5485 = vmatpush3.msra.mxu0 %v1205_v6  ;;  %v1319_v5 = vld [vmem:[%s10004_s1 + $0x23e8] sm:$0xff]  ;;  %v165_v6 = vld [vmem:[%s10005_s0 + $0x458] sm:$0xff] }
 0x24d   :  { %5523 = vmatpush3.msra.mxu1 %v1237_v7  ;;  %5486 = vmatprep.subr.mxu0 %v1220_v8  ;;  %v1271_v7 = vld [vmem:[%s10004_s1 + $0x2268] sm:$0xff] }
 0x24e   :  { %5524 = vmatprep.subr.mxu1 %v1252_v9  ;;  %5487 = vmatpush3.msra.mxu0 %v1204_v10  ;;  %v1303_v8 = vld [vmem:[%s10004_s1 + $0x2368] sm:$0xff]  ;;  %v1286_v9 = vld [vmem:[%s10004_s1 + $0x22e0] sm:$0xff]  ;;  %v164_v10 = vld [vmem:[%s10005_s0 + $0x450] sm:$0xff] }
 0x24f   :  { %5525 = vmatpush3.msra.mxu1 %v1236_v11  ;;  %5488 = vmatprep.subr.mxu0 %v1219_v12  ;;  %v1318_v11 = vld [vmem:[%s10004_s1 + $0x23e0] sm:$0xff] }
 0x250   :  { %5526 = vmatprep.subr.mxu1 %v1251_v13  ;;  %5489 = vmatpush3.msra.mxu0 %v1203_v16  ;;  %v1270_v12 = vld [vmem:[%s10004_s1 + $0x2260] sm:$0xff]  ;;  %v1285_v16 = vld [vmem:[%s10004_s1 + $0x22d8] sm:$0xff] }
 0x251   :  { %5527 = vmatpush3.msra.mxu1 %v1235_v17  ;;  %5490 = vmatprep.subr.mxu0 %v1218_v18  ;;  %v1302_v13 = vld [vmem:[%s10004_s1 + $0x2360] sm:$0xff]  ;;  %v1317_v17 = vld [vmem:[%s10004_s1 + $0x23d8] sm:$0xff] }
 0x252   :  { %5528 = vmatprep.subr.mxu1 %v1250_v19  ;;  %5491 = vmatpush3.msra.mxu0 %v1202_v20  ;;  %v1269_v18 = vld [vmem:[%s10004_s1 + $0x2258] sm:$0xff]  ;;  %v1284_v20 = vld [vmem:[%s10004_s1 + $0x22d0] sm:$0xff] }
 0x253   :  { %5529 = vmatpush3.msra.mxu1 %v1234_v21  ;;  %5492 = vmatprep.subr.mxu0 %v1217_v22  ;;  %v1301_v19 = vld [vmem:[%s10004_s1 + $0x2358] sm:$0xff]  ;;  %v1316_v21 = vld [vmem:[%s10004_s1 + $0x23d0] sm:$0xff] }
 0x254   :  { %5530 = vmatprep.subr.mxu1 %v1249_v23  ;;  %5493 = vmatpush3.msra.mxu0 %v1201_v24  ;;  %v1268_v22 = vld [vmem:[%s10004_s1 + $0x2250] sm:$0xff]  ;;  %v1283_v24 = vld [vmem:[%s10004_s1 + $0x22c8] sm:$0xff] }
 0x255   :  { %5531 = vmatpush3.msra.mxu1 %v1233_v25  ;;  %5494 = vmatprep.subr.mxu0 %v1216_v26  ;;  %v1300_v23 = vld [vmem:[%s10004_s1 + $0x2350] sm:$0xff]  ;;  %v1315_v25 = vld [vmem:[%s10004_s1 + $0x23c8] sm:$0xff] }
 0x256   :  { %5532 = vmatprep.subr.mxu1 %v1248_v27  ;;  %5495 = vmatpush3.msra.mxu0 %v1200_v28  ;;  %v1267_v26 = vld [vmem:[%s10004_s1 + $0x2248] sm:$0xff]  ;;  %v1282_v28 = vld [vmem:[%s10004_s1 + $0x22c0] sm:$0xff] }
 0x257   :  { %5533 = vmatpush3.msra.mxu1 %v1232_v29  ;;  %5496 = vmatprep.subr.mxu0 %v1215_v31  ;;  %v1299_v27 = vld [vmem:[%s10004_s1 + $0x2348] sm:$0xff]  ;;  %v1314_v29 = vld [vmem:[%s10004_s1 + $0x23c0] sm:$0xff] }
 0x258   :  { %5534 = vmatprep.subr.mxu1 %v1247_v32  ;;  %5497 = vmatpush3.msra.mxu0 %v1199_v14  ;;  %v1266_v31 = vld [vmem:[%s10004_s1 + $0x2240] sm:$0xff]  ;;  %v9528_v14 = vpop.f32.mrf.mxu0 }
 0x259   :  { %5535 = vmatpush3.msra.mxu1 %v1231_v33  ;;  %5498 = vmatprep.subr.mxu0 %v1214_v34  ;;  %v1298_v32 = vld [vmem:[%s10004_s1 + $0x2340] sm:$0xff]  ;;  %v1281_v33 = vld [vmem:[%s10004_s1 + $0x22b8] sm:$0xff] }
 0x25a   :  { %5536 = vmatprep.subr.mxu1 %v1246_v35  ;;  %5499 = vmatpush3.msra.mxu0 %v1198_v36  ;;  %v1313_v34 = vld [vmem:[%s10004_s1 + $0x23b8] sm:$0xff] }
 0x25b   :  { %5537 = vmatpush3.msra.mxu1 %v1230_v37  ;;  %5500 = vmatprep.subr.mxu0 %v1213_v38  ;;  %v1265_v35 = vld [vmem:[%s10004_s1 + $0x2238] sm:$0xff]  ;;  %v9542_v37 = vpop.f32.mrf.mxu1  ;;  %v1280_v38 = vld [vmem:[%s10004_s1 + $0x22b0] sm:$0xff] }
 0x25c   :  { %5538 = vmatprep.subr.mxu1 %v1245_v39  ;;  %5501 = vmatpush3.msra.mxu0 %v1197_v40  ;;  %v1297_v36 = vld [vmem:[%s10004_s1 + $0x2338] sm:$0xff]  ;;  %v1312_v39 = vld [vmem:[%s10004_s1 + $0x23b0] sm:$0xff] }
 0x25d   :  { %5539 = vmatpush3.msra.mxu1 %v1229_v41  ;;  %5502 = vmatprep.subr.mxu0 %v1212_v42  ;;  %v1264_v40 = vld [vmem:[%s10004_s1 + $0x2230] sm:$0xff]  ;;  %v9556_v42 = vpop.f32.mrf.mxu0 }
 0x25e   :  { %5540 = vmatprep.subr.mxu1 %v1244_v43  ;;  %5503 = vmatpush3.msra.mxu0 %v1196_v44  ;;  %v1296_v41 = vld [vmem:[%s10004_s1 + $0x2330] sm:$0xff]  ;;  %v1279_v43 = vld [vmem:[%s10004_s1 + $0x22a8] sm:$0xff] }
 0x25f   :  { %5541 = vmatpush3.msra.mxu1 %v1228_v45  ;;  %5504 = vmatprep.subr.mxu0 %v1211_v46  ;;  %v1311_v44 = vld [vmem:[%s10004_s1 + $0x23a8] sm:$0xff] }
 0x260   :  { %5542 = vmatprep.subr.mxu1 %v1243_v47  ;;  %5505 = vmatpush3.msra.mxu0 %v1195_v48  ;;  %v1263_v45 = vld [vmem:[%s10004_s1 + $0x2228] sm:$0xff]  ;;  %v9570_v47 = vpop.f32.mrf.mxu1  ;;  %v1278_v48 = vld [vmem:[%s10004_s1 + $0x22a0] sm:$0xff] }
 0x261   :  { %5543 = vmatpush3.msra.mxu1 %v1227_v49  ;;  %5506 = vmatprep.subr.mxu0 %v1210_v50  ;;  %v1295_v46 = vld [vmem:[%s10004_s1 + $0x2328] sm:$0xff]  ;;  %v1310_v49 = vld [vmem:[%s10004_s1 + $0x23a0] sm:$0xff] }
 0x262   :  { %5544 = vmatprep.subr.mxu1 %v1242_v51  ;;  %5507 = vmatpush3.msra.mxu0 %v1194_v52  ;;  %v1262_v50 = vld [vmem:[%s10004_s1 + $0x2220] sm:$0xff]  ;;  %v9584_v52 = vpop.f32.mrf.mxu0 }
 0x263   :  { %3793 = vmatprep.mubr.f32.mxu0 %v91_v53  ;;  %5545 = vmatpush3.msra.mxu1 %v1226_v54  ;;  %v1294_v51 = vld [vmem:[%s10004_s1 + $0x2320] sm:$0xff]  ;;  %v1277_v53 = vld [vmem:[%s10004_s1 + $0x2298] sm:$0xff] }
 0x264   :  { %3794 = vmatmul.mubr.f32.vlgmr.msra.gmra.mxu0 %v90_v30  ;;  %3868 = vmatprep.mubr.f32.mxu1 %v93_v56  ;;  %v1309_v54 = vld [vmem:[%s10004_s1 + $0x2398] sm:$0xff] }
 0x265   :  { %5552 = vmatprep.subr.mxu0 %v1289_v57  ;;  %5590 = vmatprep.subr.mxu1 %v1321_v58  ;;  %v1261_v30 = vld [vmem:[%s10004_s1 + $0x2218] sm:$0xff]  ;;  %v9598_v57 = vpop.f32.mrf.mxu1  ;;  %v1276_v58 = vld [vmem:[%s10004_s1 + $0x2290] sm:$0xff] }
 0x266   :  { %3869 = vmatmul.mubr.f32.vlgmr.msra.gmra.mxu1 %v92_v59  ;;  %5553 = vmatpush3.msra.mxu0 %v1273_v60  ;;  %v1293_v56 = vld [vmem:[%s10004_s1 + $0x2318] sm:$0xff]  ;;  %v1308_v59 = vld [vmem:[%s10004_s1 + $0x2390] sm:$0xff] }
 0x267   :  { %5591 = vmatpush3.msra.mxu1 %v1305_v61  ;;  %5554 = vmatprep.subr.mxu0 %v1288_v62  ;;  %v1260_v60 = vld [vmem:[%s10004_s1 + $0x2210] sm:$0xff]  ;;  %v9612_v62 = vpop.f32.mrf.mxu0 }
 0x268   :  { %5592 = vmatprep.subr.mxu1 %v1320_v63  ;;  %3798 = vmatprep.mubr.f32.mxu0 %v163_v0  ;;  %v1292_v61 = vld [vmem:[%s10004_s1 + $0x2310] sm:$0xff]  ;;  %v1275_v63 = vld [vmem:[%s10004_s1 + $0x2288] sm:$0xff] }
 0x269   :  { %5555 = vmatpush3.msra.mxu0 %v1272_v1  ;;  %5593 = vmatpush3.msra.mxu1 %v1304_v2  ;;  %v1307_v0 = vld [vmem:[%s10004_s1 + $0x2388] sm:$0xff] }
 0x26a   :  { %3799 = vmatmul.mubr.f32.gmra.mxu0 %v162_v3  ;;  %5556 = vmatprep.subr.mxu0 %v1287_v4  ;;  %v1259_v1 = vld [vmem:[%s10004_s1 + $0x2208] sm:$0xff]  ;;  %v9626_v3 = vpop.f32.mrf.mxu1  ;;  %v9628_v4 = vpop.f32.mrf.mxu0 }
 0x26b   :  { %5594 = vmatprep.subr.mxu1 %v1319_v5  ;;  %3873 = vmatprep.mubr.f32.mxu1 %v165_v6  ;;  %v1291_v2 = vld [vmem:[%s10004_s1 + $0x2308] sm:$0xff]  ;;  %v1274_v5 = vld [vmem:[%s10004_s1 + $0x2280] sm:$0xff] }
 0x26c   :  { %5557 = vmatpush3.msra.mxu0 %v1271_v7  ;;  %5595 = vmatpush3.msra.mxu1 %v1303_v8  ;;  %v1306_v6 = vld [vmem:[%s10004_s1 + $0x2380] sm:$0xff]  ;;  %v95_v8 = vld [vmem:[%s10005_s0 + $0x228] sm:$0xff] }
 0x26d   :  { %5558 = vmatprep.subr.mxu0 %v1286_v9  ;;  %3874 = vmatmul.mubr.f32.gmra.mxu1 %v164_v10  ;;  %v1258_v7 = vld [vmem:[%s10004_s1 + $0x2200] sm:$0xff]  ;;  %v9642_v9 = vpop.f32.mrf.mxu1 }
 0x26e   :  { %5596 = vmatprep.subr.mxu1 %v1318_v11  ;;  %5559 = vmatpush3.msra.mxu0 %v1270_v12  ;;  %v1290_v10 = vld [vmem:[%s10004_s1 + $0x2300] sm:$0xff]  ;;  %v97_v11 = vld [vmem:[%s10005_s0 + $0x238] sm:$0xff] }
 0x26f   :  { %5597 = vmatpush3.msra.mxu1 %v1302_v13  ;;  %5560 = vmatprep.subr.mxu0 %v1285_v16  ;;  %v94_v12 = vld [vmem:[%s10005_s0 + $0x220] sm:$0xff]  ;;  %v96_v13 = vld [vmem:[%s10005_s0 + $0x230] sm:$0xff]  ;;  %v9656_v16 = vpop.f32.mrf.mxu0 }
 0x270   :  { %5598 = vmatprep.subr.mxu1 %v1317_v17  ;;  %5561 = vmatpush3.msra.mxu0 %v1269_v18  ;;  %v167_v17 = vld [vmem:[%s10005_s0 + $0x468] sm:$0xff]  ;;  %v169_v18 = vld [vmem:[%s10005_s0 + $0x478] sm:$0xff] }
 0x271   :  { %5599 = vmatpush3.msra.mxu1 %v1301_v19  ;;  %5562 = vmatprep.subr.mxu0 %v1284_v20  ;;  %v9664_v19 = vpop.f32.mrf.mxu1  ;;  %v166_v20 = vld [vmem:[%s10005_s0 + $0x460] sm:$0xff] }
 0x272   :  { %5600 = vmatprep.subr.mxu1 %v1316_v21  ;;  %5563 = vmatpush3.msra.mxu0 %v1268_v22  ;;  %v168_v21 = vld [vmem:[%s10005_s0 + $0x470] sm:$0xff]  ;;  %v9672_v22 = vpop.f32.mrf.mxu0 }
 0x273   :  { %5601 = vmatpush3.msra.mxu1 %v1300_v23  ;;  %5564 = vmatprep.subr.mxu0 %v1283_v24  ;;  %v9674_v23 = vpop.f32.mrf.mxu1 }
 0x274   :  { %5602 = vmatprep.subr.mxu1 %v1315_v25  ;;  %5565 = vmatpush3.msra.mxu0 %v1267_v26  ;;  %v9676_v24 = vpop.f32.mrf.mxu0 }
 0x275   :  { %5603 = vmatpush3.msra.mxu1 %v1299_v27  ;;  %5566 = vmatprep.subr.mxu0 %v1282_v28  ;;  %v9678_v25 = vpop.f32.mrf.mxu1 }
 0x276   :  { %5604 = vmatprep.subr.mxu1 %v1314_v29  ;;  %5567 = vmatpush3.msra.mxu0 %v1266_v31  ;;  %v9680_v26 = vpop.f32.mrf.mxu0 }
 0x277   :  { %5605 = vmatpush3.msra.mxu1 %v1298_v32  ;;  %5568 = vmatprep.subr.mxu0 %v1281_v33  ;;  %v9682_v27 = vpop.f32.mrf.mxu1 }
 0x278   :  { %5606 = vmatprep.subr.mxu1 %v1313_v34  ;;  %5569 = vmatpush3.msra.mxu0 %v1265_v35  ;;  %v9684_v28 = vpop.f32.mrf.mxu0 }
 0x279   :  { %5607 = vmatpush3.msra.mxu1 %v1297_v36  ;;  %5570 = vmatprep.subr.mxu0 %v1280_v38  ;;  %v9686_v29 = vpop.f32.mrf.mxu1 }
 0x27a   :  { %5608 = vmatprep.subr.mxu1 %v1312_v39  ;;  %5571 = vmatpush3.msra.mxu0 %v1264_v40  ;;  %v9688_v31 = vpop.f32.mrf.mxu0 }
 0x27b   :  { %5609 = vmatpush3.msra.mxu1 %v1296_v41  ;;  %5572 = vmatprep.subr.mxu0 %v1279_v43  ;;  %v9690_v32 = vpop.f32.mrf.mxu1 }
 0x27c   :  { %5610 = vmatprep.subr.mxu1 %v1311_v44  ;;  %5573 = vmatpush3.msra.mxu0 %v1263_v45  ;;  %v9692_v33 = vpop.f32.mrf.mxu0 }
 0x27d   :  { %5611 = vmatpush3.msra.mxu1 %v1295_v46  ;;  %5574 = vmatprep.subr.mxu0 %v1278_v48  ;;  %v9694_v34 = vpop.f32.mrf.mxu1 }
 0x27e   :  { %5612 = vmatprep.subr.mxu1 %v1310_v49  ;;  %5575 = vmatpush3.msra.mxu0 %v1262_v50  ;;  %v9696_v35 = vpop.f32.mrf.mxu0  ;;  %v4046_v50 = vld [vmem:[%s10007_s3 + $0x78] sm:$0xff] }
 0x27f   :  { %5613 = vmatpush3.msra.mxu1 %v1294_v51  ;;  %5576 = vmatprep.subr.mxu0 %v1277_v53  ;;  %v9698_v36 = vpop.f32.mrf.mxu1  ;;  %v4045_v51 = vld [vmem:[%s10007_s3 + $0x70] sm:$0xff] }
 0x280   :  { %5614 = vmatprep.subr.mxu1 %v1309_v54  ;;  %5577 = vmatpush3.msra.mxu0 %v1261_v30  ;;  %v9700_v38 = vpop.f32.mrf.mxu0  ;;  %v4044_v54 = vld [vmem:[%s10007_s3 + $0x68] sm:$0xff] }
 0x281   :  { %5615 = vmatpush3.msra.mxu1 %v1293_v56  ;;  %5578 = vmatprep.subr.mxu0 %v1276_v58  ;;  %v9702_v39 = vpop.f32.mrf.mxu1  ;;  %v4043_v56 = vld [vmem:[%s10007_s3 + $0x60] sm:$0xff] }
 0x282   :  { %5616 = vmatprep.subr.mxu1 %v1308_v59  ;;  %5579 = vmatpush3.msra.mxu0 %v1260_v60  ;;  %v9704_v40 = vpop.f32.mrf.mxu0  ;;  %v4042_v59 = vld [vmem:[%s10007_s3 + $0x58] sm:$0xff] }
 0x283   :  { %5617 = vmatpush3.msra.mxu1 %v1292_v61  ;;  %5580 = vmatprep.subr.mxu0 %v1275_v63  ;;  %v9706_v41 = vpop.f32.mrf.mxu1  ;;  %v4041_v63 = vld [vmem:[%s10007_s3 + $0x50] sm:$0xff] }
 0x284   :  { %5618 = vmatprep.subr.mxu1 %v1307_v0  ;;  %5581 = vmatpush3.msra.mxu0 %v1259_v1  ;;  %v9708_v43 = vpop.f32.mrf.mxu0  ;;  %v4040_v1 = vld [vmem:[%s10007_s3 + $0x48] sm:$0xff] }
 0x285   :  { %5619 = vmatpush3.msra.mxu1 %v1291_v2  ;;  %5582 = vmatprep.subr.mxu0 %v1274_v5  ;;  %v9710_v44 = vpop.f32.mrf.mxu1  ;;  %v4039_v5 = vld [vmem:[%s10007_s3 + $0x40] sm:$0xff] }
 0x286   :  { %5620 = vmatprep.subr.mxu1 %v1306_v6  ;;  %5583 = vmatpush3.msra.mxu0 %v1258_v7  ;;  %v9712_v45 = vpop.f32.mrf.mxu0  ;;  %v4038_v7 = vld [vmem:[%s10007_s3 + $0x38] sm:$0xff] }
 0x287   :  { %3943 = vmatprep.mubr.f32.mxu0 %v95_v8  ;;  %5621 = vmatpush3.msra.mxu1 %v1290_v10  ;;  %v9714_v46 = vpop.f32.mrf.mxu1 }
 0x288   :  { %4018 = vmatprep.mubr.f32.mxu1 %v97_v11  ;;  %3944 = vmatmul.mubr.f32.vlgmr.msra.gmra.mxu0 %v94_v12  ;;  %v9716_v48 = vpop.f32.mrf.mxu0 }
 0x289   :  { %4019 = vmatmul.mubr.f32.vlgmr.msra.gmra.mxu1 %v96_v13  ;;  %3948 = vmatprep.mubr.f32.mxu0 %v167_v17  ;;  %v9718_v49 = vpop.f32.mrf.mxu1  ;;  %v4037_v17 = vld [vmem:[%s10007_s3 + $0x30] sm:$0xff] }
 0x28a   :  { %4023 = vmatprep.mubr.f32.mxu1 %v169_v18  ;;  %v9726_v53 = vpop.f32.mrf.mxu0  ;;  %5652 = vmatprep.subr.mxu0 %v4046_v50 }
 0x28b   :  { %5653 = vmatpush3.msra.mxu0 %v4046_v50  ;;  %v9731_v30 = vpop.f32.mrf.mxu1  ;;  %v4035_v50 = vld [vmem:[%s10007_s3 + $0x20] sm:$0xff] }
 0x28c   :  { %3949 = vmatmul.mubr.f32.gmra.mxu0 %v166_v20  ;;  %5654 = vmatprep.subr.mxu0 %v4045_v51  ;;  %v9736_v58 = vpop.f32.mrf.mxu0  ;;  %v4036_v20 = vld [vmem:[%s10007_s3 + $0x28] sm:$0xff] }
 0x28d   :  { %4024 = vmatmul.mubr.f32.gmra.mxu1 %v168_v21  ;;  %5655 = vmatpush3.msra.mxu0 %v4045_v51  ;;  %v9741_v60 = vpop.f32.mrf.mxu1 }
 0x28e   :  { %5656 = vmatprep.subr.mxu0 %v4044_v54  ;;  %v9743_v61 = vpop.f32.mrf.mxu0 }
 0x28f   :  { %5657 = vmatpush3.msra.mxu0 %v4044_v54  ;;  %v9748_v0 = vpop.f32.mrf.mxu1  ;;  %v4034_v54 = vld [vmem:[%s10007_s3 + $0x18] sm:$0xff] }
 0x290   :  { %5658 = vmatprep.subr.mxu0 %v4043_v56  ;;  %v9753_v2 = vpop.f32.mrf.mxu0 }
 0x291   :  { %5659 = vmatpush3.msra.mxu0 %v4043_v56  ;;  %v9758_v6 = vpop.f32.mrf.mxu1 }
 0x292   :  { %5660 = vmatprep.subr.mxu0 %v4042_v59  ;;  %v9763_v8 = vpop.f32.mrf.mxu0 }
 0x293   :  { %5661 = vmatpush3.msra.mxu0 %v4042_v59  ;;  %v9765_v10 = vpop.f32.mrf.mxu1  ;;  %v4033_v59 = vld [vmem:[%s10007_s3 + $0x10] sm:$0xff] }
 0x294   :  { %5662 = vmatprep.subr.mxu0 %v4041_v63  ;;  %v9767_v11 = vpop.f32.mrf.mxu0 }
 0x295   :  { %5663 = vmatpush3.msra.mxu0 %v4041_v63  ;;  %v9769_v12 = vpop.f32.mrf.mxu1 }
 0x296   :  { %5664 = vmatprep.subr.mxu0 %v4040_v1  ;;  %v9771_v13 = vpop.f32.mrf.mxu0 }
 0x297   :  { %5665 = vmatpush3.msra.mxu0 %v4040_v1  ;;  %v9776_v18 = vpop.f32.mrf.mxu1  ;;  %v4032_v1 = vld [vmem:[%s10007_s3 + $0x8] sm:$0xff] }
 0x298   :  { %5666 = vmatprep.subr.mxu0 %v4039_v5  ;;  %v9781_v21 = vpop.f32.mrf.mxu0 }
 0x299   :  { %5667 = vmatpush3.msra.mxu0 %v4039_v5  ;;  %v9786_v51 = vpop.f32.mrf.mxu1 }
 0x29a   :  { %5668 = vmatprep.subr.mxu0 %v4038_v7  ;;  %10012 = vst [vmem:[#allocation2_spill] sm:$0xff] %v9786_v51  ;;  %v9791_v56 = vpop.f32.mrf.mxu0 }
 0x29b   :  { %5669 = vmatpush3.msra.mxu0 %v4038_v7  ;;  %10013 = vst [vmem:[#allocation3_spill] sm:$0xff] %v9791_v56  ;;  %v9796_v63 = vpop.f32.mrf.mxu1  ;;  %v4031_v7 = vld [vmem:[%s10007_s3] sm:$0xff] }
 0x29c   :  { %5670 = vmatprep.subr.mxu0 %v4037_v17  ;;  %10014 = vst [vmem:[#allocation4_spill] sm:$0xff] %v9796_v63  ;;  %v9801_v5 = vpop.f32.mrf.mxu0 }
 0x29d   :  { %5671 = vmatpush3.msra.mxu0 %v4037_v17  ;;  %10015 = vst [vmem:[#allocation5_spill] sm:$0xff] %v9801_v5  ;;  %v9806_v17 = vpop.f32.mrf.mxu1 }
 0x29e   :  { %5672 = vmatprep.subr.mxu0 %v4036_v20  ;;  %10016 = vst [vmem:[#allocation6_spill] sm:$0xff] %v9806_v17 }
 0x29f   :  { %5673 = vmatpush3.msra.mxu0 %v4036_v20  ;;  %v9808_v20 = vpop.f32.mrf.mxu0 }
 0x2a0   :  { %5674 = vmatprep.subr.mxu0 %v4035_v50  ;;  %10017 = vst [vmem:[#allocation7_spill] sm:$0xff] %v9808_v20 }
 0x2a1   :  { %5675 = vmatpush3.msra.mxu0 %v4035_v50  ;;  %v9810_v50 = vpop.f32.mrf.mxu1 }
 0x2a2   :  { %5676 = vmatprep.subr.mxu0 %v4034_v54  ;;  %10018 = vst [vmem:[#allocation8_spill] sm:$0xff] %v9810_v50 }
 0x2a3   :  { %5677 = vmatpush3.msra.mxu0 %v4034_v54  ;;  %v4134_v54 = vld [vmem:[%s10008_s5 + $0x18] sm:$0xff] }
 0x2a4   :  { %5678 = vmatprep.subr.mxu0 %v4033_v59  ;;  %5687 = vmatprep.subr.mxu1 %v4134_v54 }
 0x2a5   :  { %5679 = vmatpush3.msra.mxu0 %v4033_v59  ;;  %v9815_v59 = vpop.f32.mrf.mxu0  ;;  %5688 = vmatpush3.msra.mxu1 %v4134_v54 }
 0x2a6   :  { %5680 = vmatprep.subr.mxu0 %v4032_v1  ;;  %10019 = vst [vmem:[#allocation9_spill] sm:$0xff] %v9815_v59 }
 0x2a7   :  { %5681 = vmatpush3.msra.mxu0 %v4032_v1  ;;  %v9817_v1 = vpop.f32.mrf.mxu1  ;;  %v9819_v63 = vpop.f32.mrf.mxu0 }
 0x2a8   :  { %5682 = vmatprep.subr.mxu0 %v4031_v7  ;;  %10020 = vst [vmem:[#allocation10_spill] sm:$0xff] %v9819_v63  ;;  %v4446_v63 = vadd.f32 %v9556_v42, %v9528_v14 }
 0x2a9   :  { %5683 = vmatpush3.msra.mxu0 %v4031_v7  ;;  %v9821_v5 = vpop.f32.mrf.mxu1  ;;  %v9823_v17 = vpop.f32.mrf.mxu0 }
 0x2aa   :  { %10021 = vst [vmem:[#allocation11_spill] sm:$0xff] %v9821_v5  ;;  %10022 = vst [vmem:[#allocation12_spill] sm:$0xff] %v9823_v17 }
 0x2ab   :  { %v9825_v20 = vpop.f32.mrf.mxu1  ;;  %v9827_v7 = vpop.f32.mrf.mxu0 }
 0x2ac   :  { %10023 = vst [vmem:[#allocation13_spill] sm:$0xff] %v9825_v20  ;;  %10024 = vst [vmem:[#allocation14_spill] sm:$0xff] %v9827_v7  ;;  %v1696_v7 = vadd.f32 %v4446_v63, %v7382_v55 }
 0x2ad   :  { %v9829_v50 = vpop.f32.mrf.mxu1  ;;  %v9831_v56 = vpop.f32.mrf.mxu0 }
 0x2ae   :  { %10025 = vst [vmem:[#allocation15_spill] sm:$0xff] %v9829_v50  ;;  %v4484_v50 = vadd.f32 %v9570_v47, %v9542_v37  ;;  %v4560_v37 = vadd.f32 %v9664_v19, %v9642_v9  ;;  %v4525_v47 = vadd.f32 %v9676_v24, %v9672_v22  ;;  %v4636_v9 = vadd.f32 %v9686_v29, %v9682_v27 }
 0x2af   :  { %v9833_v51 = vpop.f32.mrf.mxu1  ;;  %v9835_v59 = vpop.f32.mrf.mxu0  ;;  %v4601_v19 = vadd.f32 %v9692_v33, %v9688_v31  ;;  %v4712_v29 = vadd.f32 %v9702_v39, %v9698_v36  ;;  %v4677_v31 = vadd.f32 %v9708_v43, %v9704_v40  ;;  %v4788_v36 = vadd.f32 %v9718_v49, %v9714_v46 }
 0x2b0   :  { %10026 = vst [vmem:[#allocation16_spill] sm:$0xff] %v9833_v51  ;;  %10027 = vst [vmem:[#allocation17_spill] sm:$0xff] %v9835_v59  ;;  %v4449_v51 = vadd.f32 %v9612_v62, %v9584_v52  ;;  %v1771_v42 = vadd.f32 %v4484_v50, %v1696_v7  ;;  %v4753_v39 = vadd.f32 %v9736_v58, %v9726_v53 }
 0x2b1   :  { %v9837_v54 = vpop.f32.mrf.mxu1  ;;  %v9841_v5 = vpop.f32.mrf.mxu0  ;;  %v4864_v49 = vadd.f32 %v9758_v6, %v9748_v0  ;;  %v4829_v53 = vadd.f32 %v9767_v11, %v9763_v8  ;;  %v10032_v6 = vld [vmem:[#allocation3_spill] sm:$0xff] }
 0x2b2   :  { %10028 = vst [vmem:[#allocation18_spill] sm:$0xff] %v9837_v54  ;;  %v4522_v54 = vadd.f32 %v9656_v16, %v9628_v4  ;;  %v4598_v4 = vadd.f32 %v9684_v28, %v9680_v26  ;;  %v4674_v28 = vadd.f32 %v9700_v38, %v9696_v35  ;;  %v4750_v35 = vadd.f32 %v9716_v48, %v9712_v45 }
 0x2b3   :  { %v9843_v17 = vpop.f32.mrf.mxu1  ;;  %v9845_v20 = vpop.f32.mrf.mxu0  ;;  %v4826_v45 = vadd.f32 %v9753_v2, %v9743_v61  ;;  %v4902_v2 = vadd.f32 %v9781_v21, %v9771_v13  ;;  %v10035_v13 = vld [vmem:[#allocation9_spill] sm:$0xff] }
 0x2b4   :  { %10029 = vst [vmem:[#allocation19_spill] sm:$0xff] %v9843_v17  ;;  %10030 = vst [vmem:[#allocation20_spill] sm:$0xff] %v9845_v20  ;;  %v1701_v17 = vadd.f32 %v4449_v51, %v7432_v15  ;;  %v4487_v20 = vadd.f32 %v9626_v3, %v9598_v57  ;;  %v1846_v63 = vadd.f32 %v4522_v54, %v1771_v42 }
 0x2b5   :  { %v9852_v59 = vpop.f32.mrf.mxu1  ;;  %v9856_v14 = vpop.f32.mrf.mxu0  ;;  %v4563_v57 = vadd.f32 %v9678_v25, %v9674_v23 }
 0x2b6   :  { %v1776_v62 = vadd.f32 %v4487_v20, %v1701_v17  ;;  %v1921_v15 = vadd.f32 %v4560_v37, %v1846_v63  ;;  %v4639_v20 = vadd.f32 %v9694_v34, %v9690_v32  ;;  %v4715_v32 = vadd.f32 %v9710_v44, %v9706_v41 }
 0x2b7   :  { %v9861_v55 = vpop.f32.mrf.mxu1  ;;  %v9867_v52 = vpop.f32.mrf.mxu0 }
 0x2b8   :  { %v1851_v51 = vadd.f32 %v4525_v47, %v1776_v62  ;;  %v1996_v50 = vadd.f32 %v4598_v4, %v1921_v15  ;;  %v4791_v62 = vadd.f32 %v9741_v60, %v9731_v30  ;;  %v4867_v30 = vadd.f32 %v9769_v12, %v9765_v10 }
 0x2b9   :  { %v9871_v16 = vpop.f32.mrf.mxu1  ;;  %v9875_v3 = vpop.f32.mrf.mxu0 }
 0x2ba   :  { %v1926_v26 = vadd.f32 %v4563_v57, %v1851_v51  ;;  %v2071_v23 = vadd.f32 %v4636_v9, %v1996_v50  ;;  %v10031_v9 = vld [vmem:[#allocation2_spill] sm:$0xff] }
 0x2bb   :  { %v9881_v22 = vpop.f32.mrf.mxu1  ;;  %v9883_v24 = vpop.f32.mrf.mxu0  ;;  %v4940_v0 = vadd.f32 %v10031_v9, %v9776_v18 }
 0x2bc   :  { %v2001_v25 = vadd.f32 %v4601_v19, %v1926_v26  ;;  %v2146_v27 = vadd.f32 %v4674_v28, %v2071_v23  ;;  %v10033_v19 = vld [vmem:[#allocation5_spill] sm:$0xff]  ;;  %v10034_v28 = vld [vmem:[#allocation7_spill] sm:$0xff] }
 0x2bd   :  { %v9887_v17 = vpop.f32.mrf.mxu1  ;;  %v9891_v7 = vpop.f32.mrf.mxu0  ;;  %v4905_v8 = vadd.f32 %v10033_v19, %v10032_v6  ;;  %v4978_v21 = vadd.f32 %v10035_v13, %v10034_v28  ;;  %v10049_v28 = vld [vmem:[#allocation19_spill] sm:$0xff] }
 0x2be   :  { %v2076_v54 = vadd.f32 %v4639_v20, %v2001_v25  ;;  %v2221_v42 = vadd.f32 %v4712_v29, %v2146_v27  ;;  %v10036_v27 = vld [vmem:[#allocation4_spill] sm:$0xff]  ;;  %v10037_v29 = vld [vmem:[#allocation6_spill] sm:$0xff] }
 0x2bf   :  { %v9897_v33 = vpop.f32.mrf.mxu1  ;;  %v9901_v38 = vpop.f32.mrf.mxu0  ;;  %v4943_v10 = vadd.f32 %v10037_v29, %v10036_v27  ;;  %v5133_v27 = vadd.f32 %v9875_v3, %v9867_v52 }
 0x2c0   :  { %v2151_v63 = vadd.f32 %v4677_v31, %v2076_v54  ;;  %v2296_v37 = vadd.f32 %v4750_v35, %v2221_v42  ;;  %v10038_v35 = vld [vmem:[#allocation8_spill] sm:$0xff]  ;;  %v10039_v42 = vld [vmem:[#allocation10_spill] sm:$0xff] }
 0x2c1   :  { %v9905_v34 = vpop.f32.mrf.mxu1  ;;  %v9911_v40 = vpop.f32.mrf.mxu0  ;;  %v5016_v18 = vadd.f32 %v9817_v1, %v10038_v35  ;;  %v10046_v1 = vld [vmem:[#allocation17_spill] sm:$0xff] }
 0x2c2   :  { %v2226_v43 = vadd.f32 %v4715_v32, %v2151_v63  ;;  %v2371_v41 = vadd.f32 %v4788_v36, %v2296_v37  ;;  %v10040_v63 = vld [vmem:[#allocation12_spill] sm:$0xff] }
 0x2c3   :  { %v9915_v48 = vpop.f32.mrf.mxu1  ;;  %v9917_v47 = vpop.f32.mrf.mxu0  ;;  %v4981_v32 = vadd.f32 %v10040_v63, %v10039_v42  ;;  %v5171_v42 = vadd.f32 %v9881_v22, %v9871_v16 }
 0x2c4   :  { %v2301_v44 = vadd.f32 %v4753_v39, %v2226_v43  ;;  %v2446_v46 = vadd.f32 %v4826_v45, %v2371_v41  ;;  %v10041_v39 = vld [vmem:[#allocation14_spill] sm:$0xff] }
 0x2c5   :  { %v9921_v4 = vpop.f32.mrf.mxu1  ;;  %v5281_v58 = vpop.f32.mrf.mxu0  ;;  %v5054_v43 = vadd.f32 %v9831_v56, %v10041_v39 }
 0x2c6   :  { %v2376_v61 = vadd.f32 %v4791_v62, %v2301_v44  ;;  %v2521_v51 = vadd.f32 %v4864_v49, %v2446_v46  ;;  %v10042_v62 = vld [vmem:[#allocation11_spill] sm:$0xff]  ;;  %v10043_v46 = vld [vmem:[#allocation13_spill] sm:$0xff] }
 0x2c7   :  { %v9929_v15 = vpop.f32.mrf.mxu1  ;;  %v5283_v60 = vpop.f32.mrf.mxu0  ;;  %v5019_v49 = vadd.f32 %v10043_v46, %v10042_v62 }
 0x2c8   :  { %v2451_v57 = vadd.f32 %v4829_v53, %v2376_v61  ;;  %v2596_v50 = vadd.f32 %v4902_v2, %v2521_v51  ;;  %v10044_v2 = vld [vmem:[#allocation15_spill] sm:$0xff]  ;;  %v10045_v51 = vld [vmem:[#allocation16_spill] sm:$0xff]  ;;  %v5320_v22 = vadd.f32 %v9929_v15, %v9921_v4 }
 0x2c9   :  { %v9937_v11 = vpop.f32.mrf.mxu1  ;;  %v5284_v23 = vpop.f32.mrf.mxu0 }
 0x2ca   :  { %v2526_v26 = vadd.f32 %v4867_v30, %v2451_v57  ;;  %v2671_v25 = vadd.f32 %v4940_v0, %v2596_v50  ;;  %v5092_v57 = vadd.f32 %v10045_v51, %v10044_v2  ;;  %v5057_v30 = vadd.f32 %v9841_v5, %v10046_v1  ;;  %v10047_v0 = vld [vmem:[#allocation20_spill] sm:$0xff] }
 0x2cb   :  { %v5322_v12 = vpop.f32.mrf.mxu1  ;;  %v5130_v6 = vadd.f32 %v9856_v14, %v10047_v0  ;;  %v5206_v14 = vadd.f32 %v9891_v7, %v9883_v24 }
 0x2cc   :  { %v2601_v20 = vadd.f32 %v4905_v8, %v2526_v26  ;;  %v2746_v54 = vadd.f32 %v4978_v21, %v2671_v25  ;;  %v10048_v26 = vld [vmem:[#allocation18_spill] sm:$0xff] }
 0x2cd   :  { %v5095_v13 = vadd.f32 %v10049_v28, %v10048_v26 }
 0x2ce   :  { %v2676_v36 = vadd.f32 %v4943_v10, %v2601_v20  ;;  %v2821_v41 = vadd.f32 %v5016_v18, %v2746_v54  ;;  %v5168_v20 = vadd.f32 %v9861_v55, %v9852_v59  ;;  %v5244_v59 = vadd.f32 %v9897_v33, %v9887_v17 }
 0x2cf   :  { %v5209_v55 = vadd.f32 %v9911_v40, %v9901_v38 }
 0x2d0   :  { %v2751_v44 = vadd.f32 %v4981_v32, %v2676_v36  ;;  %v2896_v61 = vadd.f32 %v5054_v43, %v2821_v41  ;;  %v5282_v36 = vadd.f32 %v5281_v58, %v9917_v47  ;;  %v5247_v43 = vadd.f32 %v9915_v48, %v9905_v34 }
 0x2d1   :  { %v5323_v47 = vadd.f32 %v5322_v12, %v9937_v11 }
 0x2d2   :  { %v2826_v9 = vadd.f32 %v5019_v49, %v2751_v44  ;;  %v2971_v19 = vadd.f32 %v5092_v57, %v2896_v61  ;;  %v5285_v44 = vadd.f32 %v5284_v23, %v5283_v60 }
 0x2d4   :  { %v2901_v8 = vadd.f32 %v5057_v30, %v2826_v9  ;;  %v3046_v25 = vadd.f32 %v5130_v6, %v2971_v19 }
 0x2d6   :  { %v2976_v10 = vadd.f32 %v5095_v13, %v2901_v8  ;;  %v3121_v35 = vadd.f32 %v5168_v20, %v3046_v25 }
 0x2d8   :  { %v3051_v18 = vadd.f32 %v5133_v27, %v2976_v10  ;;  %v3196_v32 = vadd.f32 %v5206_v14, %v3121_v35 }
 0x2da   :  { %v3126_v3 = vadd.f32 %v5171_v42, %v3051_v18  ;;  %v3271_v24 = vadd.f32 %v5244_v59, %v3196_v32 }
 0x2dc   :  { %v5356_v31 = vpop.f32.mrf.mxu0  ;;  %v3201_v7 = vadd.f32 %v5209_v55, %v3126_v3  ;;  %v3346_v16 = vadd.f32 %v5282_v36, %v3271_v24  ;;  %v4133_v24 = vld [vmem:[%s10008_s5 + $0x10] sm:$0xff] }
 0x2dd   :  { %5689 = vmatprep.subr.mxu1 %v4133_v24 }
 0x2de   :  { %v5394_v37 = vpop.f32.mrf.mxu1  ;;  %v5357_v45 = vpop.f32.mrf.mxu0  ;;  %v3276_v33 = vadd.f32 %v5247_v43, %v3201_v7  ;;  %v3421_v46 = vadd.f32 %v5320_v22, %v3346_v16  ;;  %5690 = vmatpush3.msra.mxu1 %v4133_v24  ;;  %v4132_v7 = vld [vmem:[%s10008_s5 + $0x8] sm:$0xff]  ;;  %v4131_v43 = vld [vmem:[%s10008_s5] sm:$0xff] }
 0x2df   :  { %v5358_v62 = vadd.f32 %v5357_v45, %v5356_v31  ;;  %5691 = vmatprep.subr.mxu1 %v4132_v7 }
 0x2e0   :  { %v5395_v53 = vpop.f32.mrf.mxu1  ;;  %v3351_v49 = vadd.f32 %v5285_v44, %v3276_v33  ;;  %5692 = vmatpush3.msra.mxu1 %v4132_v7 }
 0x2e1   :  { %v3496_v61 = vadd.f32 %v5358_v62, %v3421_v46  ;;  %v5396_v2 = vadd.f32 %v5395_v53, %v5394_v37  ;;  %5693 = vmatprep.subr.mxu1 %v4131_v43 }
 0x2e2   :  { %v5359_v50 = vpop.f32.mrf.mxu0  ;;  %v3426_v48 = vadd.f32 %v5323_v47, %v3351_v49  ;;  %5694 = vmatpush3.msra.mxu1 %v4131_v43 }
 0x2e3   :  { %v3571_v30 = vadd.f32 %v5396_v2, %v3496_v61 }
 0x2e4   :  { %v5360_v21 = vpop.f32.mrf.mxu0 }
 0x2e5   :  { %v5397_v56 = vpop.f32.mrf.mxu1  ;;  %v5361_v51 = vadd.f32 %v5360_v21, %v5359_v50 }
 0x2e7   :  { %v5398_v5 = vpop.f32.mrf.mxu1  ;;  %v3501_v4 = vadd.f32 %v5361_v51, %v3426_v48 }
 0x2e8   :  { %v5399_v15 = vadd.f32 %v5398_v5, %v5397_v56 }
 0x2ea   :  { %v3576_v0 = vadd.f32 %v5399_v15, %v3501_v4 }
 0x300   :  { %v5432_v29 = vpop.f32.mrf.mxu0 }
 0x302   :  { %v5470_v54 = vpop.f32.mrf.mxu1  ;;  %v5433_v63 = vpop.f32.mrf.mxu0 }
 0x303   :  { %v5434_v57 = vadd.f32 %v5433_v63, %v5432_v29 }
 0x304   :  { %v5471_v52 = vpop.f32.mrf.mxu1 }
 0x305   :  { %v3646_v23 = vadd.f32 %v5434_v57, %v3571_v30  ;;  %v5472_v31 = vadd.f32 %v5471_v52, %v5470_v54 }
 0x306   :  { %v5435_v39 = vpop.f32.mrf.mxu0 }
 0x307   :  { %v3721_v11 = vadd.f32 %v5472_v31, %v3646_v23 }
 0x308   :  { %v5436_v17 = vpop.f32.mrf.mxu0 }
 0x309   :  { %v5473_v41 = vpop.f32.mrf.mxu1  ;;  %v5437_v45 = vadd.f32 %v5436_v17, %v5435_v39 }
 0x30b   :  { %v5474_v38 = vpop.f32.mrf.mxu1  ;;  %v3651_v12 = vadd.f32 %v5437_v45, %v3576_v0 }
 0x30c   :  { %v5475_v8 = vadd.f32 %v5474_v38, %v5473_v41  ;;  %v4256_v41 = vld [vmem:[%s10009_s4] ss:$0 sm:$0xff] }
 0x30e   :  { %v3726_v21 = vadd.f32 %v5475_v8, %v3651_v12 }
 0x324   :  { %v5508_v40 = vpop.f32.mrf.mxu0 }
 0x326   :  { %v5546_v58 = vpop.f32.mrf.mxu1  ;;  %v5509_v34 = vpop.f32.mrf.mxu0 }
 0x327   :  { %v5510_v6 = vadd.f32 %v5509_v34, %v5508_v40  ;;  %v4257_v40 = vld [vmem:[%s10010_s6] ss:$0 sm:$0xff] }
 0x328   :  { %v5547_v1 = vpop.f32.mrf.mxu1 }
 0x329   :  { %v3796_v53 = vadd.f32 %v5510_v6, %v3721_v11  ;;  %v5548_v50 = vadd.f32 %v5547_v1, %v5546_v58 }
 0x32a   :  { %v5511_v60 = vpop.f32.mrf.mxu0 }
 0x32b   :  { %v3871_v20 = vadd.f32 %v5548_v50, %v3796_v53 }
 0x32c   :  { %v5512_v19 = vpop.f32.mrf.mxu0 }
 0x32d   :  { %v5549_v9 = vpop.f32.mrf.mxu1  ;;  %v5513_v26 = vadd.f32 %v5512_v19, %v5511_v60 }
 0x32f   :  { %v5550_v37 = vpop.f32.mrf.mxu1  ;;  %v3801_v27 = vadd.f32 %v5513_v26, %v3726_v21 }
 0x330   :  { %v5551_v5 = vadd.f32 %v5550_v37, %v5549_v9 }
 0x332   :  { %v3876_v63 = vadd.f32 %v5551_v5, %v3801_v27 }
 0x348   :  { %v5584_v28 = vpop.f32.mrf.mxu0 }
 0x349   :  { %v5622_v13 = vpop.f32.mrf.mxu1 }
 0x34a   :  { %v5585_v25 = vpop.f32.mrf.mxu0 }
 0x34b   :  { %v5623_v56 = vpop.f32.mrf.mxu1  ;;  %v5586_v29 = vadd.f32 %v5585_v25, %v5584_v28 }
 0x34c   :  { %v5587_v10 = vpop.f32.mrf.mxu0  ;;  %v5624_v35 = vadd.f32 %v5623_v56, %v5622_v13 }
 0x34d   :  { %v5625_v14 = vpop.f32.mrf.mxu1  ;;  %v3946_v54 = vadd.f32 %v5586_v29, %v3871_v20 }
 0x34e   :  { %v5588_v18 = vpop.f32.mrf.mxu0 }
 0x34f   :  { %v5626_v42 = vpop.f32.mrf.mxu1  ;;  %v4021_v32 = vadd.f32 %v5624_v35, %v3946_v54  ;;  %v5589_v59 = vadd.f32 %v5588_v18, %v5587_v10 }
 0x350   :  { %v5627_v3 = vadd.f32 %v5626_v42, %v5625_v14 }
 0x351   :  { %v4029_v55 = vmax.f32 %v4021_v32, 0.0  ;;  %v3951_v52 = vadd.f32 %v5589_v59, %v3876_v63 }
 0x353   :  { %v4026_v36 = vadd.f32 %v5627_v3, %v3951_v52  ;;  %5684 = vmatprep.mubr.f32.mxu0 %v4029_v55 }
 0x355   :  { %v4030_v39 = vmax.f32 %v4026_v36, 0.0 }
 0x357   :  { %5685 = vmatmul.mubr.f32.vlgmr.msra.gmra.mxu0 %v4030_v39 }
 0x417   :  { %v5686_v16 = vpop.f32.mrf.mxu0 }
 0x418   :  { %v4126_v22 = vadd.f32 %v5686_v16, %v4256_v41 }
 0x419   :  { %v4120_v44 = vpop.f32.mrf.mxu0 }
 0x41a   :  { %v4121_v17 = vadd.f32 %v4256_v41, %v4120_v44  ;;  %v4130_v62 = vmax.f32 %v4126_v22, 0.0 }
 0x41c   :  { %v4129_v33 = vmax.f32 %v4121_v17, 0.0 }
 0x41e   :  { %5695 = vmatprep.mubr.msk.f32.mxu1 %vm4142_vm0, %v4129_v33 }
 0x41f   :  { %5696 = vmatmul.mubr.msk.f32.vlgmr.msra.gmra.mxu1 %vm4142_vm0, %v4130_v62 }
 0x4df   :  { %v5697_v38 = vpop.f32.mrf.mxu1 }
 0x4e0   :  { %v4221_v47 = vadd.f32 %v5697_v38, %v4257_v40 }
 0x4e1   :  { %v4215_v46 = vpop.f32.mrf.mxu1 }
 0x4e2   :  { %v4216_v49 = vadd.f32 %v4257_v40, %v4215_v46  ;;  %v4228_v61 = vsel %vm4224_vm1, %v4221_v47, -inf }
 0x4e4   :  { %v4225_v58 = vsel %vm4224_vm1, %v4216_v49, -inf }
 0x4e5   :  { %4226 = vmax.xlane.f32.xlu0 %v4225_v58 }
 0x4e9   :  { %4229 = vmax.xlane.f32.xlu0 %v4228_v61 }
 0x56e   :  { %v4227_v2 = vpop.xlane.xlu0 %4226 }
 0x56f   :  { %v4231_v51 = vsub.f32 %v4216_v49, %v4227_v2 }
 0x571   :  { %v4233_v34 = vmul.f32 1.442695, %v4231_v51 }
 0x572   :  { %v4230_v48 = vpop.xlane.xlu0 %4229 }
 0x573   :  { %5698 = vpow2.f32 %v4233_v34  ;;  %v4232_v57 = vsub.f32 %v4221_v47, %v4230_v48 }
 0x575   :  { %v4235_v1 = vmul.f32 1.442695, %v4232_v57 }
 0x577   :  { %5700 = vpow2.f32 %v4235_v1 }
 0x580   :  { %v5699_v30 = vpop.eup %5698 }
 0x581   :  { %v4237_v4 = vsel %vm4224_vm1, %v5699_v30, 0.0 }
 0x582   :  { %4238 = vadd.xlane.f32.xlu1 %v4237_v4 }
 0x584   :  { %v5701_v15 = vpop.eup %5700 }
 0x585   :  { %v4240_v60 = vsel %vm4224_vm1, %v5701_v15, 0.0 }
 0x586   :  { %4241 = vadd.xlane.f32.xlu1 %v4240_v60 }
 0x60b   :  { %v4239_v23 = vpop.xlane.xlu1 %4238 }
 0x60c   :  { %5702 = vlog2.f32 %v4239_v23 }
 0x60f   :  { %v4242_v31 = vpop.xlane.xlu1 %4241 }
 0x610   :  { %5704 = vlog2.f32 %v4242_v31 }
 0x619   :  { %v5703_v45 = vpop.eup %5702 }
 0x61a   :  { %v4244_v9 = vmul.f32 0.6931472, %v5703_v45 }
 0x61c   :  { %v4247_v0 = vsub.f32 %v4231_v51, %v4244_v9 }
 0x61d   :  { %v5705_v6 = vpop.eup %5704 }
 0x61e   :  { %4249 = vst.msk [vmem:[%s10011_s7] sm:$0xff] %vm4224_vm1, %v4247_v0  ;;  %v4246_v19 = vmul.f32 0.6931472, %v5705_v6 }
 0x620   :  { %v4248_v11 = vsub.f32 %v4232_v57, %v4246_v19 }
 0x622   :  { %4250 = vst.msk [vmem:[%s10011_s7 + $0x8] sm:$0xff] %vm4224_vm1, %v4248_v11 }

</bundles_post_ra>
